<compile_context>
chip_gen: v5e
topology: v5e:2x2
jax: 0.10.0
libtpu: 0.0.40
codegen_flags: <defaults>
</compile_context>

<pallas_src>
import functools

import jax
import jax.numpy as jnp
from jax.experimental import pallas as pl
from jax.experimental.pallas import tpu as pltpu


# ---------------------------------------------------------------------------
# In-kernel helpers and kernels
# ---------------------------------------------------------------------------
def _tap_slices(z, wp, p):
    """9 shifted copies of a flattened zero-padded image.

    z : (C, P) flattened padded image, P = (H+2)*(W+2), halo entries are zero.
    Element k = ky*3+kx holds, at every interior flat position q = Y*Wp + X,
    the padded-image value at (Y+ky-1, X+kx-1).  Halo positions are garbage
    and get masked by the caller.
    """
    c = z.shape[0]
    marg = wp + 1
    zeros = jnp.zeros((c, marg), z.dtype)
    zext = jnp.concatenate([zeros, z, zeros], axis=1)        # (C, P + 2*marg)
    taps = []
    for ky in range(3):
        for kx in range(3):
            off = marg + (ky - 1) * wp + (kx - 1)            # static offset
            taps.append(zext[:, off:off + p])
    return taps


def _fused_block_kernel(xpf_ref, spf_ref, mask_ref,
                        w1_ref, s1_ref, b1_ref,
                        w2_ref, s2_ref, b2_ref,
                        o_ref, *, wp):
    """[upsampled x | skip] -> conv3x3+BN+SiLU -> conv3x3+BN+SiLU (one batch).

    xpf_ref : (1, Cx, P)  upsampled x, zero-padded (1px halo), spatial-flat
    spf_ref : (1, Cs, P)  skip connection, zero-padded, spatial-flat
    mask_ref: (1, P)      1.0 on interior positions, 0.0 on the halo
    w1_ref  : (Cout, 9*(Cx+Cs))  conv1 weights, columns = [x-part | skip-part]
    w2_ref  : (Cout, 9*Cout)     conv2 weights
    s*/b*   : (Cout, 1)          folded BatchNorm scale / bias
    o_ref   : (1, Cout, P)       conv2+SiLU output on the padded grid
    """
    p = o_ref.shape[2]
    x = xpf_ref[0]
    s = spf_ref[0]
    mask = mask_ref[...]

    # ---- conv1: single im2col matmul over [upsampled-x | skip] ------------
    patches1 = jnp.concatenate(_tap_slices(x, wp, p) + _tap_slices(s, wp, p),
                               axis=0)                       # (9*(Cx+Cs), P)
    acc1 = jnp.dot(w1_ref[...], patches1,
                   preferred_element_type=jnp.float32)       # (Cout, P)
    h1 = acc1 * s1_ref[...] + b1_ref[...]                    # folded BN
    m = h1 * jax.nn.sigmoid(h1)                              # SiLU
    m = m * mask                                             # zero the halo

    # ---- conv2 (intermediate never leaves VMEM) ----------------------------
    patches2 = jnp.concatenate(_tap_slices(m, wp, p), axis=0)    # (9*Cout, P)
    acc2 = jnp.dot(w2_ref[...], patches2,
                   preferred_element_type=jnp.float32)
    h2 = acc2 * s2_ref[...] + b2_ref[...]
    o_ref[0] = (h2 * jax.nn.sigmoid(h2)).astype(o_ref.dtype)


def _conv1x1_sigmoid_kernel(x_ref, w_ref, b_ref, o_ref):
    """1x1 conv (with bias) + sigmoid; lane-dense (1, P) output per batch."""
    y = jnp.sum(x_ref[0] * w_ref[...], axis=0, keepdims=True) + b_ref[...]
    o_ref[0] = jax.nn.sigmoid(y).astype(o_ref.dtype)


# ---------------------------------------------------------------------------
# Wrappers (pallas_call plumbing)
# ---------------------------------------------------------------------------
def fused_decoder_block(x_low, skip, bp):
    """One decoder block: upsample(x_low) ++ skip -> 2 x (conv3x3+BN+SiLU).

    x_low : (N, Cx, h, w) NCHW input at the lower resolution (pre-upsample)
    skip  : (N, Cs, 2h, 2w)
    Returns the block output on the zero-padded grid: (N, Cout, (2h+2)*(2w+2)).
    """
    n, cx, h, w = x_low.shape
    _, cs, hh, ww = skip.shape
    assert hh == 2 * h and ww == 2 * w
    hp, wp = hh + 2, ww + 2
    p = hp * wp
    cout = bp["w2"].shape[0]

    # Nearest 2x upsample + 1px zero halo + spatial flatten: one XLA fusion.
    # The channel concat with `skip` is folded into the kernel's weight split.
    x_up = jnp.repeat(jnp.repeat(x_low, 2, axis=2), 2, axis=3)
    xpf = jnp.pad(x_up, ((0, 0), (0, 0), (1, 1), (1, 1))).reshape(n, cx, p)
    spf = jnp.pad(skip, ((0, 0), (0, 0), (1, 1), (1, 1))).reshape(n, cs, p)
    mask = jnp.zeros((hp, wp), jnp.float32).at[1:hh + 1, 1:ww + 1].set(1.0)
    mask = mask.reshape(1, p)

    kernel = functools.partial(_fused_block_kernel, wp=wp)
    return pl.pallas_call(
        kernel,
        out_shape=jax.ShapeDtypeStruct((n, cout, p), jnp.float32),
        grid=(n,),
        in_specs=[
            pl.BlockSpec((1, cx, p), lambda i: (i, 0, 0)),
            pl.BlockSpec((1, cs, p), lambda i: (i, 0, 0)),
            pl.BlockSpec((1, p), lambda i: (0, 0)),
            pl.BlockSpec(bp["w1"].shape, lambda i: (0, 0)),
            pl.BlockSpec(bp["s1"].shape, lambda i: (0, 0)),
            pl.BlockSpec(bp["b1"].shape, lambda i: (0, 0)),
            pl.BlockSpec(bp["w2"].shape, lambda i: (0, 0)),
            pl.BlockSpec(bp["s2"].shape, lambda i: (0, 0)),
            pl.BlockSpec(bp["b2"].shape, lambda i: (0, 0)),
        ],
        out_specs=pl.BlockSpec((1, cout, p), lambda i: (i, 0, 0)),
        compiler_params=pltpu.CompilerParams(
            dimension_semantics=("parallel",)),
    )(xpf, spf, mask, bp["w1"], bp["s1"], bp["b1"],
      bp["w2"], bp["s2"], bp["b2"])
    # TODO(synk): for large images add a spatial (row-tile + halo) grid axis
    # and an explicit vmem_limit_bytes; one full image per grid step only fits
    # VMEM at small resolutions.


def conv1x1_sigmoid(x_pg, wf, bf):
    """x_pg: (N, F, P) padded-grid activations; wf: (F, 1); bf: (1, 1)."""
    n, f, p = x_pg.shape
    return pl.pallas_call(
        _conv1x1_sigmoid_kernel,
        out_shape=jax.ShapeDtypeStruct((n, 1, p), jnp.float32),
        grid=(n,),
        in_specs=[
            pl.BlockSpec((1, f, p), lambda i: (i, 0, 0)),
            pl.BlockSpec((f, 1), lambda i: (0, 0)),
            pl.BlockSpec((1, 1), lambda i: (0, 0)),
        ],
        out_specs=pl.BlockSpec((1, 1, p), lambda i: (i, 0, 0)),
        compiler_params=pltpu.CompilerParams(
            dimension_semantics=("parallel",)),
    )(x_pg, wf, bf)


# ---------------------------------------------------------------------------
# Decoder forward (PyTorch semantics, NCHW at the boundary)
# ---------------------------------------------------------------------------
@jax.jit
def decoder_forward(x, skip_connections, block_params, final_params):
    n = x.shape[0]
    pg = None
    hh = ww = None
    for i, bp in enumerate(block_params):
        skip = skip_connections[-(i + 1)]
        if pg is not None:
            # Interior of previous block's padded-grid output -> next input.
            cprev = pg.shape[1]
            x = pg.reshape(n, cprev, hh + 2, ww + 2)[:, :, 1:hh + 1, 1:ww + 1]
        pg = fused_decoder_block(x, skip, bp)
        hh, ww = skip.shape[2], skip.shape[3]
    y_pg = conv1x1_sigmoid(pg, final_params["w"], final_params["b"])
    return y_pg.reshape(n, 1, hh + 2, ww + 2)[:, :, 1:hh + 1, 1:ww + 1]


# ---------------------------------------------------------------------------
# Parameter construction (synthetic, PyTorch layouts) and kernel-layout prep
# ---------------------------------------------------------------------------
def init_decoder_raw_params(key, in_channels, filters, layers):
    """Synthetic parameters in PyTorch layouts (Conv2d OIHW, BatchNorm2d)."""
    blocks = []
    for i in range(layers):
        cx = in_channels if i == 0 else filters * 2 ** (layers - i)
        cs = filters * 2 ** (layers - 1 - i)
        out_ch = filters * 2 ** (layers - 1 - i)
        convs = []
        for c_in, c_out in ((cx + cs, out_ch), (out_ch, out_ch)):
            key, kw, kg, kb, km, kv = jax.random.split(key, 6)
            convs.append(dict(
                w=jax.random.normal(kw, (c_out, c_in, 3, 3), jnp.float32)
                  / jnp.sqrt(9.0 * c_in),
                gamma=1.0 + 0.1 * jax.random.normal(kg, (c_out,), jnp.float32),
                beta=0.1 * jax.random.normal(kb, (c_out,), jnp.float32),
                mean=0.1 * jax.random.normal(km, (c_out,), jnp.float32),
                var=1.0 + 0.2 * jax.random.uniform(kv, (c_out,), jnp.float32),
            ))
        blocks.append(dict(cx=cx, convs=convs))
    key, kw, kb = jax.random.split(key, 3)
    final = dict(
        w=jax.random.normal(kw, (1, filters, 1, 1), jnp.float32)
          / jnp.sqrt(float(filters)),
        b=0.1 * jax.random.normal(kb, (1,), jnp.float32),
    )
    return blocks, final


def _fold_bn(p, eps=1e-5):
    scale = p["gamma"] / jnp.sqrt(p["var"] + eps)
    bias = p["beta"] - p["mean"] * scale
    return scale, bias


def _oihw_to_2d(w):
    """(Cout, Cin, 3, 3) OIHW -> (Cout, 9*Cin) with K ordered (ky, kx, cin)."""
    co, ci = w.shape[0], w.shape[1]
    return jnp.transpose(w, (0, 2, 3, 1)).reshape(co, 9 * ci)


def prepare_kernel_params(raw_blocks, raw_final):
    """Fold BN (inference) and reshape weights into lane-dense kernel layouts."""
    blocks = []
    for blk in raw_blocks:
        cx = blk["cx"]
        c1, c2 = blk["convs"]
        # Split conv1 along Cin into [upsampled-x | skip] so the kernel never
        # materializes the channel concat.
        w1 = jnp.concatenate(
            [_oihw_to_2d(c1["w"][:, :cx]), _oihw_to_2d(c1["w"][:, cx:])],
            axis=1)
        s1, b1 = _fold_bn(c1)
        s2, b2 = _fold_bn(c2)
        blocks.append(dict(
            w1=w1, s1=s1[:, None], b1=b1[:, None],
            w2=_oihw_to_2d(c2["w"]), s2=s2[:, None], b2=b2[:, None]))
    final = dict(w=raw_final["w"].reshape(-1, 1),      # (F, 1)
                 b=raw_final["b"].reshape(1, 1))       # (1, 1)
    return tuple(blocks), final


# ---------------------------------------------------------------------------
# Pure-XLA reference of the PyTorch forward (eval-mode BN) for validation
# ---------------------------------------------------------------------------
def reference_decoder(x, skip_connections, raw_blocks, raw_final, eps=1e-5):
    def conv_bn_silu(x, p):
        y = jax.lax.conv_general_dilated(
            x, p["w"], window_strides=(1, 1), padding=((1, 1), (1, 1)),
            dimension_numbers=("NCHW", "OIHW", "NCHW"),
            precision=jax.lax.Precision.HIGHEST)
        scale = (p["gamma"] / jnp.sqrt(p["var"] + eps))
        bias = p["beta"] - p["mean"] * scale
        y = y * scale[None, :, None, None] + bias[None, :, None, None]
        return y * jax.nn.sigmoid(y)

    for i, blk in enumerate(raw_blocks):
        x = jnp.repeat(jnp.repeat(x, 2, axis=2), 2, axis=3)
        x = jnp.concatenate([x, skip_connections[-(i + 1)]], axis=1)
        x = conv_bn_silu(x, blk["convs"][0])
        x = conv_bn_silu(x, blk["convs"][1])
    y = jax.lax.conv_general_dilated(
        x, raw_final["w"], window_strides=(1, 1), padding=((0, 0), (0, 0)),
        dimension_numbers=("NCHW", "OIHW", "NCHW"),
        precision=jax.lax.Precision.HIGHEST)
    y = y + raw_final["b"][None, :, None, None]
    return jax.nn.sigmoid(y)


# ---------------------------------------------------------------------------
if __name__ == "__main__":
    key = jax.random.PRNGKey(0)

    # Small, forward-consistent configuration (channel counts are multiples of
    # 8 so all sublane tiles in the fused kernel stay aligned).
    n = 2
    in_channels = 8
    filters = 8
    layers = 2
    h = w = 8                      # bottleneck spatial size; output is 32x32

    key, kx, ks1, ks0, kp = jax.random.split(key, 5)
    x = jax.random.normal(kx, (n, in_channels, h, w), jnp.float32)
    # skip_connections[-1] is consumed first: filters * 2^(layers-1) channels.
    skip_last = jax.random.normal(
        ks1, (n, filters * 2 ** (layers - 1), 2 * h, 2 * w), jnp.float32)
    skip_prev = jax.random.normal(
        ks0, (n, filters * 2 ** (layers - 2), 4 * h, 4 * w), jnp.float32)
    skips = [skip_prev, skip_last]

    raw_blocks, raw_final = init_decoder_raw_params(
        kp, in_channels, filters, layers)
    block_params, final_params = prepare_kernel_params(raw_blocks, raw_final)

    out = decoder_forward(x, skips, block_params, final_params)
    out = jax.block_until_ready(out)

    assert out.shape == (n, 1, 4 * h, 4 * w), out.shape
    assert bool(jnp.all(jnp.isfinite(out)))
    assert bool(jnp.all((out >= 0.0) & (out <= 1.0)))   # sigmoid output range

    # Numerical check against the pure-XLA reference of the PyTorch forward.
    ref = reference_decoder(x, skips, raw_blocks, raw_final)
    err = float(jnp.max(jnp.abs(out - ref)))
    assert err < 2e-3, f"max abs err vs reference: {err}"

    print("KERNEL_OK")
</pallas_src>

<mosaic_0001>
module attributes {stable_mosaic.version = 11 : i64} {
  func.func @_fused_block_kernel(%arg0: i32, %arg1: memref<1x8x324xf32, #tpu.memory_space<vmem>>, %arg2: memref<1x16x324xf32, #tpu.memory_space<vmem>>, %arg3: memref<1x324xf32, #tpu.memory_space<vmem>>, %arg4: memref<16x216xf32, #tpu.memory_space<vmem>>, %arg5: memref<16x1xf32, #tpu.memory_space<vmem>>, %arg6: memref<16x1xf32, #tpu.memory_space<vmem>>, %arg7: memref<16x144xf32, #tpu.memory_space<vmem>>, %arg8: memref<16x1xf32, #tpu.memory_space<vmem>>, %arg9: memref<16x1xf32, #tpu.memory_space<vmem>>, %arg10: memref<1x16x324xf32, #tpu.memory_space<vmem>>) attributes {dimension_semantics = [#tpu.dimension_semantics<parallel>], iteration_bounds = array<i64: 2>, scalar_prefetch = 0 : i64, scratch_operands = 0 : i64, tpu.core_type = #tpu.core_type<tc>, window_params = [{transform_indices = @transform_0, window_bounds = array<i64: 1, 8, 324>}, {transform_indices = @transform_1, window_bounds = array<i64: 1, 16, 324>}, {pipeline_mode = #tpu.pipeline_mode<synchronous>, transform_indices = @transform_2, window_bounds = array<i64: 1, 324>}, {pipeline_mode = #tpu.pipeline_mode<synchronous>, transform_indices = @transform_3, window_bounds = array<i64: 16, 216>}, {pipeline_mode = #tpu.pipeline_mode<synchronous>, transform_indices = @transform_4, window_bounds = array<i64: 16, 1>}, {pipeline_mode = #tpu.pipeline_mode<synchronous>, transform_indices = @transform_5, window_bounds = array<i64: 16, 1>}, {pipeline_mode = #tpu.pipeline_mode<synchronous>, transform_indices = @transform_6, window_bounds = array<i64: 16, 144>}, {pipeline_mode = #tpu.pipeline_mode<synchronous>, transform_indices = @transform_7, window_bounds = array<i64: 16, 1>}, {pipeline_mode = #tpu.pipeline_mode<synchronous>, transform_indices = @transform_8, window_bounds = array<i64: 16, 1>}, {transform_indices = @transform_9, window_bounds = array<i64: 1, 16, 324>}]} {
    %c0 = arith.constant 0 : index
    %c0_0 = arith.constant 0 : index
    %c0_1 = arith.constant 0 : index
    %0 = vector.load %arg1[%c0, %c0_0, %c0_1] : memref<1x8x324xf32, #tpu.memory_space<vmem>>, vector<1x8x324xf32>
    %1 = vector.shape_cast %0 : vector<1x8x324xf32> to vector<8x324xf32>
    %c0_2 = arith.constant 0 : index
    %c0_3 = arith.constant 0 : index
    %c0_4 = arith.constant 0 : index
    %2 = vector.load %arg2[%c0_2, %c0_3, %c0_4] : memref<1x16x324xf32, #tpu.memory_space<vmem>>, vector<1x16x324xf32>
    %3 = vector.shape_cast %2 : vector<1x16x324xf32> to vector<16x324xf32>
    %c0_5 = arith.constant 0 : index
    %c0_6 = arith.constant 0 : index
    %4 = vector.load %arg3[%c0_5, %c0_6] : memref<1x324xf32, #tpu.memory_space<vmem>>, vector<1x324xf32>
    %cst = arith.constant 0.000000e+00 : f32
    %5 = vector.broadcast %cst : f32 to vector<8x19xf32>
    %6 = tpu.concatenate %5, %1, %5 in 1 : vector<8x19xf32>, vector<8x324xf32>, vector<8x19xf32> -> vector<8x362xf32>
    %7 = vector.extract_strided_slice %6 {offsets = [0, 0], sizes = [8, 324], strides = [1, 1]} : vector<8x362xf32> to vector<8x324xf32>
    %8 = vector.extract_strided_slice %6 {offsets = [0, 1], sizes = [8, 324], strides = [1, 1]} : vector<8x362xf32> to vector<8x324xf32>
    %9 = vector.extract_strided_slice %6 {offsets = [0, 2], sizes = [8, 324], strides = [1, 1]} : vector<8x362xf32> to vector<8x324xf32>
    %10 = vector.extract_strided_slice %6 {offsets = [0, 18], sizes = [8, 324], strides = [1, 1]} : vector<8x362xf32> to vector<8x324xf32>
    %11 = vector.extract_strided_slice %6 {offsets = [0, 19], sizes = [8, 324], strides = [1, 1]} : vector<8x362xf32> to vector<8x324xf32>
    %12 = vector.extract_strided_slice %6 {offsets = [0, 20], sizes = [8, 324], strides = [1, 1]} : vector<8x362xf32> to vector<8x324xf32>
    %13 = vector.extract_strided_slice %6 {offsets = [0, 36], sizes = [8, 324], strides = [1, 1]} : vector<8x362xf32> to vector<8x324xf32>
    %14 = vector.extract_strided_slice %6 {offsets = [0, 37], sizes = [8, 324], strides = [1, 1]} : vector<8x362xf32> to vector<8x324xf32>
    %15 = vector.extract_strided_slice %6 {offsets = [0, 38], sizes = [8, 324], strides = [1, 1]} : vector<8x362xf32> to vector<8x324xf32>
    %cst_7 = arith.constant 0.000000e+00 : f32
    %16 = vector.broadcast %cst_7 : f32 to vector<16x19xf32>
    %17 = tpu.concatenate %16, %3, %16 in 1 : vector<16x19xf32>, vector<16x324xf32>, vector<16x19xf32> -> vector<16x362xf32>
    %18 = vector.extract_strided_slice %17 {offsets = [0, 0], sizes = [16, 324], strides = [1, 1]} : vector<16x362xf32> to vector<16x324xf32>
    %19 = vector.extract_strided_slice %17 {offsets = [0, 1], sizes = [16, 324], strides = [1, 1]} : vector<16x362xf32> to vector<16x324xf32>
    %20 = vector.extract_strided_slice %17 {offsets = [0, 2], sizes = [16, 324], strides = [1, 1]} : vector<16x362xf32> to vector<16x324xf32>
    %21 = vector.extract_strided_slice %17 {offsets = [0, 18], sizes = [16, 324], strides = [1, 1]} : vector<16x362xf32> to vector<16x324xf32>
    %22 = vector.extract_strided_slice %17 {offsets = [0, 19], sizes = [16, 324], strides = [1, 1]} : vector<16x362xf32> to vector<16x324xf32>
    %23 = vector.extract_strided_slice %17 {offsets = [0, 20], sizes = [16, 324], strides = [1, 1]} : vector<16x362xf32> to vector<16x324xf32>
    %24 = vector.extract_strided_slice %17 {offsets = [0, 36], sizes = [16, 324], strides = [1, 1]} : vector<16x362xf32> to vector<16x324xf32>
    %25 = vector.extract_strided_slice %17 {offsets = [0, 37], sizes = [16, 324], strides = [1, 1]} : vector<16x362xf32> to vector<16x324xf32>
    %26 = vector.extract_strided_slice %17 {offsets = [0, 38], sizes = [16, 324], strides = [1, 1]} : vector<16x362xf32> to vector<16x324xf32>
    %27 = tpu.concatenate %7, %8, %9, %10, %11, %12, %13, %14, %15, %18, %19, %20, %21, %22, %23, %24 in 0 : vector<8x324xf32>, vector<8x324xf32>, vector<8x324xf32>, vector<8x324xf32>, vector<8x324xf32>, vector<8x324xf32>, vector<8x324xf32>, vector<8x324xf32>, vector<8x324xf32>, vector<16x324xf32>, vector<16x324xf32>, vector<16x324xf32>, vector<16x324xf32>, vector<16x324xf32>, vector<16x324xf32>, vector<16x324xf32> -> vector<184x324xf32>
    %28 = tpu.concatenate %25, %26 in 0 : vector<16x324xf32>, vector<16x324xf32> -> vector<32x324xf32>
    %29 = tpu.concatenate %27, %28 in 0 : vector<184x324xf32>, vector<32x324xf32> -> vector<216x324xf32>
    %c0_8 = arith.constant 0 : index
    %c0_9 = arith.constant 0 : index
    %30 = vector.load %arg4[%c0_8, %c0_9] : memref<16x216xf32, #tpu.memory_space<vmem>>, vector<16x216xf32>
    %cst_10 = arith.constant dense<0.000000e+00> : vector<16x324xf32>
    %31 = tpu.matmul %30, %29, %cst_10 {dimension_numbers = #tpu.dot_dimension_numbers<[1], [0], [0], [1], [0, 0, 1, 1], [], []>} : vector<16x216xf32>, vector<216x324xf32>, vector<16x324xf32> -> vector<16x324xf32>
    %c0_11 = arith.constant 0 : index
    %c0_12 = arith.constant 0 : index
    %32 = vector.load %arg5[%c0_11, %c0_12] : memref<16x1xf32, #tpu.memory_space<vmem>>, vector<16x1xf32>
    %33 = vector.broadcast %32 : vector<16x1xf32> to vector<16x324xf32>
    %34 = arith.mulf %31, %33 : vector<16x324xf32>
    %c0_13 = arith.constant 0 : index
    %c0_14 = arith.constant 0 : index
    %35 = vector.load %arg6[%c0_13, %c0_14] : memref<16x1xf32, #tpu.memory_space<vmem>>, vector<16x1xf32>
    %36 = vector.broadcast %35 : vector<16x1xf32> to vector<16x324xf32>
    %37 = arith.addf %34, %36 : vector<16x324xf32>
    %38 = arith.negf %37 : vector<16x324xf32>
    %39 = math.exp %38 : vector<16x324xf32>
    %cst_15 = arith.constant 1.000000e+00 : f32
    %40 = vector.broadcast %cst_15 : f32 to vector<16x324xf32>
    %41 = arith.addf %40, %39 : vector<16x324xf32>
    %42 = arith.divf %40, %41 : vector<16x324xf32>
    %43 = arith.mulf %37, %42 : vector<16x324xf32>
    %44 = vector.broadcast %4 : vector<1x324xf32> to vector<16x324xf32>
    %45 = arith.mulf %43, %44 : vector<16x324xf32>
    %cst_16 = arith.constant 0.000000e+00 : f32
    %46 = vector.broadcast %cst_16 : f32 to vector<16x19xf32>
    %47 = tpu.concatenate %46, %45, %46 in 1 : vector<16x19xf32>, vector<16x324xf32>, vector<16x19xf32> -> vector<16x362xf32>
    %48 = vector.extract_strided_slice %47 {offsets = [0, 0], sizes = [16, 324], strides = [1, 1]} : vector<16x362xf32> to vector<16x324xf32>
    %49 = vector.extract_strided_slice %47 {offsets = [0, 1], sizes = [16, 324], strides = [1, 1]} : vector<16x362xf32> to vector<16x324xf32>
    %50 = vector.extract_strided_slice %47 {offsets = [0, 2], sizes = [16, 324], strides = [1, 1]} : vector<16x362xf32> to vector<16x324xf32>
    %51 = vector.extract_strided_slice %47 {offsets = [0, 18], sizes = [16, 324], strides = [1, 1]} : vector<16x362xf32> to vector<16x324xf32>
    %52 = vector.extract_strided_slice %47 {offsets = [0, 19], sizes = [16, 324], strides = [1, 1]} : vector<16x362xf32> to vector<16x324xf32>
    %53 = vector.extract_strided_slice %47 {offsets = [0, 20], sizes = [16, 324], strides = [1, 1]} : vector<16x362xf32> to vector<16x324xf32>
    %54 = vector.extract_strided_slice %47 {offsets = [0, 36], sizes = [16, 324], strides = [1, 1]} : vector<16x362xf32> to vector<16x324xf32>
    %55 = vector.extract_strided_slice %47 {offsets = [0, 37], sizes = [16, 324], strides = [1, 1]} : vector<16x362xf32> to vector<16x324xf32>
    %56 = vector.extract_strided_slice %47 {offsets = [0, 38], sizes = [16, 324], strides = [1, 1]} : vector<16x362xf32> to vector<16x324xf32>
    %57 = tpu.concatenate %48, %49, %50, %51, %52, %53, %54, %55, %56 in 0 : vector<16x324xf32>, vector<16x324xf32>, vector<16x324xf32>, vector<16x324xf32>, vector<16x324xf32>, vector<16x324xf32>, vector<16x324xf32>, vector<16x324xf32>, vector<16x324xf32> -> vector<144x324xf32>
    %c0_17 = arith.constant 0 : index
    %c0_18 = arith.constant 0 : index
    %58 = vector.load %arg7[%c0_17, %c0_18] : memref<16x144xf32, #tpu.memory_space<vmem>>, vector<16x144xf32>
    %cst_19 = arith.constant dense<0.000000e+00> : vector<16x324xf32>
    %59 = tpu.matmul %58, %57, %cst_19 {dimension_numbers = #tpu.dot_dimension_numbers<[1], [0], [0], [1], [0, 0, 1, 1], [], []>} : vector<16x144xf32>, vector<144x324xf32>, vector<16x324xf32> -> vector<16x324xf32>
    %c0_20 = arith.constant 0 : index
    %c0_21 = arith.constant 0 : index
    %60 = vector.load %arg8[%c0_20, %c0_21] : memref<16x1xf32, #tpu.memory_space<vmem>>, vector<16x1xf32>
    %61 = vector.broadcast %60 : vector<16x1xf32> to vector<16x324xf32>
    %62 = arith.mulf %59, %61 : vector<16x324xf32>
    %c0_22 = arith.constant 0 : index
    %c0_23 = arith.constant 0 : index
    %63 = vector.load %arg9[%c0_22, %c0_23] : memref<16x1xf32, #tpu.memory_space<vmem>>, vector<16x1xf32>
    %64 = vector.broadcast %63 : vector<16x1xf32> to vector<16x324xf32>
    %65 = arith.addf %62, %64 : vector<16x324xf32>
    %66 = arith.negf %65 : vector<16x324xf32>
    %67 = math.exp %66 : vector<16x324xf32>
    %cst_24 = arith.constant 1.000000e+00 : f32
    %68 = vector.broadcast %cst_24 : f32 to vector<16x324xf32>
    %69 = arith.addf %68, %67 : vector<16x324xf32>
    %70 = arith.divf %68, %69 : vector<16x324xf32>
    %71 = arith.mulf %65, %70 : vector<16x324xf32>
    %c0_25 = arith.constant 0 : index
    %c0_26 = arith.constant 0 : index
    %c0_27 = arith.constant 0 : index
    %72 = vector.load %arg10[%c0_25, %c0_26, %c0_27] : memref<1x16x324xf32, #tpu.memory_space<vmem>>, vector<1x16x324xf32>
    %73 = vector.shape_cast %72 : vector<1x16x324xf32> to vector<16x324xf32>
    %74 = vector.shape_cast %71 : vector<16x324xf32> to vector<1x16x324xf32>
    tpu.vector_store %arg10[%c0_25, %c0_26, %c0_27], %74 {strides = array<i32>} : memref<1x16x324xf32, #tpu.memory_space<vmem>>, vector<1x16x324xf32>,
    return
  }
  func.func @transform_0(%arg0: i32) -> (i32, i32, i32) {
    %c0_i32 = arith.constant 0 : i32
    %c0_i32_0 = arith.constant 0 : i32
    %c0_i32_1 = arith.constant 0 : i32
    return %arg0, %c0_i32, %c0_i32_0 : i32, i32, i32
  }
  func.func @transform_1(%arg0: i32) -> (i32, i32, i32) {
    %c0_i32 = arith.constant 0 : i32
    %c0_i32_0 = arith.constant 0 : i32
    %c0_i32_1 = arith.constant 0 : i32
    return %arg0, %c0_i32, %c0_i32_0 : i32, i32, i32
  }
  func.func @transform_2(%arg0: i32) -> (i32, i32) {
    %c0_i32 = arith.constant 0 : i32
    %c0_i32_0 = arith.constant 0 : i32
    %c0_i32_1 = arith.constant 0 : i32
    return %c0_i32, %c0_i32_0 : i32, i32
  }
  func.func @transform_3(%arg0: i32) -> (i32, i32) {
    %c0_i32 = arith.constant 0 : i32
    %c0_i32_0 = arith.constant 0 : i32
    %c0_i32_1 = arith.constant 0 : i32
    return %c0_i32, %c0_i32_0 : i32, i32
  }
  func.func @transform_4(%arg0: i32) -> (i32, i32) {
    %c0_i32 = arith.constant 0 : i32
    %c0_i32_0 = arith.constant 0 : i32
    %c0_i32_1 = arith.constant 0 : i32
    return %c0_i32, %c0_i32_0 : i32, i32
  }
  func.func @transform_5(%arg0: i32) -> (i32, i32) {
    %c0_i32 = arith.constant 0 : i32
    %c0_i32_0 = arith.constant 0 : i32
    %c0_i32_1 = arith.constant 0 : i32
    return %c0_i32, %c0_i32_0 : i32, i32
  }
  func.func @transform_6(%arg0: i32) -> (i32, i32) {
    %c0_i32 = arith.constant 0 : i32
    %c0_i32_0 = arith.constant 0 : i32
    %c0_i32_1 = arith.constant 0 : i32
    return %c0_i32, %c0_i32_0 : i32, i32
  }
  func.func @transform_7(%arg0: i32) -> (i32, i32) {
    %c0_i32 = arith.constant 0 : i32
    %c0_i32_0 = arith.constant 0 : i32
    %c0_i32_1 = arith.constant 0 : i32
    return %c0_i32, %c0_i32_0 : i32, i32
  }
  func.func @transform_8(%arg0: i32) -> (i32, i32) {
    %c0_i32 = arith.constant 0 : i32
    %c0_i32_0 = arith.constant 0 : i32
    %c0_i32_1 = arith.constant 0 : i32
    return %c0_i32, %c0_i32_0 : i32, i32
  }
  func.func @transform_9(%arg0: i32) -> (i32, i32, i32) {
    %c0_i32 = arith.constant 0 : i32
    %c0_i32_0 = arith.constant 0 : i32
    %c0_i32_1 = arith.constant 0 : i32
    return %arg0, %c0_i32, %c0_i32_0 : i32, i32, i32
  }
}

module attributes {stable_mosaic.version = 11 : i64} {
  func.func @_conv1x1_sigmoid_kernel(%arg0: i32, %arg1: memref<1x8x1156xf32, #tpu.memory_space<vmem>>, %arg2: memref<8x1xf32, #tpu.memory_space<vmem>>, %arg3: memref<1x1xf32, #tpu.memory_space<vmem>>, %arg4: memref<1x1x1156xf32, #tpu.memory_space<vmem>>) attributes {dimension_semantics = [#tpu.dimension_semantics<parallel>], iteration_bounds = array<i64: 2>, scalar_prefetch = 0 : i64, scratch_operands = 0 : i64, tpu.core_type = #tpu.core_type<tc>, window_params = [{transform_indices = @transform_0, window_bounds = array<i64: 1, 8, 1156>}, {pipeline_mode = #tpu.pipeline_mode<synchronous>, transform_indices = @transform_1, window_bounds = array<i64: 8, 1>}, {pipeline_mode = #tpu.pipeline_mode<synchronous>, transform_indices = @transform_2, window_bounds = array<i64: 1, 1>}, {transform_indices = @transform_3, window_bounds = array<i64: 1, 1, 1156>}]} {
    %c0 = arith.constant 0 : index
    %c0_0 = arith.constant 0 : index
    %c0_1 = arith.constant 0 : index
    %0 = vector.load %arg1[%c0, %c0_0, %c0_1] : memref<1x8x1156xf32, #tpu.memory_space<vmem>>, vector<1x8x1156xf32>
    %1 = vector.shape_cast %0 : vector<1x8x1156xf32> to vector<8x1156xf32>
    %c0_2 = arith.constant 0 : index
    %c0_3 = arith.constant 0 : index
    %2 = vector.load %arg2[%c0_2, %c0_3] : memref<8x1xf32, #tpu.memory_space<vmem>>, vector<8x1xf32>
    %3 = vector.broadcast %2 : vector<8x1xf32> to vector<8x1156xf32>
    %4 = arith.mulf %1, %3 : vector<8x1156xf32>
    %cst = arith.constant dense<0.000000e+00> : vector<1156xf32>
    %5 = vector.multi_reduction <add>, %4, %cst [0] : vector<8x1156xf32> to vector<1156xf32>
    %6 = vector.shape_cast %5 : vector<1156xf32> to vector<1x1156xf32>
    %c0_4 = arith.constant 0 : index
    %c0_5 = arith.constant 0 : index
    %7 = vector.load %arg3[%c0_4, %c0_5] : memref<1x1xf32, #tpu.memory_space<vmem>>, vector<1x1xf32>
    %8 = vector.broadcast %7 : vector<1x1xf32> to vector<1x1156xf32>
    %9 = arith.addf %6, %8 : vector<1x1156xf32>
    %10 = arith.negf %9 : vector<1x1156xf32>
    %11 = math.exp %10 : vector<1x1156xf32>
    %cst_6 = arith.constant 1.000000e+00 : f32
    %12 = vector.broadcast %cst_6 : f32 to vector<1x1156xf32>
    %13 = arith.addf %12, %11 : vector<1x1156xf32>
    %14 = arith.divf %12, %13 : vector<1x1156xf32>
    %c0_7 = arith.constant 0 : index
    %c0_8 = arith.constant 0 : index
    %c0_9 = arith.constant 0 : index
    %15 = vector.load %arg4[%c0_7, %c0_8, %c0_9] : memref<1x1x1156xf32, #tpu.memory_space<vmem>>, vector<1x1x1156xf32>
    %16 = vector.shape_cast %15 : vector<1x1x1156xf32> to vector<1x1156xf32>
    %17 = vector.shape_cast %14 : vector<1x1156xf32> to vector<1x1x1156xf32>
    tpu.vector_store %arg4[%c0_7, %c0_8, %c0_9], %17 {strides = array<i32>} : memref<1x1x1156xf32, #tpu.memory_space<vmem>>, vector<1x1x1156xf32>,
    return
  }
  func.func @transform_0(%arg0: i32) -> (i32, i32, i32) {
    %c0_i32 = arith.constant 0 : i32
    %c0_i32_0 = arith.constant 0 : i32
    %c0_i32_1 = arith.constant 0 : i32
    return %arg0, %c0_i32, %c0_i32_0 : i32, i32, i32
  }
  func.func @transform_1(%arg0: i32) -> (i32, i32) {
    %c0_i32 = arith.constant 0 : i32
    %c0_i32_0 = arith.constant 0 : i32
    %c0_i32_1 = arith.constant 0 : i32
    return %c0_i32, %c0_i32_0 : i32, i32
  }
  func.func @transform_2(%arg0: i32) -> (i32, i32) {
    %c0_i32 = arith.constant 0 : i32
    %c0_i32_0 = arith.constant 0 : i32
    %c0_i32_1 = arith.constant 0 : i32
    return %c0_i32, %c0_i32_0 : i32, i32
  }
  func.func @transform_3(%arg0: i32) -> (i32, i32, i32) {
    %c0_i32 = arith.constant 0 : i32
    %c0_i32_0 = arith.constant 0 : i32
    %c0_i32_1 = arith.constant 0 : i32
    return %arg0, %c0_i32, %c0_i32_0 : i32, i32, i32
  }
}

module attributes {stable_mosaic.version = 11 : i64} {
  func.func @_fused_block_kernel(%arg0: i32, %arg1: memref<1x16x1156xf32, #tpu.memory_space<vmem>>, %arg2: memref<1x8x1156xf32, #tpu.memory_space<vmem>>, %arg3: memref<1x1156xf32, #tpu.memory_space<vmem>>, %arg4: memref<8x216xf32, #tpu.memory_space<vmem>>, %arg5: memref<8x1xf32, #tpu.memory_space<vmem>>, %arg6: memref<8x1xf32, #tpu.memory_space<vmem>>, %arg7: memref<8x72xf32, #tpu.memory_space<vmem>>, %arg8: memref<8x1xf32, #tpu.memory_space<vmem>>, %arg9: memref<8x1xf32, #tpu.memory_space<vmem>>, %arg10: memref<1x8x1156xf32, #tpu.memory_space<vmem>>) attributes {dimension_semantics = [#tpu.dimension_semantics<parallel>], iteration_bounds = array<i64: 2>, scalar_prefetch = 0 : i64, scratch_operands = 0 : i64, tpu.core_type = #tpu.core_type<tc>, window_params = [{transform_indices = @transform_0, window_bounds = array<i64: 1, 16, 1156>}, {transform_indices = @transform_1, window_bounds = array<i64: 1, 8, 1156>}, {pipeline_mode = #tpu.pipeline_mode<synchronous>, transform_indices = @transform_2, window_bounds = array<i64: 1, 1156>}, {pipeline_mode = #tpu.pipeline_mode<synchronous>, transform_indices = @transform_3, window_bounds = array<i64: 8, 216>}, {pipeline_mode = #tpu.pipeline_mode<synchronous>, transform_indices = @transform_4, window_bounds = array<i64: 8, 1>}, {pipeline_mode = #tpu.pipeline_mode<synchronous>, transform_indices = @transform_5, window_bounds = array<i64: 8, 1>}, {pipeline_mode = #tpu.pipeline_mode<synchronous>, transform_indices = @transform_6, window_bounds = array<i64: 8, 72>}, {pipeline_mode = #tpu.pipeline_mode<synchronous>, transform_indices = @transform_7, window_bounds = array<i64: 8, 1>}, {pipeline_mode = #tpu.pipeline_mode<synchronous>, transform_indices = @transform_8, window_bounds = array<i64: 8, 1>}, {transform_indices = @transform_9, window_bounds = array<i64: 1, 8, 1156>}]} {
    %c0 = arith.constant 0 : index
    %c0_0 = arith.constant 0 : index
    %c0_1 = arith.constant 0 : index
    %0 = vector.load %arg1[%c0, %c0_0, %c0_1] : memref<1x16x1156xf32, #tpu.memory_space<vmem>>, vector<1x16x1156xf32>
    %1 = vector.shape_cast %0 : vector<1x16x1156xf32> to vector<16x1156xf32>
    %c0_2 = arith.constant 0 : index
    %c0_3 = arith.constant 0 : index
    %c0_4 = arith.constant 0 : index
    %2 = vector.load %arg2[%c0_2, %c0_3, %c0_4] : memref<1x8x1156xf32, #tpu.memory_space<vmem>>, vector<1x8x1156xf32>
    %3 = vector.shape_cast %2 : vector<1x8x1156xf32> to vector<8x1156xf32>
    %c0_5 = arith.constant 0 : index
    %c0_6 = arith.constant 0 : index
    %4 = vector.load %arg3[%c0_5, %c0_6] : memref<1x1156xf32, #tpu.memory_space<vmem>>, vector<1x1156xf32>
    %cst = arith.constant 0.000000e+00 : f32
    %5 = vector.broadcast %cst : f32 to vector<16x35xf32>
    %6 = tpu.concatenate %5, %1, %5 in 1 : vector<16x35xf32>, vector<16x1156xf32>, vector<16x35xf32> -> vector<16x1226xf32>
    %7 = vector.extract_strided_slice %6 {offsets = [0, 0], sizes = [16, 1156], strides = [1, 1]} : vector<16x1226xf32> to vector<16x1156xf32>
    %8 = vector.extract_strided_slice %6 {offsets = [0, 1], sizes = [16, 1156], strides = [1, 1]} : vector<16x1226xf32> to vector<16x1156xf32>
    %9 = vector.extract_strided_slice %6 {offsets = [0, 2], sizes = [16, 1156], strides = [1, 1]} : vector<16x1226xf32> to vector<16x1156xf32>
    %10 = vector.extract_strided_slice %6 {offsets = [0, 34], sizes = [16, 1156], strides = [1, 1]} : vector<16x1226xf32> to vector<16x1156xf32>
    %11 = vector.extract_strided_slice %6 {offsets = [0, 35], sizes = [16, 1156], strides = [1, 1]} : vector<16x1226xf32> to vector<16x1156xf32>
    %12 = vector.extract_strided_slice %6 {offsets = [0, 36], sizes = [16, 1156], strides = [1, 1]} : vector<16x1226xf32> to vector<16x1156xf32>
    %13 = vector.extract_strided_slice %6 {offsets = [0, 68], sizes = [16, 1156], strides = [1, 1]} : vector<16x1226xf32> to vector<16x1156xf32>
    %14 = vector.extract_strided_slice %6 {offsets = [0, 69], sizes = [16, 1156], strides = [1, 1]} : vector<16x1226xf32> to vector<16x1156xf32>
    %15 = vector.extract_strided_slice %6 {offsets = [0, 70], sizes = [16, 1156], strides = [1, 1]} : vector<16x1226xf32> to vector<16x1156xf32>
    %cst_7 = arith.constant 0.000000e+00 : f32
    %16 = vector.broadcast %cst_7 : f32 to vector<8x35xf32>
    %17 = tpu.concatenate %16, %3, %16 in 1 : vector<8x35xf32>, vector<8x1156xf32>, vector<8x35xf32> -> vector<8x1226xf32>
    %18 = vector.extract_strided_slice %17 {offsets = [0, 0], sizes = [8, 1156], strides = [1, 1]} : vector<8x1226xf32> to vector<8x1156xf32>
    %19 = vector.extract_strided_slice %17 {offsets = [0, 1], sizes = [8, 1156], strides = [1, 1]} : vector<8x1226xf32> to vector<8x1156xf32>
    %20 = vector.extract_strided_slice %17 {offsets = [0, 2], sizes = [8, 1156], strides = [1, 1]} : vector<8x1226xf32> to vector<8x1156xf32>
    %21 = vector.extract_strided_slice %17 {offsets = [0, 34], sizes = [8, 1156], strides = [1, 1]} : vector<8x1226xf32> to vector<8x1156xf32>
    %22 = vector.extract_strided_slice %17 {offsets = [0, 35], sizes = [8, 1156], strides = [1, 1]} : vector<8x1226xf32> to vector<8x1156xf32>
    %23 = vector.extract_strided_slice %17 {offsets = [0, 36], sizes = [8, 1156], strides = [1, 1]} : vector<8x1226xf32> to vector<8x1156xf32>
    %24 = vector.extract_strided_slice %17 {offsets = [0, 68], sizes = [8, 1156], strides = [1, 1]} : vector<8x1226xf32> to vector<8x1156xf32>
    %25 = vector.extract_strided_slice %17 {offsets = [0, 69], sizes = [8, 1156], strides = [1, 1]} : vector<8x1226xf32> to vector<8x1156xf32>
    %26 = vector.extract_strided_slice %17 {offsets = [0, 70], sizes = [8, 1156], strides = [1, 1]} : vector<8x1226xf32> to vector<8x1156xf32>
    %27 = tpu.concatenate %7, %8, %9, %10, %11, %12, %13, %14, %15, %18, %19, %20, %21, %22, %23, %24 in 0 : vector<16x1156xf32>, vector<16x1156xf32>, vector<16x1156xf32>, vector<16x1156xf32>, vector<16x1156xf32>, vector<16x1156xf32>, vector<16x1156xf32>, vector<16x1156xf32>, vector<16x1156xf32>, vector<8x1156xf32>, vector<8x1156xf32>, vector<8x1156xf32>, vector<8x1156xf32>, vector<8x1156xf32>, vector<8x1156xf32>, vector<8x1156xf32> -> vector<200x1156xf32>
    %28 = tpu.concatenate %25, %26 in 0 : vector<8x1156xf32>, vector<8x1156xf32> -> vector<16x1156xf32>
    %29 = tpu.concatenate %27, %28 in 0 : vector<200x1156xf32>, vector<16x1156xf32> -> vector<216x1156xf32>
    %c0_8 = arith.constant 0 : index
    %c0_9 = arith.constant 0 : index
    %30 = vector.load %arg4[%c0_8, %c0_9] : memref<8x216xf32, #tpu.memory_space<vmem>>, vector<8x216xf32>
    %cst_10 = arith.constant dense<0.000000e+00> : vector<8x1156xf32>
    %31 = tpu.matmul %30, %29, %cst_10 {dimension_numbers = #tpu.dot_dimension_numbers<[1], [0], [0], [1], [0, 0, 1, 1], [], []>} : vector<8x216xf32>, vector<216x1156xf32>, vector<8x1156xf32> -> vector<8x1156xf32>
    %c0_11 = arith.constant 0 : index
    %c0_12 = arith.constant 0 : index
    %32 = vector.load %arg5[%c0_11, %c0_12] : memref<8x1xf32, #tpu.memory_space<vmem>>, vector<8x1xf32>
    %33 = vector.broadcast %32 : vector<8x1xf32> to vector<8x1156xf32>
    %34 = arith.mulf %31, %33 : vector<8x1156xf32>
    %c0_13 = arith.constant 0 : index
    %c0_14 = arith.constant 0 : index
    %35 = vector.load %arg6[%c0_13, %c0_14] : memref<8x1xf32, #tpu.memory_space<vmem>>, vector<8x1xf32>
    %36 = vector.broadcast %35 : vector<8x1xf32> to vector<8x1156xf32>
    %37 = arith.addf %34, %36 : vector<8x1156xf32>
    %38 = arith.negf %37 : vector<8x1156xf32>
    %39 = math.exp %38 : vector<8x1156xf32>
    %cst_15 = arith.constant 1.000000e+00 : f32
    %40 = vector.broadcast %cst_15 : f32 to vector<8x1156xf32>
    %41 = arith.addf %40, %39 : vector<8x1156xf32>
    %42 = arith.divf %40, %41 : vector<8x1156xf32>
    %43 = arith.mulf %37, %42 : vector<8x1156xf32>
    %44 = vector.broadcast %4 : vector<1x1156xf32> to vector<8x1156xf32>
    %45 = arith.mulf %43, %44 : vector<8x1156xf32>
    %cst_16 = arith.constant 0.000000e+00 : f32
    %46 = vector.broadcast %cst_16 : f32 to vector<8x35xf32>
    %47 = tpu.concatenate %46, %45, %46 in 1 : vector<8x35xf32>, vector<8x1156xf32>, vector<8x35xf32> -> vector<8x1226xf32>
    %48 = vector.extract_strided_slice %47 {offsets = [0, 0], sizes = [8, 1156], strides = [1, 1]} : vector<8x1226xf32> to vector<8x1156xf32>
    %49 = vector.extract_strided_slice %47 {offsets = [0, 1], sizes = [8, 1156], strides = [1, 1]} : vector<8x1226xf32> to vector<8x1156xf32>
    %50 = vector.extract_strided_slice %47 {offsets = [0, 2], sizes = [8, 1156], strides = [1, 1]} : vector<8x1226xf32> to vector<8x1156xf32>
    %51 = vector.extract_strided_slice %47 {offsets = [0, 34], sizes = [8, 1156], strides = [1, 1]} : vector<8x1226xf32> to vector<8x1156xf32>
    %52 = vector.extract_strided_slice %47 {offsets = [0, 35], sizes = [8, 1156], strides = [1, 1]} : vector<8x1226xf32> to vector<8x1156xf32>
    %53 = vector.extract_strided_slice %47 {offsets = [0, 36], sizes = [8, 1156], strides = [1, 1]} : vector<8x1226xf32> to vector<8x1156xf32>
    %54 = vector.extract_strided_slice %47 {offsets = [0, 68], sizes = [8, 1156], strides = [1, 1]} : vector<8x1226xf32> to vector<8x1156xf32>
    %55 = vector.extract_strided_slice %47 {offsets = [0, 69], sizes = [8, 1156], strides = [1, 1]} : vector<8x1226xf32> to vector<8x1156xf32>
    %56 = vector.extract_strided_slice %47 {offsets = [0, 70], sizes = [8, 1156], strides = [1, 1]} : vector<8x1226xf32> to vector<8x1156xf32>
    %57 = tpu.concatenate %48, %49, %50, %51, %52, %53, %54, %55, %56 in 0 : vector<8x1156xf32>, vector<8x1156xf32>, vector<8x1156xf32>, vector<8x1156xf32>, vector<8x1156xf32>, vector<8x1156xf32>, vector<8x1156xf32>, vector<8x1156xf32>, vector<8x1156xf32> -> vector<72x1156xf32>
    %c0_17 = arith.constant 0 : index
    %c0_18 = arith.constant 0 : index
    %58 = vector.load %arg7[%c0_17, %c0_18] : memref<8x72xf32, #tpu.memory_space<vmem>>, vector<8x72xf32>
    %cst_19 = arith.constant dense<0.000000e+00> : vector<8x1156xf32>
    %59 = tpu.matmul %58, %57, %cst_19 {dimension_numbers = #tpu.dot_dimension_numbers<[1], [0], [0], [1], [0, 0, 1, 1], [], []>} : vector<8x72xf32>, vector<72x1156xf32>, vector<8x1156xf32> -> vector<8x1156xf32>
    %c0_20 = arith.constant 0 : index
    %c0_21 = arith.constant 0 : index
    %60 = vector.load %arg8[%c0_20, %c0_21] : memref<8x1xf32, #tpu.memory_space<vmem>>, vector<8x1xf32>
    %61 = vector.broadcast %60 : vector<8x1xf32> to vector<8x1156xf32>
    %62 = arith.mulf %59, %61 : vector<8x1156xf32>
    %c0_22 = arith.constant 0 : index
    %c0_23 = arith.constant 0 : index
    %63 = vector.load %arg9[%c0_22, %c0_23] : memref<8x1xf32, #tpu.memory_space<vmem>>, vector<8x1xf32>
    %64 = vector.broadcast %63 : vector<8x1xf32> to vector<8x1156xf32>
    %65 = arith.addf %62, %64 : vector<8x1156xf32>
    %66 = arith.negf %65 : vector<8x1156xf32>
    %67 = math.exp %66 : vector<8x1156xf32>
    %cst_24 = arith.constant 1.000000e+00 : f32
    %68 = vector.broadcast %cst_24 : f32 to vector<8x1156xf32>
    %69 = arith.addf %68, %67 : vector<8x1156xf32>
    %70 = arith.divf %68, %69 : vector<8x1156xf32>
    %71 = arith.mulf %65, %70 : vector<8x1156xf32>
    %c0_25 = arith.constant 0 : index
    %c0_26 = arith.constant 0 : index
    %c0_27 = arith.constant 0 : index
    %72 = vector.load %arg10[%c0_25, %c0_26, %c0_27] : memref<1x8x1156xf32, #tpu.memory_space<vmem>>, vector<1x8x1156xf32>
    %73 = vector.shape_cast %72 : vector<1x8x1156xf32> to vector<8x1156xf32>
    %74 = vector.shape_cast %71 : vector<8x1156xf32> to vector<1x8x1156xf32>
    tpu.vector_store %arg10[%c0_25, %c0_26, %c0_27], %74 {strides = array<i32>} : memref<1x8x1156xf32, #tpu.memory_space<vmem>>, vector<1x8x1156xf32>,
    return
  }
  func.func @transform_0(%arg0: i32) -> (i32, i32, i32) {
    %c0_i32 = arith.constant 0 : i32
    %c0_i32_0 = arith.constant 0 : i32
    %c0_i32_1 = arith.constant 0 : i32
    return %arg0, %c0_i32, %c0_i32_0 : i32, i32, i32
  }
  func.func @transform_1(%arg0: i32) -> (i32, i32, i32) {
    %c0_i32 = arith.constant 0 : i32
    %c0_i32_0 = arith.constant 0 : i32
    %c0_i32_1 = arith.constant 0 : i32
    return %arg0, %c0_i32, %c0_i32_0 : i32, i32, i32
  }
  func.func @transform_2(%arg0: i32) -> (i32, i32) {
    %c0_i32 = arith.constant 0 : i32
    %c0_i32_0 = arith.constant 0 : i32
    %c0_i32_1 = arith.constant 0 : i32
    return %c0_i32, %c0_i32_0 : i32, i32
  }
  func.func @transform_3(%arg0: i32) -> (i32, i32) {
    %c0_i32 = arith.constant 0 : i32
    %c0_i32_0 = arith.constant 0 : i32
    %c0_i32_1 = arith.constant 0 : i32
    return %c0_i32, %c0_i32_0 : i32, i32
  }
  func.func @transform_4(%arg0: i32) -> (i32, i32) {
    %c0_i32 = arith.constant 0 : i32
    %c0_i32_0 = arith.constant 0 : i32
    %c0_i32_1 = arith.constant 0 : i32
    return %c0_i32, %c0_i32_0 : i32, i32
  }
  func.func @transform_5(%arg0: i32) -> (i32, i32) {
    %c0_i32 = arith.constant 0 : i32
    %c0_i32_0 = arith.constant 0 : i32
    %c0_i32_1 = arith.constant 0 : i32
    return %c0_i32, %c0_i32_0 : i32, i32
  }
  func.func @transform_6(%arg0: i32) -> (i32, i32) {
    %c0_i32 = arith.constant 0 : i32
    %c0_i32_0 = arith.constant 0 : i32
    %c0_i32_1 = arith.constant 0 : i32
    return %c0_i32, %c0_i32_0 : i32, i32
  }
  func.func @transform_7(%arg0: i32) -> (i32, i32) {
    %c0_i32 = arith.constant 0 : i32
    %c0_i32_0 = arith.constant 0 : i32
    %c0_i32_1 = arith.constant 0 : i32
    return %c0_i32, %c0_i32_0 : i32, i32
  }
  func.func @transform_8(%arg0: i32) -> (i32, i32) {
    %c0_i32 = arith.constant 0 : i32
    %c0_i32_0 = arith.constant 0 : i32
    %c0_i32_1 = arith.constant 0 : i32
    return %c0_i32, %c0_i32_0 : i32, i32
  }
  func.func @transform_9(%arg0: i32) -> (i32, i32, i32) {
    %c0_i32 = arith.constant 0 : i32
    %c0_i32_0 = arith.constant 0 : i32
    %c0_i32_1 = arith.constant 0 : i32
    return %arg0, %c0_i32, %c0_i32_0 : i32, i32, i32
  }
}

</mosaic_0001>

<bundles_post_ra>
// kernel: decoder_forward.3
= control target key start
LH: loop header
LB: loop body
LE: loop exit
PB: predicated region body
PF: predicated region fallthrough
CT: control target
= control target key end

     0   :  { %s2068_s30 = smov 0   ;;  %s2941_s0 = inlined_call_operand.vmem [shape: f32[2,8,324], index: 0, kind: input, shape index: {}]   ;;  %s2942_s1 = inlined_call_operand.vmem [shape: f32[2,16,324], index: 1, kind: input, shape index: {}]   ;;  %s2943_s2 = inlined_call_operand.vmem [shape: f32[1,324], index: 2, kind: input, shape index: {}]   ;;  %s2944_s3 = inlined_call_operand.vmem [shape: f32[16,216], index: 3, kind: input, shape index: {}]   ;;  %s2945_s4 = inlined_call_operand.vmem [shape: f32[16,1], index: 4, kind: input, shape index: {}]   ;;  %s2946_s5 = inlined_call_operand.vmem [shape: f32[16,1], index: 5, kind: input, shape index: {}]   ;;  %s2947_s6 = inlined_call_operand.vmem [shape: f32[16,144], index: 6, kind: input, shape index: {}]   ;;  %s2948_s7 = inlined_call_operand.vmem [shape: f32[16,1], index: 7, kind: input, shape index: {}]   ;;  %s2949_s8 = inlined_call_operand.vmem [shape: f32[16,1], index: 8, kind: input, shape index: {}]   ;;  %s2950_s9 = inlined_call_operand.vmem [shape: f32[2,16,324], index: 9, kind: output, shape index: {}]  }
   0x1 LB: > { %s1600_s10 = sadd.s32 4294967295, %s2006_s30   ;;  %p1604_p0 = scmp.ge.s32.totalorder %s2006_s30, 1  ;;  %s2006_s30 = sphi %s2068_s30, %s19_s30  }
   0x2   : > { %p297_p1 = scmp.lt.s32.totalorder %s2006_s30, 3 }
   0x4   : > { %p298_p2 = pnand %p1604_p0, %p297_p1 }
   0x5   : > { %p338_p3 = scmp.lt.s32.totalorder (!%p298_p2), %s1600_s10, 1  ;;  %s2008_s15 = smov (!%p298_p2), 19  }
   0x6   : > { %301 = sbr.rel (%p298_p2) target bundleno = 1073 (0x431), region = 56  ;;  %s2009_s20 = smov (!%p298_p2), 126  }
   0x7   : > { %s2010_s21 = smov (!%p298_p2), 91   ;;  %s2011_s22 = smov (!%p298_p2), 127  }
   0x8   : > { %s2012_s23 = smov (!%p298_p2), 90   ;;  %s2013_s24 = smov (!%p298_p2), 110  }
   0x9   : > { %s2014_s25 = smov (!%p298_p2), 92   ;;  %s2015_s26 = smov (!%p298_p2), 108  }
   0xa   : > { %s2016_s27 = smov (!%p298_p2), 109  }
   0xb   : > { %s2972_s10 = smov (!%p338_p3, %s1600_s10), 1  ;;  %vm372_vm0 = vcmask 154624   ;;  %vm379_vm1 = vcmask 711680   ;;  %vm2956_vm2 = vcmask 1039360   ;;  %vm493_vm3 = vcmask 744448  }
   0xc   : > { %s1650_s11 = smul.u32 48, %s2972_s10  ;;  %vm445_vm4 = vcmask 900096   ;;  %vm433_vm5 = vcmask 1031168   ;;  %vm469_vm6 = vcmask 883712   ;;  %vm481_vm7 = vcmask 752640   ;;  %vm2303_vm8 = vmneg %vm372_vm0 }
   0xd   : > { %s1649_s16 = smul.u32 24, %s2972_s10  ;;  %vm2955_vm9 = vcmask 736256   ;;  %vm457_vm10 = vcmask 891904   ;;  %vm695_vm11 = vcmask 719872  }
   0xe   : > { %s347_s14 = scalar_lea.vmem %s2942_s1, %s1650_s11 }
   0xf   : > { %v360_v0 = vld [vmem:[%s347_s14 + $0x20] sm:$0xff]  ;;  %v359_v1 = vld [vmem:[%s347_s14 + $0x18] sm:$0xff]  ;;  %v358_v2 = vld [vmem:[%s347_s14 + $0x10] sm:$0xff]  ;;  %s342_s19 = scalar_lea.vmem %s2941_s0, %s1649_s16 }
  0x10   : > { %395 = vrot.lane.b32.xlu0 %v360_v0, %s2008_s15  ;;  %393 = vrot.lane.b32.xlu1 %v359_v1, %s2008_s15  ;;  %v361_v3 = vld [vmem:[%s347_s14 + $0x28] sm:$0xff]  ;;  %v356_v5 = vld [vmem:[%s347_s14] sm:$0xff] }
  0x11   : > { %391 = vrot.lane.b32.xlu2 %v358_v2, %s2008_s15  ;;  %v357_v4 = vld [vmem:[%s347_s14 + $0x8] sm:$0xff]  ;;  %v355_v6 = vld [vmem:[%s342_s19 + $0x10] sm:$0xff]  ;;  %v353_v8 = vld [vmem:[%s342_s19] sm:$0xff] }
  0x12   : > { %v354_v7 = vld [vmem:[%s342_s19 + $0x8] sm:$0xff] }
  0x18   : > { %397 = vrot.lane.b32.xlu0 %v361_v3, %s2008_s15  ;;  %389 = vrot.lane.b32.xlu1 %v357_v4, %s2008_s15 }
  0x19   : > { %387 = vrot.lane.b32.xlu2 %v356_v5, %s2008_s15 }
  0x20   : > { %370 = vrot.lane.b32.xlu1 %v355_v6, %s2008_s15  ;;  %368 = vrot.lane.b32.xlu0 %v354_v7, %s2008_s15 }
  0x21   : > { %366 = vrot.lane.b32.xlu2 %v353_v8, %s2008_s15 }
  0x6b   : > { %v392_v9 = vpop.permute.xlu2 %391 }
  0x73   : > { %v2097_v10 = vpop.permute.xlu2 %387 }
  0x74   : > { %v409_v11 = vsel %vm372_vm0, 0.0, %v2097_v10 }
  0x7b   : > { %v2116_v16 = vpop.permute.xlu2 %366 }
  0x7c   : > { %v2131_v22 = vsel %vm372_vm0, 0.0, %v2116_v16 }
  0x82   : > { %v396_v12 = vpop.permute.xlu0 %395  ;;  %v2101_v13 = vpop.permute.xlu1 %393 }
  0x83   : > { %v2105_v14 = vsel %vm372_vm0, 0.0, %v2101_v13  ;;  %v2120_v17 = vsel %vm372_vm0, %v2101_v13, %v396_v12 }
  0x84   : > { %v2108_v15 = vpack.i.bf16 %v409_v11, %v2105_v14  ;;  %v1674_v24 = vpack.i.bf16 %v2120_v17, %v409_v11 }
  0x86   : > { %1680 = vrot.lane.b32.xlu1 %v2108_v15, %s2009_s20  ;;  %1685 = vrot.lane.b32.xlu0 %v2108_v15, %s2010_s21 }
  0x87   : > { %1670 = vrot.lane.b32.xlu2 %v2108_v15, %s2011_s22 }
  0x8a   : > { %v398_v18 = vpop.permute.xlu0 %397  ;;  %v390_v19 = vpop.permute.xlu1 %389 }
  0x8b   : > { %v2124_v20 = vsel %vm372_vm0, %v2097_v10, %v390_v19  ;;  %v2127_v21 = vsel %vm372_vm0, %v390_v19, %v392_v9  ;;  %v2138_v26 = vsel %vm372_vm0, %v396_v12, %v398_v18 }
  0x8c   : > { %v411_v23 = vsel %vm379_vm1, %v2127_v21, 0.0  ;;  %v2146_v27 = vsel %vm379_vm1, %v2138_v26, 0.0 }
  0x8d   : > { %v1704_v25 = vpack.i.bf16 %v411_v23, %v2124_v20  ;;  %v1699_v33 = vpack.i.bf16 %v2146_v27, %v2120_v17 }
  0x8e   : > { %499 = vrot.lane.b32.xlu0 %v2131_v22, %s2012_s23 }
  0x8f   : > { %1675 = vrot.lane.b32.xlu2 %v1674_v24, %s2013_s24  ;;  %1705 = vrot.lane.b32.xlu1 %v1704_v25, %s2011_s22 }
  0x92   : > { %v371_v28 = vpop.permute.xlu1 %370  ;;  %v369_v29 = vpop.permute.xlu0 %368 }
  0x93   : > { %v2150_v30 = vsel %vm372_vm0, %v2116_v16, %v369_v29  ;;  %v2153_v31 = vsel %vm372_vm0, %v369_v29, %v371_v28 }
  0x94   : > { %v2157_v32 = vsel %vm379_vm1, %v2153_v31, 0.0  ;;  %v1689_v34 = vpack.i.bf16 %v2150_v30, %v2105_v14  ;;  %v1804_v28 = vpack.i.bf16 %v2150_v30, %v2146_v27 }
  0x95   : > { %v1809_v35 = vpack.i.bf16 %v2105_v14, %v2157_v32  ;;  %v2174_v36 = vpack.i.bf16 %v2157_v32, %v2150_v30  ;;  %v1764_v37 = vpack.i.bf16 %v409_v11, %v2157_v32 }
  0x96   : > { %1700 = vrot.lane.b32.xlu0 %v1699_v33, %s2011_s22 }
  0x97   : > { %1690 = vrot.lane.b32.xlu2 %v1689_v34, %s2014_s25  ;;  %1715 = vrot.lane.b32.xlu1 %v1699_v33, %s2009_s20 }
  0x9e   : > { %1710 = vrot.lane.b32.xlu0 %v1704_v25, %s2013_s24 }
  0x9f   : > { %1695 = vrot.lane.b32.xlu2 %v2108_v15, %s2015_s26  ;;  %1735 = vrot.lane.b32.xlu1 %v1699_v33, %s2014_s25 }
  0xa6   : > { %1720 = vrot.lane.b32.xlu0 %v1704_v25, %s2009_s20 }
  0xa7   : > { %1730 = vrot.lane.b32.xlu2 %v1704_v25, %s2010_s21  ;;  %1745 = vrot.lane.b32.xlu1 %v2174_v36, %s2012_s23 }
  0xae   : > { %1725 = vrot.lane.b32.xlu0 %v1699_v33, %s2010_s21 }
  0xaf   : > { %1740 = vrot.lane.b32.xlu2 %v1704_v25, %s2014_s25  ;;  %1760 = vrot.lane.b32.xlu1 %v1704_v25, %s2015_s26 }
  0xb6   : > { %1755 = vrot.lane.b32.xlu0 %v2174_v36, %s2010_s21 }
  0xb7   : > { %1750 = vrot.lane.b32.xlu2 %v1699_v33, %s2015_s26  ;;  %1770 = vrot.lane.b32.xlu1 %v1699_v33, %s2016_s27 }
  0xbe   : > { %1765 = vrot.lane.b32.xlu0 %v1764_v37, %s2014_s25 }
  0xbf   : > { %1775 = vrot.lane.b32.xlu2 %v2174_v36, %s2015_s26  ;;  %1780 = vrot.lane.b32.xlu1 %v1704_v25, %s2016_s27 }
  0xc6   : > { %1785 = vrot.lane.b32.xlu0 %v2174_v36, %s2016_s27 }
  0xe1   : > { %v1671_v38 = vpop.permute.xlu2 %1670 }
  0xe2   : > { %v1673_v55 = vunpack.i.h.bf16 %v1671_v38  ;;  %v1672_v56 = vunpack.i.l.bf16 %v1671_v38 }
  0xe9   : > { %v2194_v39 = vpop.permute.xlu2 %1675 }
  0xea   : > { %v1677_v2 = vunpack.i.l.bf16 %v2194_v39 }
  0xf1   : > { %v2196_v40 = vpop.permute.xlu2 %1690 }
  0xf2   : > { %v1692_v11 = vunpack.i.l.bf16 %v2196_v40 }
  0xf8   : > { %v2198_v41 = vpop.permute.xlu1 %1680  ;;  %v2200_v42 = vpop.permute.xlu0 %1685 }
  0xf9   : > { %v2202_v43 = vpop.permute.xlu2 %1695  ;;  %v1688_v47 = vunpack.i.h.bf16 %v2200_v42  ;;  %v1682_v25 = vunpack.i.l.bf16 %v2198_v41  ;;  %v1683_v38 = vunpack.i.h.bf16 %v2198_v41  ;;  %v1687_v41 = vunpack.i.l.bf16 %v2200_v42 }
  0xfa   : > { %v1697_v19 = vunpack.i.l.bf16 %v2202_v43 }
 0x100   : > { %v2204_v44 = vpop.permute.xlu0 %499 }
 0x101   : > { %v2206_v45 = vpop.permute.xlu2 %1730  ;;  %v1706_v46 = vpop.permute.xlu1 %1705 }
 0x102   : > { %v1732_v48 = vunpack.i.l.bf16 %v2206_v45  ;;  %v2210_v49 = vunpack.i.h.bf16 %v1706_v46  ;;  %v1707_v50 = vunpack.i.l.bf16 %v1706_v46 }
 0x104   : > { %v2214_v51 = vsel %vm2956_vm2, %v1707_v50, %v2210_v49  ;;  %v2219_v52 = vsel %vm493_vm3, %v1688_v47, %v1732_v48  ;;  %v527_v62 = vsel %vm2956_vm2, %v1673_v55, %v1707_v50 }
 0x105   : > { %v1799_v53 = vpack.i.bf16 %v2210_v49, %v2214_v51 }
 0x107   : > { %1800 = vrot.lane.b32.xlu1 %v1799_v53, %s2010_s21 }
 0x108   : > { %v1701_v54 = vpop.permute.xlu0 %1700 }
 0x109   : > { %v2224_v57 = vunpack.i.h.bf16 %v1701_v54  ;;  %v1702_v58 = vunpack.i.l.bf16 %v1701_v54  ;;  %v2226_v59 = vpop.permute.xlu2 %1740  ;;  %v2228_v60 = vpop.permute.xlu1 %1715 }
 0x10a   : > { %v1718_v4 = vunpack.i.h.bf16 %v2228_v60  ;;  %v1717_v5 = vunpack.i.l.bf16 %v2228_v60  ;;  %v693_v60 = vld [vmem:[%s2944_s3 + $0x10] sm:$0xff] }
 0x10b   : > { %v530_v61 = vsel %vm2956_vm2, %v1702_v58, %v2224_v57  ;;  %v529_v63 = vsel %vm2956_vm2, %v1672_v56, %v1702_v58  ;;  %v1742_v58 = vunpack.i.l.bf16 %v2226_v59 }
 0x10c   : > { %v1794_v0 = vpack.i.bf16 %v2224_v57, %v530_v61  ;;  %v1789_v1 = vpack.i.bf16 %v527_v62, %v529_v63  ;;  %v552_v33 = vsel %vm433_vm5, %v1717_v5, %v1718_v4  ;;  %v551_v37 = vsel %vm433_vm5, %v1682_v25, %v1717_v5 }
 0x10e   : > { %1795 = vrot.lane.b32.xlu2 %v1794_v0, %s2010_s21  ;;  %1790 = vrot.lane.b32.xlu0 %v1789_v1, %s2010_s21 }
 0x10f   : > { %487 = vrot.lane.b32.xlu1 %v2131_v22, %s2010_s21 }
 0x110   : > { %v2240_v3 = vpop.permute.xlu0 %1710 }
 0x111   : > { %v1713_v6 = vunpack.i.h.bf16 %v2240_v3  ;;  %v1712_v7 = vunpack.i.l.bf16 %v2240_v3  ;;  %v2246_v8 = vpop.permute.xlu2 %1750  ;;  %v2248_v9 = vpop.permute.xlu1 %1735 }
 0x112   : > { %v1752_v12 = vunpack.i.l.bf16 %v2246_v8  ;;  %v1737_v18 = vunpack.i.l.bf16 %v2248_v9 }
 0x113   : > { %v571_v23 = vsel %vm445_vm4, %v1677_v2, %v1712_v7  ;;  %v572_v24 = vsel %vm445_vm4, %v1712_v7, %v1713_v6 }
 0x114   : > { %702 = vmatpush.msra.mxu0 %v571_v23  ;;  %748 = vmatpush.msra.mxu2 %v572_v24  ;;  %v2264_v29 = vsel %vm481_vm7, %v1692_v11, %v1737_v18  ;;  %v2272_v34 = vsel %vm469_vm6, %v1697_v19, %v1752_v12 }
 0x116   : > { %749 = vmatpush.msra.mxu2 %v552_v33  ;;  %1805 = vrot.lane.b32.xlu2 %v1804_v28, %s2013_s24 }
 0x117   : > { %703 = vmatpush.msra.mxu0 %v551_v37  ;;  %1810 = vrot.lane.b32.xlu0 %v1809_v35, %s2013_s24 }
 0x118   : > { %475 = vrot.lane.b32.xlu1 %v2131_v22, %s2014_s25  ;;  %v2282_v27 = vpop.permute.xlu0 %1720 }
 0x119   : > { %v1723_v46 = vunpack.i.h.bf16 %v2282_v27  ;;  %v1722_v47 = vunpack.i.l.bf16 %v2282_v27  ;;  %v2291_v14 = vpop.permute.xlu1 %1745  ;;  %v2340_v56 = vpop.permute.xlu2 %1775 }
 0x11a   : > { %v1747_v54 = vunpack.i.l.bf16 %v2291_v14 }
 0x11b   : > { %v549_v50 = vsel %vm433_vm5, %v1683_v38, %v1722_v47  ;;  %v550_v53 = vsel %vm433_vm5, %v1722_v47, %v1723_v46 }
 0x11c   : > { %704 = vmatpush.msra.mxu0 %v549_v50  ;;  %750 = vmatpush.msra.mxu2 %v550_v53 }
 0x11e   : > { %751 = vmatpush.msra.mxu2 %v530_v61  ;;  %1815 = vrot.lane.b32.xlu2 %v2108_v15, %s2016_s27  ;;  %v1748_v15 = vunpack.i.h.bf16 %v2291_v14 }
 0x11f   : > { %1820 = vrot.lane.b32.xlu0 %v2174_v36, %s2009_s20  ;;  %705 = vmatpush.msra.mxu0 %v529_v63  ;;  %v1777_v63 = vunpack.i.l.bf16 %v2340_v56 }
 0x120   : > { %463 = vrot.lane.b32.xlu1 %v2131_v22, %s2015_s26  ;;  %v2299_v32 = vpop.permute.xlu0 %1725  ;;  %752 = vmatpush.msra.mxu2 %v2214_v51  ;;  %v507_v42 = vsel %vm2955_vm9, %v1747_v54, %v1748_v15 }
 0x121   : > { %v1727_v55 = vunpack.i.l.bf16 %v2299_v32  ;;  %706 = vmatpush.msra.mxu0 %v527_v62  ;;  %v2952_v62 = vunpack.i.h.bf16 %v2340_v56  ;;  %v2376_v24 = vpop.permute.xlu1 %1760  ;;  %v1728_v53 = vunpack.i.h.bf16 %v2299_v32  ;;  %v691_v32 = vld [vmem:[%s2944_s3] sm:$0xff] }
 0x122   : > { %753 = vmatpush.msra.mxu2 %v2120_v17 }
 0x123   : > { %1609 = vmatpush.msk.msra.mxu0 %vm2303_vm8, %v2101_v13  ;;  %v2316_v51 = vsel %vm493_vm3, %v1687_v41, %v1727_v55  ;;  %v506_v13 = vsel %vm2955_vm9, %v2204_v44, %v1747_v54  ;;  %v1693_v44 = vunpack.i.h.bf16 %v2196_v40  ;;  %v471_v5 = vsel %vm469_vm6, %v1777_v63, %v2952_v62 }
 0x124   : > { %754 = vmatpush.msra.mxu2 %v2124_v20 }
 0x125   : > { %1611 = vmatpush.msk.msra.mxu0 %vm2303_vm8, %v2097_v10 }
 0x126   : > { %755 = vmatpush.msra.mxu2 %v507_v42  ;;  %1825 = vrot.lane.b32.xlu2 %v2174_v36, %s2011_s22 }
 0x127   : > { %451 = vrot.lane.b32.xlu0 %v2131_v22, %s2016_s27  ;;  %709 = vmatpush.msra.mxu0 %v506_v13  ;;  %v1733_v13 = vunpack.i.h.bf16 %v2206_v45 }
 0x128   : > { %439 = vrot.lane.b32.xlu1 %v2131_v22, %s2013_s24  ;;  %v2333_v17 = vpop.permute.xlu0 %1755 }
 0x129   : > { %v2954_v10 = vunpack.i.h.bf16 %v2333_v17  ;;  %v1757_v20 = vunpack.i.l.bf16 %v2333_v17  ;;  %v2378_v25 = vpop.permute.xlu1 %1770 }
 0x12b   : > { %v495_v36 = vsel %vm493_vm3, %v1757_v20, %v2954_v10 }
 0x12c   : > { %756 = vmatpush.msra.mxu2 %v495_v36 }
 0x12e   : > { %427 = vrot.lane.b32.xlu2 %v2131_v22, %s2009_s20 }
 0x12f   : > { %415 = vrot.lane.b32.xlu0 %v2131_v22, %s2011_s22 }
 0x130   : > { %v2348_v61 = vpop.permute.xlu0 %1765 }
 0x131   : > { %v1768_v0 = vunpack.i.h.bf16 %v2348_v61  ;;  %v2953_v1 = vunpack.i.l.bf16 %v2348_v61  ;;  %v2387_v47 = vpop.permute.xlu1 %1780 }
 0x133   : > { %v483_v22 = vsel %vm481_vm7, %v1693_v44, %v2953_v1  ;;  %v2360_v2 = vsel %vm481_vm7, %v1768_v0, %v1742_v58  ;;  %v1738_v0 = vunpack.i.h.bf16 %v2248_v9 }
 0x134   : > { %757 = vmatpush.msra.mxu2 %v483_v22  ;;  %v674_v22 = vsel %vm493_vm3, %v1727_v55, %v1728_v53 }
 0x135   : > { %v640_v55 = vsel %vm481_vm7, %v1737_v18, %v1738_v0 }
 0x136   : > { %758 = vmatpush.msra.mxu2 %v471_v5  ;;  %v1743_v5 = vunpack.i.h.bf16 %v2226_v59 }
 0x138   : > { %v2367_v7 = vpop.permute.xlu0 %1785 }
 0x139   : > { %v2951_v11 = vunpack.i.h.bf16 %v2367_v7  ;;  %v1787_v19 = vunpack.i.l.bf16 %v2367_v7 }
 0x13b   : > { %v459_v23 = vsel %vm457_vm10, %v1787_v19, %v2951_v11 }
 0x13c   : > { %759 = vmatpush.msra.mxu2 %v459_v23 }
 0x168   : > { %v2380_v28 = vpop.permute.xlu2 %1795 }
 0x169   : > { %v1798_v33 = vunpack.i.h.bf16 %v2380_v28  ;;  %v1797_v37 = vunpack.i.l.bf16 %v2380_v28 }
 0x16b   : > { %v678_v38 = vsel %vm493_vm3, %v1797_v37, %v1798_v33 }
 0x16c   : > { %776 = vmatpush.msra.mxu3 %v678_v38  ;;  %v672_v38 = vsel %vm493_vm3, %v1732_v48, %v1733_v13  ;;  %v841_v48 = vld [vmem:[%s2945_s4 + $0x8] sm:$0xff] }
 0x170   : > { %v2394_v42 = vpop.permute.xlu2 %1805 }
 0x178   : > { %v2426_v18 = vpop.permute.xlu2 %1815 }
 0x179   : > { %v2389_v50 = vpop.permute.xlu1 %1800 }
 0x17a   : > { %v1803_v41 = vunpack.i.h.bf16 %v2389_v50  ;;  %v1802_v54 = vunpack.i.l.bf16 %v2389_v50 }
 0x17c   : > { %v676_v36 = vsel %vm493_vm3, %v1802_v54, %v1803_v41 }
 0x17d   : > { %777 = vmatpush.msra.mxu3 %v676_v36  ;;  %v1753_v36 = vunpack.i.h.bf16 %v2246_v8 }
 0x17f   : > { %778 = vmatpush.msra.mxu3 %v674_v22 }
 0x180   : > { %v1791_v23 = vpop.permute.xlu0 %1790 }
 0x181   : > { %v1793_v11 = vunpack.i.h.bf16 %v1791_v23  ;;  %v1792_v62 = vunpack.i.l.bf16 %v1791_v23  ;;  %v488_v1 = vpop.permute.xlu1 %487  ;;  %779 = vmatpush.msra.mxu3 %v672_v38  ;;  %v1763_v23 = vunpack.i.h.bf16 %v2376_v24  ;;  %v1762_v38 = vunpack.i.l.bf16 %v2376_v24 }
 0x182   : > { %v494_v10 = vsel %vm493_vm3, %v488_v1, %v1757_v20  ;;  %v638_v20 = vsel %vm481_vm7, %v1742_v58, %v1743_v5  ;;  %v2017_v1 = vmov 0   ;;  %v1783_v58 = vunpack.i.h.bf16 %v2387_v47 }
 0x183   : > { %710 = vmatpush.msra.mxu0 %v494_v10  ;;  %780 = vmatpush.msra.mxu3 %v640_v55  ;;  %v677_v22 = vsel %vm493_vm3, %v1792_v62, %v1797_v37  ;;  %v675_v10 = vsel %vm493_vm3, %v1793_v11, %v1802_v54  ;;  %v1773_v62 = vunpack.i.h.bf16 %v2378_v25  ;;  %v1772_v37 = vunpack.i.l.bf16 %v2378_v25 }
 0x184   : > { %730 = vmatpush.msra.mxu1 %v677_v22  ;;  %1829 = vset.pattern.permute.xlu1 %v2017_v1  ;;  %v618_v55 = vsel %vm469_vm6, %v1752_v12, %v1753_v36  ;;  %v1782_v22 = vunpack.i.l.bf16 %v2387_v47  ;;  %v616_v11 = vsel %vm469_vm6, %v1762_v38, %v1763_v23  ;;  %v1807_v12 = vunpack.i.l.bf16 %v2394_v42 }
 0x185   : > { %781 = vmatpush.msra.mxu3 %v638_v20  ;;  %849 = vperm.xlu1 %1829, %v841_v48   ;;  %v1808_v48 = vunpack.i.h.bf16 %v2394_v42 }
 0x186   : > { %731 = vmatpush.msra.mxu1 %v675_v10  ;;  %1831 = vset.pattern.permute.xlu0 %v2017_v1  ;;  %v594_v40 = vsel %vm457_vm10, %v1782_v22, %v1783_v58 }
 0x187   : > { %782 = vmatpush.msra.mxu3 %v618_v55  ;;  %1830 = vset.pattern.permute.xlu2 %v2017_v1  ;;  %v858_v55 = vld [vmem:[%s2946_s5] sm:$0xff] }
 0x188   : > { %732 = vmatpush.msra.mxu1 %v2316_v51  ;;  %v596_v51 = vsel %vm457_vm10, %v1772_v37, %v1773_v62 }
 0x189   : > { %v2442_v54 = vpop.permute.xlu0 %1810  ;;  %783 = vmatpush.msra.mxu3 %v616_v11  ;;  %v1678_v11 = vunpack.i.h.bf16 %v2194_v39 }
 0x18a   : > { %v1812_v20 = vunpack.i.l.bf16 %v2442_v54  ;;  %v476_v1 = vpop.permute.xlu1 %475  ;;  %733 = vmatpush.msra.mxu1 %v2219_v52 }
 0x18b   : > { %v482_v10 = vsel %vm481_vm7, %v476_v1, %v1693_v44  ;;  %784 = vmatpush.msra.mxu3 %v596_v51  ;;  %v574_v39 = vsel %vm445_vm4, %v1678_v11, %v1807_v12  ;;  %v1698_v44 = vunpack.i.h.bf16 %v2202_v43  ;;  %v1817_v1 = vunpack.i.l.bf16 %v2426_v18  ;;  %v2478_v51 = vpop.permute.xlu2 %1825 }
 0x18c   : > { %711 = vmatpush.msra.mxu0 %v482_v10  ;;  %734 = vmatpush.msra.mxu1 %v2264_v29  ;;  %v447_v52 = vsel %vm445_vm4, %v1808_v48, %v1812_v20  ;;  %v2474_v29 = vld [vmem:[%s2944_s3 + $0x8] sm:$0xff]  ;;  %v1828_v43 = vunpack.i.h.bf16 %v2478_v51 }
 0x18d   : > { %760 = vmatpush.msra.mxu2 %v447_v52  ;;  %785 = vmatpush.msra.mxu3 %v594_v40  ;;  %v615_v52 = vsel %vm469_vm6, %v1698_v44, %v1762_v38 }
 0x18e   : > { %735 = vmatpush.msra.mxu1 %v2360_v2  ;;  %862 = vperm.xlu1 %1829, %v858_v55   ;;  %v1818_v2 = vunpack.i.h.bf16 %v2426_v18  ;;  %v1827_v55 = vunpack.i.l.bf16 %v2478_v51  ;;  %v595_v18 = vsel %vm457_vm10, %v1817_v1, %v1772_v37 }
 0x18f   : > { %786 = vmatpush.msra.mxu3 %v574_v39 }
 0x190   : > { %736 = vmatpush.msra.mxu1 %v2272_v34  ;;  %1616 = vmatmul.msk.f32.vlgmr.msra.gmra.mxu3 %vm695_vm11, %v2474_v29  ;;  %v1813_v34 = vunpack.i.h.bf16 %v2442_v54  ;;  %v593_v50 = vsel %vm457_vm10, %v1818_v2, %v1782_v22  ;;  %v694_v22 = vld [vmem:[%s2944_s3 + $0x18] sm:$0xff] }
 0x191   : > { %822 = vmatpush.msrb.mxu3 %v1798_v33  ;;  %v2484_v10 = vpop.permute.xlu0 %1820 }
 0x192   : > { %v1823_v40 = vunpack.i.h.bf16 %v2484_v10  ;;  %v1822_v28 = vunpack.i.l.bf16 %v2484_v10  ;;  %v464_v33 = vpop.permute.xlu1 %463  ;;  %737 = vmatpush.msra.mxu1 %v615_v52  ;;  %v573_v37 = vsel %vm445_vm4, %v1813_v34, %v1678_v11 }
 0x193   : > { %823 = vmatpush.msrb.mxu3 %v1803_v41  ;;  %v470_v38 = vsel %vm469_vm6, %v464_v33, %v1777_v63  ;;  %v423_v41 = vsel %vm2956_vm2, %v1827_v55, %v1828_v43  ;;  %v859_v63 = vld [vmem:[%s2946_s5 + $0x8] sm:$0xff]  ;;  %v428_v9 = vpop.permute.xlu2 %427 }
 0x194   : > { %712 = vmatpush.msra.mxu0 %v470_v38  ;;  %738 = vmatpush.msra.mxu1 %v595_v18  ;;  %v435_v39 = vsel %vm433_vm5, %v1822_v28, %v1823_v40  ;;  %v434_v59 = vsel %vm433_vm5, %v428_v9, %v1822_v28 }
 0x195   : > { %761 = vmatpush.msra.mxu2 %v435_v39  ;;  %824 = vmatpush.msrb.mxu3 %v1728_v53 }
 0x196   : > { %739 = vmatpush.msra.mxu1 %v593_v50  ;;  %867 = vperm.xlu0 %1831, %v859_v63  }
 0x197   : > { %762 = vmatpush.msra.mxu2 %v423_v41  ;;  %825 = vmatpush.msrb.mxu3 %v1733_v13  ;;  %v2616_v41 = vld [vmem:[%s2943_s2] sm:$0x7] }
 0x198   : > { %740 = vmatpush.msra.mxu1 %v573_v37  ;;  %1617 = vmatmul.msk.f32.gmra.mxu3 %vm695_vm11, %v694_v22  ;;  %v998_v9 = vperm.slane %v2616_v41, 1 }
 0x199   : > { %826 = vmatpush.msrb.mxu3 %v1738_v0  ;;  %v452_v53 = vpop.permute.xlu0 %451  ;;  %763 = vmatpush.msra.mxu2 %v2150_v30 }
 0x19a   : > { %v440_v45 = vpop.permute.xlu1 %439  ;;  %764 = vmatmul.f32.vlgmr.msra.gmra.mxu2 %v691_v32  ;;  %794 = vmatpush.msrb.mxu1 %v1713_v6  ;;  %v458_v13 = vsel %vm457_vm10, %v452_v53, %v1787_v19 }
 0x19b   : > { %713 = vmatpush.msra.mxu0 %v458_v13  ;;  %827 = vmatpush.msrb.mxu3 %v1743_v5  ;;  %v446_v30 = vsel %vm445_vm4, %v440_v45, %v1808_v48 }
 0x19c   : > { %795 = vmatpush.msrb.mxu1 %v1718_v4  ;;  %v840_v4 = vld [vmem:[%s2945_s4] sm:$0xff] }
 0x19d   : > { %714 = vmatpush.msra.mxu0 %v446_v30  ;;  %828 = vmatpush.msrb.mxu3 %v1753_v36 }
 0x19e   : > { %796 = vmatpush.msrb.mxu1 %v1723_v46  ;;  %844 = vperm.xlu2 %1830, %v840_v4  }
 0x19f   : > { %715 = vmatpush.msra.mxu0 %v434_v59  ;;  %829 = vmatpush.msrb.mxu3 %v1763_v23 }
 0x1a0   : > { %797 = vmatpush.msrb.mxu1 %v2224_v57 }
 0x1a1   : > { %830 = vmatpush.msrb.mxu3 %v1773_v62  ;;  %v416_v3 = vpop.permute.xlu0 %415  ;;  %1614 = vmatmul.msk.f32.vlgmr.msra.gmra.mxu1 %vm695_vm11, %v2474_v29 }
 0x1a2   : > { %767 = vmatmul.f32.gmra.mxu2 %v693_v60  ;;  %798 = vmatpush.msrb.mxu1 %v2210_v49  ;;  %v422_v6 = vsel %vm2956_vm2, %v416_v3, %v1827_v55  ;;  %v2961_v49 = vunpack.i.h.bf16 %v2340_v56 }
 0x1a3   : > { %716 = vmatpush.msra.mxu0 %v422_v6  ;;  %831 = vmatpush.msrb.mxu3 %v1783_v58 }
 0x1a4   : > { %1618 = vmatpush.msk.msrb.mxu1 %vm379_vm1, %v2138_v26  ;;  %v2959_v26 = vunpack.i.h.bf16 %v2333_v17 }
 0x1a5   : > { %1613 = vmatpush.msk.msra.mxu0 %vm2303_vm8, %v2116_v16  ;;  %832 = vmatpush.msrb.mxu3 %v1807_v12  ;;  %v2960_v16 = vunpack.i.l.bf16 %v2348_v61 }
 0x1a6   : > { %718 = vmatmul.f32.vlgmr.msra.gmra.mxu0 %v691_v32  ;;  %1619 = vmatpush.msk.msrb.mxu1 %vm379_vm1, %v2127_v21  ;;  %v2962_v21 = vunpack.i.h.bf16 %v2367_v7 }
 0x1a7   : > { %1621 = vmatmul.msk.f32.vlgmr.msrb.gmra.mxu3 %vm695_vm11, %v2474_v29 }
 0x1a8   : > { %801 = vmatpush.msrb.mxu1 %v1748_v15 }
 0x1a9   : > { %1615 = vmatmul.msk.f32.gmra.mxu1 %vm695_vm11, %v694_v22 }
 0x1aa   : > { %802 = vmatpush.msrb.mxu1 %v2959_v26 }
 0x1ac   : > { %803 = vmatpush.msrb.mxu1 %v2960_v16 }
 0x1ae   : > { %721 = vmatmul.f32.gmra.mxu0 %v693_v60  ;;  %804 = vmatpush.msrb.mxu1 %v2961_v49 }
 0x1af   : > { %1622 = vmatmul.msk.f32.gmra.mxu3 %vm695_vm11, %v694_v22 }
 0x1b0   : > { %805 = vmatpush.msrb.mxu1 %v2962_v21 }
 0x1b2   : > { %806 = vmatpush.msrb.mxu1 %v1812_v20 }
 0x1b4   : > { %807 = vmatpush.msrb.mxu1 %v1823_v40 }
 0x1b6   : > { %808 = vmatpush.msrb.mxu1 %v1828_v43 }
 0x1b8   : > { %1620 = vmatpush.msk.msrb.mxu1 %vm379_vm1, %v2153_v31 }
 0x1b9   : > { %810 = vmatmul.f32.vlgmr.msrb.gmra.mxu1 %v691_v32 }
 0x1c1   : > { %813 = vmatmul.f32.gmra.mxu1 %v693_v60 }
 0x1f7   : > { %v2590_v57 = vpop.permute.xlu1 %849 }
 0x1f8   : > { %v845_v46 = vpop.permute.xlu2 %844 }
 0x200   : > { %v863_v15 = vpop.permute.xlu1 %862 }
 0x208   : > { %v2595_v0 = vpop.permute.xlu0 %867 }
 0x213   : > { %v788_v8 = vpop.f32.mrf.mxu3 }
 0x21b   : > { %v791_v19 = vpop.f32.mrf.mxu3 }
 0x21d   : > { %v765_v27 = vpop.f32.mrf.mxu2 }
 0x21e   : > { %v789_v14 = vadd.f32 %v788_v8, %v765_v27  ;;  %v742_v17 = vpop.f32.mrf.mxu1 }
 0x220   : > { %v853_v56 = vmul.f32 %v845_v46, %v789_v14 }
 0x222   : > { %v2592_v61 = vadd.f32 %v863_v15, %v853_v56 }
 0x223   : > { %v719_v7 = vpop.f32.mrf.mxu0 }
 0x224   : > { %v1624_v24 = vmul.f32 -1.442695, %v2592_v61  ;;  %v743_v25 = vadd.f32 %v742_v17, %v719_v7 }
 0x225   : > { %v768_v47 = vpop.f32.mrf.mxu2 }
 0x226   : > { %1952 = vpow2.f32 %v1624_v24  ;;  %v852_v31 = vmul.f32 %v845_v46, %v743_v25  ;;  %v792_v42 = vadd.f32 %v791_v19, %v768_v47  ;;  %v745_v23 = vpop.f32.mrf.mxu1 }
 0x228   : > { %v2597_v5 = vadd.f32 %v863_v15, %v852_v31  ;;  %v856_v36 = vmul.f32 %v2590_v57, %v792_v42 }
 0x22a   : > { %v1623_v62 = vmul.f32 -1.442695, %v2597_v5  ;;  %v2602_v58 = vadd.f32 %v2595_v0, %v856_v36  ;;  %v834_v2 = vpop.f32.mrf.mxu3 }
 0x22b   : > { %v722_v54 = vpop.f32.mrf.mxu0 }
 0x22c   : > { %v1953_v48 = vpop.eup %1952  ;;  %1954 = vpow2.f32 %v1623_v62  ;;  %v1627_v12 = vmul.f32 -1.442695, %v2602_v58  ;;  %v746_v20 = vadd.f32 %v745_v23, %v722_v54 }
 0x22d   : > { %v895_v11 = vadd.f32 1.0, %v1953_v48 }
 0x22e   : > { %1956 = vpow2.f32 %v1627_v12  ;;  %v855_v29 = vmul.f32 %v2590_v57, %v746_v20 }
 0x22f   : > { %1958 = vrcp.f32 %v895_v11  ;;  %v924_v38 = vand.u32 2147483647, %v895_v11  ;;  %v926_v18 = vand.u32 2147483648, %v895_v11  ;;  %vm920_vm13 = vweird.f32 %v895_v11 }
 0x230   : > { %v2607_v44 = vadd.f32 %v2595_v0, %v855_v29 }
 0x231   : > { %vm925_vm15 = vcmp.eq.f32.partialorder %v924_v38, 8.507059e+37  ;;  %v927_v30 = vor.u32 1.1754944e-38, %v926_v18 }
 0x232   : > { %v1955_v1 = vpop.eup %1954  ;;  %v1626_v51 = vmul.f32 -1.442695, %v2607_v44  ;;  %v837_v22 = vpop.f32.mrf.mxu3 }
 0x233   : > { %v2610_v10 = vadd.f32 1.0, %v1955_v1 }
 0x234   : > { %v1957_v52 = vpop.eup %1956  ;;  %1960 = vpow2.f32 %v1626_v51 }
 0x235   : > { %v1959_v43 = vpop.eup %1958  ;;  %1962 = vrcp.f32 %v2610_v10  ;;  %v898_v55 = vadd.f32 1.0, %v1957_v52  ;;  %v911_v1 = vand.u32 2147483648, %v2610_v10  ;;  %vm905_vm9 = vweird.f32 %v2610_v10 }
 0x236   : > { %v811_v40 = vpop.f32.mrf.mxu1  ;;  %v916_v28 = vmul.f32 %v1959_v43, %v895_v11  ;;  %vm921_vm12 = vweird.f32 %v1959_v43 }
 0x237   : > { %1964 = vrcp.f32 %v898_v55  ;;  %v835_v33 = vadd.f32 %v834_v2, %v811_v40  ;;  %vm922_vm14 = vmor %vm920_vm13, %vm921_vm12  ;;  %v969_v8 = vand.u32 2147483647, %v898_v55  ;;  %v971_v27 = vand.u32 2147483648, %v898_v55 }
 0x238   : > { %v917_v34 = vsub.f32 1.0, %v916_v28  ;;  %vm965_vm12 = vweird.f32 %v898_v55  ;;  %v997_v40 = vperm.slane %v2616_v41, 0 }
 0x239   : > { %v854_v50 = vmul.f32 %v845_v46, %v835_v33  ;;  %v972_v25 = vor.u32 1.1754944e-38, %v971_v27 }
 0x23a   : > { %v1961_v39 = vpop.eup %1960  ;;  %v918_v63 = vmul.f32 %v1959_v43, %v917_v34  ;;  %v912_v34 = vor.u32 1.1754944e-38, %v911_v1 }
 0x23b   : > { %v2618_v37 = vpop.eup %1962  ;;  %v897_v32 = vadd.f32 1.0, %v1961_v39  ;;  %v2620_v53 = vadd.f32 %v863_v15, %v854_v50 }
 0x23c   : > { %v919_v45 = vadd.f32 %v1959_v43, %v918_v63  ;;  %v901_v6 = vmul.f32 %v2618_v37, %v2610_v10 }
 0x23d   : > { %v1965_v13 = vpop.eup %1964  ;;  %1966 = vrcp.f32 %v897_v32  ;;  %v1625_v60 = vmul.f32 -1.442695, %v2620_v53  ;;  %v954_v48 = vand.u32 2147483647, %v897_v32 }
 0x23e   : > { %v961_v59 = vmul.f32 %v1965_v13, %v898_v55  ;;  %v814_v3 = vpop.f32.mrf.mxu1  ;;  %v923_v4 = vsel %vm922_vm14, %v1959_v43, %v919_v45  ;;  %vm966_vm11 = vweird.f32 %v1965_v13  ;;  %v902_v17 = vsub.f32 1.0, %v901_v6 }
 0x23f   : > { %v838_v26 = vadd.f32 %v837_v22, %v814_v3  ;;  %v928_v16 = vsel %vm925_vm15, %v927_v30, %v923_v4  ;;  %1968 = vpow2.f32 %v1625_v60  ;;  %vm967_vm13 = vmor %vm965_vm12, %vm966_vm11  ;;  %vm970_vm14 = vcmp.eq.f32.partialorder %v969_v8, 8.507059e+37 }
 0x240   : > { %v962_v49 = vsub.f32 1.0, %v961_v59  ;;  %v991_v21 = vmul.f32 %v928_v16, %v2592_v61  ;;  %v903_v42 = vmul.f32 %v2618_v37, %v902_v17  ;;  %vm906_vm11 = vweird.f32 %v2618_v37 }
 0x241   : > { %v857_v46 = vmul.f32 %v2590_v57, %v838_v26  ;;  %vm950_vm12 = vweird.f32 %v897_v32  ;;  %vm907_vm2 = vmor %vm905_vm9, %vm906_vm11  ;;  %v999_v26 = vperm.slane %v2616_v41, 2 }
 0x242   : > { %v963_v14 = vmul.f32 %v1965_v13, %v962_v49  ;;  %v1004_v15 = vmul.f32 %v998_v9, %v991_v21  ;;  %v904_v11 = vadd.f32 %v2618_v37, %v903_v42 }
 0x243   : > { %v1967_v56 = vpop.eup %1966  ;;  %v2629_v7 = vadd.f32 %v2595_v0, %v857_v46  ;;  %v956_v0 = vand.u32 2147483648, %v897_v32 }
 0x244   : > { %v964_v19 = vadd.f32 %v1965_v13, %v963_v14  ;;  %1017 = vrot.lane.b32.xlu0 %v1004_v15, %s2008_s15  ;;  %v946_v24 = vmul.f32 %v1967_v56, %v897_v32  ;;  %vm951_vm15 = vweird.f32 %v1967_v56  ;;  %v908_v28 = vsel %vm907_vm2, %v2618_v37, %v904_v11 }
 0x245   : > { %v1628_v61 = vmul.f32 -1.442695, %v2629_v7  ;;  %v1969_v47 = vpop.eup %1968  ;;  %v957_v29 = vor.u32 1.1754944e-38, %v956_v0 }
 0x246   : > { %v968_v31 = vsel %vm967_vm13, %v1965_v13, %v964_v19  ;;  %v947_v57 = vsub.f32 1.0, %v946_v24  ;;  %v896_v23 = vadd.f32 1.0, %v1969_v47  ;;  %vm952_vm13 = vmor %vm950_vm12, %vm951_vm15 }
 0x247   : > { %v973_v36 = vsel %vm970_vm14, %v972_v25, %v968_v31  ;;  %1970 = vpow2.f32 %v1628_v61  ;;  %vm955_vm14 = vcmp.eq.f32.partialorder %v954_v48, 8.507059e+37  ;;  %v1370_v48 = vld [vmem:[%s2948_s7] sm:$0xff] }
 0x248   : > { %v994_v62 = vmul.f32 %v973_v36, %v2602_v58  ;;  %v948_v54 = vmul.f32 %v1967_v56, %v947_v57  ;;  %1972 = vrcp.f32 %v896_v23  ;;  %v909_v58 = vand.u32 2147483647, %v2610_v10 }
 0x249   : > { %v941_v50 = vand.u32 2147483648, %v896_v23  ;;  %vm935_vm11 = vweird.f32 %v896_v23 }
 0x24a   : > { %v1007_v12 = vmul.f32 %v998_v9, %v994_v62  ;;  %v949_v20 = vadd.f32 %v1967_v56, %v948_v54  ;;  %vm910_vm15 = vcmp.eq.f32.partialorder %v909_v58, 8.507059e+37  ;;  %v1388_v62 = vld [vmem:[%s2949_s8] sm:$0xff]  ;;  %v1371_v54 = vld [vmem:[%s2948_s7 + $0x8] sm:$0xff] }
 0x24b   : > { %v913_v39 = vsel %vm910_vm15, %v912_v34, %v908_v28  ;;  %v942_v37 = vor.u32 1.1754944e-38, %v941_v50 }
 0x24c   : > { %1023 = vrot.lane.b32.xlu1 %v1007_v12, %s2008_s15  ;;  %v953_v51 = vsel %vm952_vm13, %v1967_v56, %v949_v20  ;;  %v990_v63 = vmul.f32 %v913_v39, %v2597_v5  ;;  %v1389_v12 = vld [vmem:[%s2949_s8 + $0x8] sm:$0xff] }
 0x24d   : > { %v1971_v2 = vpop.eup %1970  ;;  %v958_v52 = vsel %vm955_vm14, %v957_v29, %v953_v51 }
 0x24e   : > { %v899_v43 = vadd.f32 1.0, %v1971_v2  ;;  %v993_v55 = vmul.f32 %v958_v52, %v2607_v44  ;;  %v1973_v33 = vpop.eup %1972  ;;  %v939_v44 = vand.u32 2147483647, %v896_v23  ;;  %v1003_v30 = vmul.f32 %v997_v40, %v990_v63 }
 0x24f   : > { %v931_v18 = vmul.f32 %v1973_v33, %v896_v23  ;;  %vm936_vm9 = vweird.f32 %v1973_v33 }
 0x250   : > { %1974 = vrcp.f32 %v899_v43  ;;  %v1006_v38 = vmul.f32 %v997_v40, %v993_v55  ;;  %vm937_vm2 = vmor %vm935_vm11, %vm936_vm9  ;;  %vm940_vm12 = vcmp.eq.f32.partialorder %v939_v44, 8.507059e+37  ;;  %v986_v3 = vand.u32 2147483648, %v899_v43 }
 0x251   : > { %v932_v10 = vsub.f32 1.0, %v931_v18  ;;  %v984_v5 = vand.u32 2147483647, %v899_v43  ;;  %vm980_vm14 = vweird.f32 %v899_v43  ;;  %vm2964_vm11 = vcmask 736256  }
 0x252   : > { %1021 = vrot.lane.b32.xlu2 %v1006_v38, %s2008_s15  ;;  %v987_v49 = vor.u32 1.1754944e-38, %v986_v3 }
 0x253   : > { %v933_v32 = vmul.f32 %v1973_v33, %v932_v10  ;;  %vm985_vm9 = vcmp.eq.f32.partialorder %v984_v5, 8.507059e+37 }
 0x255   : > { %v934_v45 = vadd.f32 %v1973_v33, %v933_v32 }
 0x256   : > { %v1975_v22 = vpop.eup %1974 }
 0x257   : > { %v976_v13 = vmul.f32 %v1975_v22, %v899_v43  ;;  %v938_v9 = vsel %vm937_vm2, %v1973_v33, %v934_v45  ;;  %vm981_vm13 = vweird.f32 %v1975_v22  ;;  %vm1225_vm2 = vcmask 130048  }
 0x258   : > { %v943_v59 = vsel %vm940_vm12, %v942_v37, %v938_v9  ;;  %vm982_vm15 = vmor %vm980_vm14, %vm981_vm13 }
 0x259   : > { %v977_v60 = vsub.f32 1.0, %v976_v13  ;;  %v992_v6 = vmul.f32 %v943_v59, %v2620_v53 }
 0x25a   : > { %1015 = vrot.lane.b32.xlu2 %v1003_v30, %s2008_s15 }
 0x25b   : > { %v978_v4 = vmul.f32 %v1975_v22, %v977_v60  ;;  %v1005_v8 = vmul.f32 %v999_v26, %v992_v6 }
 0x25d   : > { %v979_v16 = vadd.f32 %v1975_v22, %v978_v4 }
 0x25f   : > { %v983_v21 = vsel %vm982_vm15, %v1975_v22, %v979_v16 }
 0x260   : > { %v988_v27 = vsel %vm985_vm9, %v987_v49, %v983_v21 }
 0x261   : > { %v995_v46 = vmul.f32 %v988_v27, %v2629_v7 }
 0x262   : > { %1019 = vrot.lane.b32.xlu2 %v1005_v8, %s2008_s15 }
 0x263   : > { %v1008_v14 = vmul.f32 %v999_v26, %v995_v46 }
 0x265   : > { %1025 = vrot.lane.b32.xlu1 %v1008_v14, %s2008_s15  ;;  %s2911_s15 = scalar_lea.vmem %s2950_s9, %s1650_s11 }
 0x2ac   : > { %v2654_v15 = vpop.permute.xlu2 %1021 }
 0x2ad   : > { %v1038_v24 = vsel %vm372_vm0, 0.0, %v2654_v15 }
 0x2b4   : > { %v2656_v53 = vpop.permute.xlu2 %1015 }
 0x2b5   : > { %v1037_v17 = vsel %vm372_vm0, 0.0, %v2656_v53 }
 0x2b6   : > { %v1018_v41 = vpop.permute.xlu0 %1017 }
 0x2b7   : > { %v2662_v56 = vsel %vm372_vm0, %v2656_v53, %v1018_v41 }
 0x2b8   : > { %v1842_v19 = vpack.i.bf16 %v2662_v56, %v1037_v17 }
 0x2ba   : > { %1843 = vrot.lane.b32.xlu2 %v1842_v19, %s2015_s26  ;;  %1838 = vrot.lane.b32.xlu0 %v1842_v19, %s2014_s25 }
 0x2bb   : > { %1833 = vrot.lane.b32.xlu1 %v1842_v19, %s2010_s21 }
 0x2bc   : > { %v1020_v47 = vpop.permute.xlu2 %1019 }
 0x2bd   : > { %v2684_v31 = vsel %vm372_vm0, %v1018_v41, %v1020_v47 }
 0x2be   : > { %v1024_v7 = vpop.permute.xlu1 %1023  ;;  %v1039_v36 = vsel %vm379_vm1, %v2684_v31, 0.0 }
 0x2bf   : > { %v2672_v25 = vsel %vm372_vm0, %v2654_v15, %v1024_v7 }
 0x2c0   : > { %v1857_v61 = vpack.i.bf16 %v2672_v25, %v1038_v24 }
 0x2c2   : > { %1848 = vrot.lane.b32.xlu2 %v1842_v19, %s2016_s27  ;;  %1858 = vrot.lane.b32.xlu0 %v1857_v61, %s2010_s21 }
 0x2c3   : > { %1878 = vrot.lane.b32.xlu1 %v1857_v61, %s2015_s26 }
 0x2ca   : > { %1853 = vrot.lane.b32.xlu2 %v1842_v19, %s2013_s24  ;;  %1873 = vrot.lane.b32.xlu0 %v1842_v19, %s2012_s23 }
 0x2cb   : > { %1883 = vrot.lane.b32.xlu1 %v1857_v61, %s2016_s27 }
 0x2d2   : > { %1863 = vrot.lane.b32.xlu2 %v1857_v61, %s2014_s25 }
 0x2d3   : > { %1888 = vrot.lane.b32.xlu1 %v1857_v61, %s2013_s24 }
 0x2d7   : > { %v1026_v57 = vpop.permute.xlu1 %1025 }
 0x2d8   : > { %v2687_v42 = vsel %vm372_vm0, %v1024_v7, %v1026_v57  ;;  %vm2963_vm0 = vcmask 1039360  }
 0x2d9   : > { %v1040_v23 = vsel %vm379_vm1, %v2687_v42, 0.0  ;;  %vm2968_vm14 = vmmov %vm2963_vm0 }
 0x2da   : > { %1868 = vrot.lane.b32.xlu2 %v1842_v19, %s2009_s20  ;;  %v1912_v0 = vpack.i.bf16 %v1039_v36, %v1040_v23 }
 0x2db   : > { %1893 = vrot.lane.b32.xlu1 %v1857_v61, %s2009_s20 }
 0x2dc   : > { %1913 = vrot.lane.b32.xlu0 %v1912_v0, %s2010_s21 }
 0x2e2   : > { %1908 = vrot.lane.b32.xlu2 %v1857_v61, %s2011_s22 }
 0x2e3   : > { %1898 = vrot.lane.b32.xlu1 %v1857_v61, %s2012_s23 }
 0x2e4   : > { %1918 = vrot.lane.b32.xlu0 %v1912_v0, %s2014_s25 }
 0x2ea   : > { %1933 = vrot.lane.b32.xlu2 %v1912_v0, %s2013_s24 }
 0x2eb   : > { %1903 = vrot.lane.b32.xlu1 %v1842_v19, %s2011_s22 }
 0x2ec   : > { %1923 = vrot.lane.b32.xlu0 %v1912_v0, %s2015_s26 }
 0x2f2   : > { %1948 = vrot.lane.b32.xlu2 %v1912_v0, %s2012_s23 }
 0x2f3   : > { %1943 = vrot.lane.b32.xlu1 %v1912_v0, %s2011_s22 }
 0x2f4   : > { %1928 = vrot.lane.b32.xlu0 %v1912_v0, %s2016_s27 }
 0x2fa   : > { %1392 = vperm.xlu2 %1830, %v1388_v62  }
 0x2fb   : > { %1379 = vperm.xlu1 %1829, %v1371_v54  }
 0x2fc   : > { %1938 = vrot.lane.b32.xlu0 %v1912_v0, %s2009_s20 }
 0x304   : > { %1374 = vperm.xlu0 %1831, %v1370_v48  }
 0x30c   : > { %1397 = vperm.xlu0 %1831, %v1389_v12  }
 0x314   : > { %v2718_v20 = vpop.permute.xlu2 %1843 }
 0x315   : > { %v1846_v22 = vunpack.i.h.bf16 %v2718_v20  ;;  %v1845_v45 = vunpack.i.l.bf16 %v2718_v20 }
 0x317   : > { %v1145_v4 = vsel %vm469_vm6, %v1845_v45, %v1846_v22 }
 0x31c   : > { %v2720_v11 = vpop.permute.xlu2 %1848 }
 0x31d   : > { %v1851_v60 = vunpack.i.h.bf16 %v2720_v11  ;;  %v1850_v3 = vunpack.i.l.bf16 %v2720_v11 }
 0x31f   : > { %v1123_v16 = vsel %vm457_vm10, %v1850_v3, %v1851_v60  ;;  %v2821_v3 = vld [vmem:[%s2947_s6 + $0x8] sm:$0xff] }
 0x324   : > { %v2722_v29 = vpop.permute.xlu2 %1853 }
 0x325   : > { %v1856_v49 = vunpack.i.h.bf16 %v2722_v29  ;;  %v1855_v21 = vunpack.i.l.bf16 %v2722_v29 }
 0x327   : > { %v1101_v41 = vsel %vm445_vm4, %v1855_v21, %v1856_v49 }
 0x32c   : > { %v2724_v1 = vpop.permute.xlu0 %1838  ;;  %v2728_v58 = vpop.permute.xlu2 %1863 }
 0x32d   : > { %v2726_v51 = vpop.permute.xlu1 %1833  ;;  %v1866_v33 = vunpack.i.h.bf16 %v2728_v58  ;;  %v1865_v34 = vunpack.i.l.bf16 %v2728_v58  ;;  %v1841_v39 = vunpack.i.h.bf16 %v2724_v1  ;;  %v1840_v10 = vunpack.i.l.bf16 %v2724_v1 }
 0x32e   : > { %v1836_v52 = vunpack.i.h.bf16 %v2726_v51  ;;  %v1835_v43 = vunpack.i.l.bf16 %v2726_v51 }
 0x32f   : > { %v1169_v44 = vsel %vm481_vm7, %v1865_v34, %v1866_v33  ;;  %v1167_v13 = vsel %vm481_vm7, %v1840_v10, %v1841_v39 }
 0x330   : > { %v1189_v50 = vsel %vm493_vm3, %v1835_v43, %v1836_v52 }
 0x334   : > { %v2730_v2 = vpop.permute.xlu0 %1858  ;;  %v2741_v18 = vpop.permute.xlu2 %1868 }
 0x335   : > { %v1861_v55 = vunpack.i.h.bf16 %v2730_v2  ;;  %v1860_v40 = vunpack.i.l.bf16 %v2730_v2  ;;  %v2736_v28 = vpop.permute.xlu1 %1878  ;;  %v1871_v7 = vunpack.i.h.bf16 %v2741_v18  ;;  %v1870_v24 = vunpack.i.l.bf16 %v2741_v18 }
 0x336   : > { %v1881_v63 = vunpack.i.h.bf16 %v2736_v28  ;;  %v1880_v32 = vunpack.i.l.bf16 %v2736_v28  ;;  %v1221_v28 = vld [vmem:[%s2947_s6] sm:$0xff] }
 0x337   : > { %v1191_v38 = vsel %vm493_vm3, %v1860_v40, %v1861_v55  ;;  %v1079_v12 = vsel %vm433_vm5, %v1870_v24, %v1871_v7 }
 0x338   : > { %1232 = vmatpush.msrb.mxu0 %v1191_v38  ;;  %v1147_v59 = vsel %vm469_vm6, %v1880_v32, %v1881_v63 }
 0x33a   : > { %1233 = vmatpush.msrb.mxu0 %v1189_v50 }
 0x33c   : > { %1234 = vmatpush.msrb.mxu0 %v1169_v44  ;;  %v2770_v5 = vpop.permute.xlu2 %1908  ;;  %v1874_v8 = vpop.permute.xlu0 %1873 }
 0x33d   : > { %v2755_v37 = vpop.permute.xlu1 %1883  ;;  %v1911_v0 = vunpack.i.h.bf16 %v2770_v5  ;;  %v1910_v62 = vunpack.i.l.bf16 %v2770_v5  ;;  %v1876_v34 = vunpack.i.h.bf16 %v1874_v8 }
 0x33e   : > { %1235 = vmatpush.msrb.mxu0 %v1167_v13  ;;  %v1886_v30 = vunpack.i.h.bf16 %v2755_v37  ;;  %v1885_v9 = vunpack.i.l.bf16 %v2755_v37 }
 0x33f   : > { %v1059_v43 = vsel %vm2963_vm0, %v1910_v62, %v1911_v0 }
 0x340   : > { %1236 = vmatpush.msrb.mxu0 %v1147_v59  ;;  %v1125_v6 = vsel %vm457_vm10, %v1885_v9, %v1886_v30 }
 0x342   : > { %1237 = vmatpush.msrb.mxu0 %v1145_v4 }
 0x344   : > { %1238 = vmatpush.msrb.mxu0 %v1125_v6  ;;  %v2790_v17 = vpop.permute.xlu2 %1933 }
 0x345   : > { %v2775_v26 = vpop.permute.xlu1 %1888  ;;  %v1935_v20 = vunpack.i.l.bf16 %v2790_v17 }
 0x346   : > { %v1891_v27 = vunpack.i.h.bf16 %v2775_v26  ;;  %v1890_v46 = vunpack.i.l.bf16 %v2775_v26  ;;  %1239 = vmatpush.msrb.mxu0 %v1123_v16 }
 0x348   : > { %v1103_v14 = vsel %vm445_vm4, %v1890_v46, %v1891_v27  ;;  %v1104_v37 = vsel %vm445_vm4, %v1891_v27, %v1935_v20 }
 0x349   : > { %1240 = vmatpush.msrb.mxu0 %v1103_v14 }
 0x34b   : > { %1241 = vmatpush.msrb.mxu0 %v1101_v41  ;;  %v1224_v41 = vld [vmem:[%s2947_s6 + $0x18] sm:$0xff] }
 0x34c   : > { %v1949_v38 = vpop.permute.xlu2 %1948 }
 0x34d   : > { %v2792_v19 = vpop.permute.xlu1 %1893  ;;  %v1951_v51 = vunpack.i.h.bf16 %v1949_v38  ;;  %v1950_v9 = vunpack.i.l.bf16 %v1949_v38 }
 0x34e   : > { %v1896_v61 = vunpack.i.h.bf16 %v2792_v19  ;;  %v1895_v47 = vunpack.i.l.bf16 %v2792_v19  ;;  %v1914_v57 = vpop.permute.xlu0 %1913 }
 0x34f   : > { %v1916_v36 = vunpack.i.h.bf16 %v1914_v57  ;;  %v1915_v23 = vunpack.i.l.bf16 %v1914_v57  ;;  %v1936_v57 = vunpack.i.h.bf16 %v2790_v17 }
 0x350   : > { %v1081_v54 = vsel %vm433_vm5, %v1895_v47, %v1896_v61 }
 0x351   : > { %1242 = vmatpush.msrb.mxu0 %v1081_v54  ;;  %1324 = vmatpush.msra.mxu1 %v1915_v23  ;;  %v1192_v48 = vsel %vm493_vm3, %v1861_v55, %v1915_v23  ;;  %v1190_v2 = vsel %vm493_vm3, %v1836_v52, %v1916_v36  ;;  %v1875_v55 = vunpack.i.l.bf16 %v1874_v8  ;;  %vm2965_vm3 = vmmov %vm2964_vm11 }
 0x352   : > { %1278 = vmatpush.msra.mxu3 %v1192_v48  ;;  %vm2966_vm12 = vmmov %vm2965_vm3 }
 0x353   : > { %1243 = vmatpush.msrb.mxu0 %v1079_v12  ;;  %1325 = vmatpush.msra.mxu1 %v1916_v36  ;;  %v1211_v59 = vsel %vm2965_vm3, %v1875_v55, %v1876_v34  ;;  %vm2967_vm13 = vmmov %vm2965_vm3 }
 0x354   : > { %1279 = vmatpush.msra.mxu3 %v1190_v2 }
 0x355   : > { %v1899_v40 = vpop.permute.xlu1 %1898  ;;  %1244 = vmatpush.msrb.mxu0 %v1059_v43 }
 0x356   : > { %v1901_v10 = vunpack.i.h.bf16 %v1899_v40  ;;  %v1900_v50 = vunpack.i.l.bf16 %v1899_v40  ;;  %v1919_v32 = vpop.permute.xlu0 %1918 }
 0x357   : > { %v1921_v44 = vunpack.i.h.bf16 %v1919_v32  ;;  %v1920_v45 = vunpack.i.l.bf16 %v1919_v32 }
 0x358   : > { %v1213_v13 = vsel %vm2964_vm11, %v1900_v50, %v1901_v10  ;;  %v1214_v4 = vsel %vm2966_vm12, %v1901_v10, %v1950_v9 }
 0x359   : > { %1269 = vmatpush.msrb.mxu2 %v1213_v13  ;;  %1326 = vmatpush.msra.mxu1 %v1920_v45  ;;  %v1170_v52 = vsel %vm481_vm7, %v1866_v33, %v1920_v45  ;;  %v1168_v6 = vsel %vm481_vm7, %v1841_v39, %v1921_v44  ;;  %v1212_v33 = vsel %vm2967_vm13, %v1876_v34, %v1951_v51  ;;  %vm1528_vm13 = vcmask 556032  }
 0x35a   : > { %1280 = vmatpush.msra.mxu3 %v1170_v52 }
 0x35b   : > { %1270 = vmatpush.msrb.mxu2 %v1211_v59  ;;  %1327 = vmatpush.msra.mxu1 %v1921_v44 }
 0x35c   : > { %1281 = vmatpush.msra.mxu3 %v1168_v6  ;;  %1633 = vmatmul.msk.f32.vlgmr.msrb.gmra.mxu2 %vm1225_vm2, %v2821_v3 }
 0x35d   : > { %1315 = vmatpush.msra.mxu2 %v1214_v4  ;;  %v2827_v58 = vpop.permute.xlu1 %1903 }
 0x35e   : > { %v1906_v16 = vunpack.i.h.bf16 %v2827_v58  ;;  %v1905_v21 = vunpack.i.l.bf16 %v2827_v58  ;;  %v1924_v8 = vpop.permute.xlu0 %1923 }
 0x35f   : > { %1316 = vmatpush.msra.mxu2 %v1212_v33  ;;  %v1926_v46 = vunpack.i.h.bf16 %v1924_v8  ;;  %v1925_v14 = vunpack.i.l.bf16 %v1924_v8 }
 0x360   : > { %v1057_v1 = vsel %vm2968_vm14, %v1905_v21, %v1906_v16 }
 0x361   : > { %1245 = vmatpush.msrb.mxu0 %v1057_v1  ;;  %1328 = vmatpush.msra.mxu1 %v1925_v14  ;;  %v1148_v39 = vsel %vm469_vm6, %v1881_v63, %v1925_v14  ;;  %v1146_v24 = vsel %vm469_vm6, %v1846_v22, %v1926_v46  ;;  %vm2969_vm6 = vmmov %vm2963_vm0 }
 0x362   : > { %1282 = vmatpush.msra.mxu3 %v1148_v39 }
 0x363   : > { %1630 = vmatpush.msk.msrb.mxu0 %vm2303_vm8, %v2654_v15  ;;  %1329 = vmatpush.msra.mxu1 %v1926_v46 }
 0x364   : > { %1283 = vmatpush.msra.mxu3 %v1146_v24  ;;  %1634 = vmatmul.msk.f32.gmra.mxu2 %vm1225_vm2, %v1224_v41 }
 0x365   : > { %1632 = vmatpush.msk.msrb.mxu0 %vm2303_vm8, %v2656_v53  ;;  %v1223_v53 = vld [vmem:[%s2947_s6 + $0x10] sm:$0xff] }
 0x366   : > { %1248 = vmatmul.f32.vlgmr.msrb.gmra.mxu0 %v1221_v28  ;;  %v1929_v63 = vpop.permute.xlu0 %1928 }
 0x367   : > { %1361 = vmatpush.msra.mxu0 %v1950_v9  ;;  %v1931_v15 = vunpack.i.h.bf16 %v1929_v63  ;;  %v1930_v47 = vunpack.i.l.bf16 %v1929_v63 }
 0x369   : > { %1362 = vmatpush.msra.mxu0 %v1951_v51  ;;  %1330 = vmatpush.msra.mxu1 %v1930_v47  ;;  %v1126_v22 = vsel %vm457_vm10, %v1886_v30, %v1930_v47  ;;  %v1124_v35 = vsel %vm457_vm10, %v1851_v60, %v1931_v15  ;;  %v1944_v30 = vpop.permute.xlu1 %1943  ;;  %v1102_v60 = vsel %vm445_vm4, %v1856_v49, %v1936_v57  ;;  %vm2970_vm4 = vmmov %vm2963_vm0 }
 0x36a   : > { %1284 = vmatpush.msra.mxu3 %v1126_v22  ;;  %v1945_v23 = vunpack.i.l.bf16 %v1944_v30  ;;  %v1946_v27 = vunpack.i.h.bf16 %v1944_v30 }
 0x36b   : > { %1331 = vmatpush.msra.mxu1 %v1931_v15 }
 0x36c   : > { %1285 = vmatpush.msra.mxu3 %v1124_v35  ;;  %1635 = vmatmul.msk.f32.vlgmr.msra.gmra.mxu2 %vm1225_vm2, %v2821_v3  ;;  %v1060_v29 = vsel %vm2969_vm6, %v1911_v0, %v1945_v23  ;;  %v1058_v49 = vsel %vm2970_vm4, %v1906_v16, %v1946_v27  ;;  %v1393_v0 = vpop.permute.xlu2 %1392 }
 0x36d   : > { %1332 = vmatpush.msra.mxu1 %v1935_v20 }
 0x36e   : > { %1251 = vmatmul.f32.gmra.mxu0 %v1223_v53  ;;  %v1939_v17 = vpop.permute.xlu0 %1938  ;;  %1286 = vmatpush.msra.mxu3 %v1104_v37 }
 0x36f   : > { %v1941_v11 = vunpack.i.h.bf16 %v1939_v17  ;;  %v1940_v36 = vunpack.i.l.bf16 %v1939_v17  ;;  %1333 = vmatpush.msra.mxu1 %v1936_v57 }
 0x370   : > { %1287 = vmatpush.msra.mxu3 %v1102_v60 }
 0x371   : > { %1334 = vmatpush.msra.mxu1 %v1940_v36  ;;  %v1082_v26 = vsel %vm433_vm5, %v1896_v61, %v1940_v36  ;;  %v1080_v62 = vsel %vm433_vm5, %v1871_v7, %v1941_v11  ;;  %v2893_v12 = vpop.permute.xlu1 %1379 }
 0x372   : > { %1288 = vmatpush.msra.mxu3 %v1082_v26 }
 0x373   : > { %1335 = vmatpush.msra.mxu1 %v1941_v11 }
 0x374   : > { %1289 = vmatpush.msra.mxu3 %v1080_v62  ;;  %1636 = vmatmul.msk.f32.gmra.mxu2 %vm1225_vm2, %v1224_v41 }
 0x375   : > { %1336 = vmatpush.msra.mxu1 %v1945_v23 }
 0x376   : > { %1290 = vmatpush.msra.mxu3 %v1060_v29  ;;  %1639 = vmatmul.msk.f32.vlgmr.msra.gmra.mxu0 %vm1225_vm2, %v2821_v3  ;;  %v1375_v7 = vpop.permute.xlu0 %1374 }
 0x377   : > { %1337 = vmatpush.msra.mxu1 %v1946_v27 }
 0x378   : > { %1291 = vmatpush.msra.mxu3 %v1058_v49 }
 0x379   : > { %1637 = vmatpush.msk.msra.mxu1 %vm379_vm1, %v2687_v42 }
 0x37a   : > { %1292 = vmatpush.msra.mxu3 %v2672_v25 }
 0x37b   : > { %1638 = vmatpush.msk.msra.mxu1 %vm379_vm1, %v2684_v31 }
 0x37c   : > { %1293 = vmatpush.msra.mxu3 %v2662_v56  ;;  %1340 = vmatmul.f32.vlgmr.msra.gmra.mxu1 %v1221_v28 }
 0x37d   : > { %1294 = vmatmul.f32.vlgmr.msra.gmra.mxu3 %v1221_v28 }
 0x37e   : > { %1640 = vmatmul.msk.f32.gmra.mxu0 %vm1225_vm2, %v1224_v41  ;;  %v2896_v2 = vpop.permute.xlu0 %1397 }
 0x384   : > { %1343 = vmatmul.f32.gmra.mxu1 %v1223_v53 }
 0x385   : > { %1297 = vmatmul.f32.gmra.mxu3 %v1223_v53 }
 0x3df   : > { %v1272_v18 = vpop.f32.mrf.mxu2 }
 0x3e3   : > { %v1249_v5 = vpop.f32.mrf.mxu0 }
 0x3e4   : > { %v1273_v19 = vadd.f32 %v1272_v18, %v1249_v5 }
 0x3e6   : > { %v1382_v61 = vmul.f32 %v1375_v7, %v1273_v19 }
 0x3e7   : > { %v1275_v54 = vpop.f32.mrf.mxu2 }
 0x3e8   : > { %v1400_v42 = vadd.f32 %v1393_v0, %v1382_v61 }
 0x3ea   : > { %v1641_v25 = vmul.f32 -1.442695, %v1400_v42 }
 0x3eb   : > { %v1252_v48 = vpop.f32.mrf.mxu0 }
 0x3ec   : > { %1976 = vpow2.f32 %v1641_v25  ;;  %v1276_v31 = vadd.f32 %v1275_v54, %v1252_v48 }
 0x3ee   : > { %v1385_v56 = vmul.f32 %v2893_v12, %v1276_v31 }
 0x3ef   : > { %v1318_v9 = vpop.f32.mrf.mxu2 }
 0x3f0   : > { %v2899_v43 = vadd.f32 %v2896_v2, %v1385_v56 }
 0x3f2   : > { %v1977_v40 = vpop.eup %1976  ;;  %v1644_v34 = vmul.f32 -1.442695, %v2899_v43 }
 0x3f3   : > { %v1424_v55 = vadd.f32 1.0, %v1977_v40  ;;  %v1364_v38 = vpop.f32.mrf.mxu0 }
 0x3f4   : > { %1978 = vpow2.f32 %v1644_v34 }
 0x3f5   : > { %1980 = vrcp.f32 %v1424_v55  ;;  %v1441_v3 = vand.u32 2147483648, %v1424_v55  ;;  %v1439_v58 = vand.u32 2147483647, %v1424_v55  ;;  %vm1435_vm5 = vweird.f32 %v1424_v55 }
 0x3f7   : > { %v1442_v39 = vor.u32 1.1754944e-38, %v1441_v3  ;;  %vm1440_vm8 = vcmp.eq.f32.partialorder %v1439_v58, 8.507059e+37  ;;  %v1321_v35 = vpop.f32.mrf.mxu2 }
 0x3f9   : > { %v1341_v10 = vpop.f32.mrf.mxu1 }
 0x3fa   : > { %v1979_v50 = vpop.eup %1978  ;;  %v1365_v32 = vadd.f32 %v1364_v38, %v1341_v10 }
 0x3fb   : > { %v1981_v44 = vpop.eup %1980  ;;  %v1427_v45 = vadd.f32 1.0, %v1979_v50  ;;  %v1367_v4 = vpop.f32.mrf.mxu0 }
 0x3fc   : > { %v1431_v13 = vmul.f32 %v1981_v44, %v1424_v55  ;;  %v1384_v51 = vmul.f32 %v1375_v7, %v1365_v32  ;;  %vm1436_vm1 = vweird.f32 %v1981_v44 }
 0x3fd   : > { %1982 = vrcp.f32 %v1427_v45  ;;  %vm1437_vm7 = vmor %vm1435_vm5, %vm1436_vm1  ;;  %v1486_v53 = vand.u32 2147483648, %v1427_v45  ;;  %v1484_v11 = vand.u32 2147483647, %v1427_v45  ;;  %vm1480_vm15 = vweird.f32 %v1427_v45 }
 0x3fe   : > { %v1432_v52 = vsub.f32 1.0, %v1431_v13  ;;  %v2902_v59 = vadd.f32 %v1393_v0, %v1384_v51 }
 0x3ff   : > { %v1487_v62 = vor.u32 1.1754944e-38, %v1486_v53  ;;  %vm1485_vm0 = vcmp.eq.f32.partialorder %v1484_v11, 8.507059e+37 }
 0x400   : > { %v1433_v6 = vmul.f32 %v1981_v44, %v1432_v52  ;;  %v1643_v33 = vmul.f32 -1.442695, %v2902_v59  ;;  %v1295_v16 = vpop.f32.mrf.mxu3 }
 0x401   : > { %v1319_v21 = vadd.f32 %v1318_v9, %v1295_v16  ;;  %v1344_v8 = vpop.f32.mrf.mxu1 }
 0x402   : > { %v1434_v46 = vadd.f32 %v1981_v44, %v1433_v6  ;;  %1984 = vpow2.f32 %v1643_v33  ;;  %v1368_v14 = vadd.f32 %v1367_v4, %v1344_v8 }
 0x403   : > { %v1983_v1 = vpop.eup %1982  ;;  %v1383_v41 = vmul.f32 %v1375_v7, %v1319_v21 }
 0x404   : > { %v1438_v24 = vsel %vm1437_vm7, %v1981_v44, %v1434_v46  ;;  %v1476_v28 = vmul.f32 %v1983_v1, %v1427_v45  ;;  %v1387_v63 = vmul.f32 %v2893_v12, %v1368_v14  ;;  %vm1481_vm10 = vweird.f32 %v1983_v1 }
 0x405   : > { %v1443_v15 = vsel %vm1440_vm8, %v1442_v39, %v1438_v24  ;;  %v2913_v47 = vadd.f32 %v1393_v0, %v1383_v41  ;;  %vm1482_vm9 = vmor %vm1480_vm15, %vm1481_vm10 }
 0x406   : > { %v1520_v20 = vmul.f32 %v1443_v15, %v1400_v42  ;;  %v1477_v22 = vsub.f32 1.0, %v1476_v28  ;;  %v2916_v57 = vadd.f32 %v2896_v2, %v1387_v63 }
 0x407   : > { %v1642_v37 = vmul.f32 -1.442695, %v2913_v47 }
 0x408   : > { %v1985_v30 = vpop.eup %1984  ;;  %1526 = vst [vmem:[%s2911_s15] sm:$0xff] %v1520_v20  ;;  %v1478_v17 = vmul.f32 %v1983_v1, %v1477_v22  ;;  %v1646_v36 = vmul.f32 -1.442695, %v2916_v57  ;;  %v1298_v60 = vpop.f32.mrf.mxu3 }
 0x409   : > { %v1426_v23 = vadd.f32 1.0, %v1985_v30  ;;  %1986 = vpow2.f32 %v1642_v37  ;;  %v1322_v26 = vadd.f32 %v1321_v35, %v1298_v60 }
 0x40a   : > { %v1479_v27 = vadd.f32 %v1983_v1, %v1478_v17  ;;  %1988 = vpow2.f32 %v1646_v36 }
 0x40b   : > { %1990 = vrcp.f32 %v1426_v23  ;;  %v1386_v49 = vmul.f32 %v2893_v12, %v1322_v26  ;;  %v1471_v12 = vand.u32 2147483648, %v1426_v23  ;;  %vm1465_vm3 = vweird.f32 %v1426_v23 }
 0x40c   : > { %v1483_v29 = vsel %vm1482_vm9, %v1983_v1, %v1479_v27 }
 0x40d   : > { %v1488_v18 = vsel %vm1485_vm0, %v1487_v62, %v1483_v29  ;;  %v2924_v19 = vadd.f32 %v2896_v2, %v1386_v49  ;;  %v1472_v55 = vor.u32 1.1754944e-38, %v1471_v12 }
 0x40e   : > { %v1523_v5 = vmul.f32 %v1488_v18, %v2899_v43  ;;  %v1469_v43 = vand.u32 2147483647, %v1426_v23 }
 0x40f   : > { %v1987_v7 = vpop.eup %1986  ;;  %v1645_v42 = vmul.f32 -1.442695, %v2924_v19 }
 0x410   : > { %v1989_v61 = vpop.eup %1988  ;;  %1530 = vst [vmem:[%s2911_s15 + $0x18] sm:$0xff] %v1523_v5  ;;  %v1425_v0 = vadd.f32 1.0, %v1987_v7  ;;  %vm1470_vm12 = vcmp.eq.f32.partialorder %v1469_v43, 8.507059e+37 }
 0x411   : > { %v1991_v54 = vpop.eup %1990  ;;  %v1429_v25 = vadd.f32 1.0, %v1989_v61 }
 0x412   : > { %v1461_v48 = vmul.f32 %v1991_v54, %v1426_v23  ;;  %1992 = vrcp.f32 %v1425_v0  ;;  %vm1466_vm11 = vweird.f32 %v1991_v54  ;;  %v1454_v9 = vand.u32 2147483647, %v1425_v0 }
 0x413   : > { %1994 = vrcp.f32 %v1429_v25  ;;  %vm1467_vm2 = vmor %vm1465_vm3, %vm1466_vm11  ;;  %v1456_v52 = vand.u32 2147483648, %v1425_v0  ;;  %v1516_v6 = vand.u32 2147483648, %v1429_v25  ;;  %v1514_v33 = vand.u32 2147483647, %v1429_v25 }
 0x414   : > { %v1462_v31 = vsub.f32 1.0, %v1461_v48  ;;  %1996 = vpow2.f32 %v1645_v42  ;;  %vm1450_vm4 = vweird.f32 %v1425_v0  ;;  %vm1510_vm5 = vweird.f32 %v1429_v25 }
 0x415   : > { %v1457_v21 = vor.u32 1.1754944e-38, %v1456_v52  ;;  %vm1455_vm7 = vcmp.eq.f32.partialorder %v1454_v9, 8.507059e+37  ;;  %v1517_v46 = vor.u32 1.1754944e-38, %v1516_v6  ;;  %vm1515_vm10 = vcmp.eq.f32.partialorder %v1514_v33, 8.507059e+37 }
 0x416   : > { %v1463_v56 = vmul.f32 %v1991_v54, %v1462_v31 }
 0x418   : > { %v1993_v40 = vpop.eup %1992  ;;  %v1464_v2 = vadd.f32 %v1991_v54, %v1463_v56 }
 0x419   : > { %v1995_v34 = vpop.eup %1994  ;;  %v1446_v38 = vmul.f32 %v1993_v40, %v1425_v0  ;;  %vm1451_vm14 = vweird.f32 %v1993_v40 }
 0x41a   : > { %v1997_v10 = vpop.eup %1996  ;;  %v1468_v50 = vsel %vm1467_vm2, %v1991_v54, %v1464_v2  ;;  %v1506_v32 = vmul.f32 %v1995_v34, %v1429_v25  ;;  %vm1511_vm6 = vweird.f32 %v1995_v34  ;;  %vm1452_vm1 = vmor %vm1450_vm4, %vm1451_vm14 }
 0x41b   : > { %v1473_v44 = vsel %vm1470_vm12, %v1472_v55, %v1468_v50  ;;  %v1447_v45 = vsub.f32 1.0, %v1446_v38  ;;  %v1428_v13 = vadd.f32 1.0, %v1997_v10  ;;  %vm1512_vm8 = vmor %vm1510_vm5, %vm1511_vm6 }
 0x41c   : > { %v1522_v51 = vmul.f32 %v1473_v44, %v2902_v59  ;;  %v1507_v3 = vsub.f32 1.0, %v1506_v32 }
 0x41d   : > { %v1448_v4 = vmul.f32 %v1993_v40, %v1447_v45  ;;  %1998 = vrcp.f32 %v1428_v13  ;;  %v1501_v20 = vand.u32 2147483648, %v1428_v13  ;;  %v1499_v35 = vand.u32 2147483647, %v1428_v13 }
 0x41e   : > { %1529 = vst.msk [vmem:[%s2911_s15 + $0x10] sm:$0xff] %vm1528_vm13, %v1522_v51  ;;  %v1508_v58 = vmul.f32 %v1995_v34, %v1507_v3  ;;  %vm1495_vm9 = vweird.f32 %v1428_v13 }
 0x41f   : > { %v1449_v16 = vadd.f32 %v1993_v40, %v1448_v4  ;;  %v1502_v37 = vor.u32 1.1754944e-38, %v1501_v20  ;;  %vm1500_vm11 = vcmp.eq.f32.partialorder %v1499_v35, 8.507059e+37 }
 0x420   : > { %v1509_v8 = vadd.f32 %v1995_v34, %v1508_v58 }
 0x421   : > { %v1453_v59 = vsel %vm1452_vm1, %v1993_v40, %v1449_v16 }
 0x422   : > { %v1458_v14 = vsel %vm1455_vm7, %v1457_v21, %v1453_v59  ;;  %v1513_v1 = vsel %vm1512_vm8, %v1995_v34, %v1509_v8 }
 0x423   : > { %v1999_v39 = vpop.eup %1998  ;;  %v1521_v41 = vmul.f32 %v1458_v14, %v2913_v47  ;;  %v1518_v24 = vsel %vm1515_vm10, %v1517_v46, %v1513_v1 }
 0x424   : > { %v1525_v28 = vmul.f32 %v1518_v24, %v2916_v57  ;;  %v1491_v63 = vmul.f32 %v1999_v39, %v1428_v13  ;;  %vm1496_vm15 = vweird.f32 %v1999_v39 }
 0x425   : > { %1527 = vst [vmem:[%s2911_s15 + $0x8] sm:$0xff] %v1521_v41  ;;  %vm1497_vm0 = vmor %vm1495_vm9, %vm1496_vm15 }
 0x426   : > { %1532 = vst.msk [vmem:[%s2911_s15 + $0x28] sm:$0xff] %vm1528_vm13, %v1525_v28  ;;  %v1492_v15 = vsub.f32 1.0, %v1491_v63 }
 0x428   : > { %v1493_v22 = vmul.f32 %v1999_v39, %v1492_v15 }
 0x42a   : > { %v1494_v53 = vadd.f32 %v1999_v39, %v1493_v22 }
 0x42c   : > { %v1498_v30 = vsel %vm1497_vm0, %v1999_v39, %v1494_v53 }
 0x42d   : > { %v1503_v47 = vsel %vm1500_vm11, %v1502_v37, %v1498_v30 }
 0x42e   : > { %v1524_v17 = vmul.f32 %v1503_v47, %v2924_v19 }
 0x430   : > { %1531 = vst [vmem:[%s2911_s15 + $0x20] sm:$0xff] %v1524_v17 }
 0x431 PF: > { %s19_s30 = sadd.s32 1, %s2006_s30  }
 0x432   : > { %p16_p4 = scmp.ge.s32.totalorder %s19_s30, 4  }
 0x434   :  { %18 = sbr.rel (!%p16_p4) target bundleno = 1 (0x1), region = 89 }

// kernel: decoder_forward.5
= control target key start
LH: loop header
LB: loop body
LE: loop exit
PB: predicated region body
PF: predicated region fallthrough
CT: control target
= control target key end

     0   :  { %s662_s14 = smov 0   ;;  %s957_s0 = inlined_call_operand.vmem [shape: f32[2,8,1156], index: 0, kind: input, shape index: {}]   ;;  %s958_s1 = inlined_call_operand.vmem [shape: f32[8,1], index: 1, kind: input, shape index: {}]   ;;  %s959_s2 = inlined_call_operand.<no memory space> [shape: f32[1,1], index: 2, kind: input, shape index: {}]   ;;  %s960_s3 = inlined_call_operand.vmem [shape: f32[2,1,1156], index: 3, kind: output, shape index: {}]  }
   0x1   :  { %v8_v0 = vstv %s959_s2 }
   0x2   :  { %9 = vst [vmem:[#allocation2] sm:$0x1] %v8_v0 }
   0x3 LB: > { %s560_s15 = sadd.s32 4294967295, %s636_s14   ;;  %p564_p0 = scmp.ge.s32.totalorder %s636_s14, 1  ;;  %s636_s14 = sphi %s662_s14, %s15_s14  }
   0x4   : > { %p139_p1 = scmp.lt.s32.totalorder %s636_s14, 3 }
   0x6   : > { %p140_p2 = pnand %p564_p0, %p139_p1 }
   0x7   : > { %p162_p3 = scmp.lt.s32.totalorder (!%p140_p2), %s560_s15, 1 }
   0x8   : > { %143 = sbr.rel (%p140_p2) target bundleno = 204 (0xcc), region = 32 }
   0xd   : > { %v181_v1 = vld [vmem:[%s958_s1] sm:$0xff]  ;;  %v638_v2 = vmov 0   ;;  %s994_s15 = smov (!%p162_p3, %s560_s15), 1  ;;  %vm251_vm0 = vcmask 31744   ;;  %vm484_vm11 = vcmask 1040384  }
   0xe   : > { %589 = vset.pattern.permute.xlu0 %v638_v2  ;;  %v259_v3 = vld [vmem:[#allocation2] sm:$0x1]  ;;  %s578_s2 = smul.u32 80, %s994_s15 }
   0xf   : > { %184 = vperm.xlu0 %589, %v181_v1   ;;  %s579_s21 = smul.u32 10, %s994_s15 }
  0x10   : > { %s166_s20 = scalar_lea.vmem %s957_s0, %s578_s2 }
  0x11   : > { %v171_v4 = vld [vmem:[%s166_s20] sm:$0xff]  ;;  %v172_v5 = vld [vmem:[%s166_s20 + $0x8] sm:$0xff]  ;;  %v173_v6 = vld [vmem:[%s166_s20 + $0x10] sm:$0xff]  ;;  %s170_s24 = scalar_lea.vmem %s960_s3, %s579_s21 }
  0x12   : > { %v174_v7 = vld [vmem:[%s166_s20 + $0x18] sm:$0xff]  ;;  %v175_v8 = vld [vmem:[%s166_s20 + $0x20] sm:$0xff]  ;;  %v176_v9 = vld [vmem:[%s166_s20 + $0x28] sm:$0xff] }
  0x13   : > { %v177_v10 = vld [vmem:[%s166_s20 + $0x30] sm:$0xff]  ;;  %v178_v11 = vld [vmem:[%s166_s20 + $0x38] sm:$0xff]  ;;  %v179_v13 = vld [vmem:[%s166_s20 + $0x40] sm:$0xff] }
  0x14   : > { %v180_v14 = vld [vmem:[%s166_s20 + $0x48] sm:$0xff] }
  0x17   : > { %262 = vperm.xlu0 %589, %v259_v3  }
  0x81   : > { %v185_v12 = vpop.permute.xlu0 %184 }
  0x82   : > { %v187_v15 = vmul.f32 %v185_v12, %v171_v4  ;;  %v188_v16 = vmul.f32 %v185_v12, %v172_v5  ;;  %v189_v17 = vmul.f32 %v185_v12, %v173_v6  ;;  %v190_v18 = vmul.f32 %v185_v12, %v174_v7 }
  0x83   : > { %v191_v19 = vmul.f32 %v185_v12, %v175_v8  ;;  %v192_v20 = vmul.f32 %v185_v12, %v176_v9  ;;  %v193_v21 = vmul.f32 %v185_v12, %v177_v10  ;;  %v194_v22 = vmul.f32 %v185_v12, %v178_v11 }
  0x84   : > { %v195_v23 = vmul.f32 %v185_v12, %v179_v13  ;;  %v196_v24 = vmul.f32 %v185_v12, %v180_v14  ;;  %v197_v25 = vrot.slane %v187_v15, 4  ;;  %v203_v26 = vrot.slane %v188_v16, 4 }
  0x85   : > { %v209_v27 = vrot.slane %v189_v17, 4  ;;  %v215_v28 = vrot.slane %v190_v18, 4  ;;  %v221_v29 = vrot.slane %v191_v19, 4  ;;  %v227_v30 = vrot.slane %v192_v20, 4 }
  0x86   : > { %v198_v31 = vadd.f32 %v197_v25, %v187_v15  ;;  %v204_v32 = vadd.f32 %v203_v26, %v188_v16  ;;  %v233_v33 = vrot.slane %v193_v21, 4  ;;  %v239_v34 = vrot.slane %v194_v22, 4 }
  0x87   : > { %v210_v35 = vadd.f32 %v209_v27, %v189_v17  ;;  %v216_v36 = vadd.f32 %v215_v28, %v190_v18  ;;  %v222_v37 = vadd.f32 %v221_v29, %v191_v19  ;;  %v228_v38 = vadd.f32 %v227_v30, %v192_v20 }
  0x88   : > { %v199_v39 = vrot.slane %v198_v31, 2  ;;  %v205_v40 = vrot.slane %v204_v32, 2  ;;  %v234_v41 = vadd.f32 %v233_v33, %v193_v21  ;;  %v240_v42 = vadd.f32 %v239_v34, %v194_v22 }
  0x89   : > { %v211_v43 = vrot.slane %v210_v35, 2  ;;  %v217_v44 = vrot.slane %v216_v36, 2  ;;  %v223_v45 = vrot.slane %v222_v37, 2  ;;  %v229_v46 = vrot.slane %v228_v38, 2  ;;  %v263_v0 = vpop.permute.xlu0 %262 }
  0x8a   : > { %v200_v47 = vadd.f32 %v199_v39, %v198_v31  ;;  %v206_v48 = vadd.f32 %v205_v40, %v204_v32  ;;  %v235_v49 = vrot.slane %v234_v41, 2  ;;  %v241_v50 = vrot.slane %v240_v42, 2 }
  0x8b   : > { %v212_v51 = vadd.f32 %v211_v43, %v210_v35  ;;  %v218_v52 = vadd.f32 %v217_v44, %v216_v36  ;;  %v224_v53 = vadd.f32 %v223_v45, %v222_v37  ;;  %v230_v54 = vadd.f32 %v229_v46, %v228_v38 }
  0x8c   : > { %v201_v55 = vrot.slane %v200_v47, 1  ;;  %v207_v56 = vrot.slane %v206_v48, 1  ;;  %v236_v57 = vadd.f32 %v235_v49, %v234_v41  ;;  %v242_v58 = vadd.f32 %v241_v50, %v240_v42 }
  0x8d   : > { %v213_v59 = vrot.slane %v212_v51, 1  ;;  %v219_v60 = vrot.slane %v218_v52, 1  ;;  %v225_v61 = vrot.slane %v224_v53, 1  ;;  %v231_v62 = vrot.slane %v230_v54, 1 }
  0x8e   : > { %v237_v63 = vrot.slane %v236_v57, 1  ;;  %v202_v1 = vadd.f32 %v201_v55, %v200_v47  ;;  %v208_v2 = vadd.f32 %v207_v56, %v206_v48  ;;  %v243_v4 = vrot.slane %v242_v58, 1 }
  0x8f   : > { %v214_v3 = vadd.f32 %v213_v59, %v212_v51  ;;  %v220_v5 = vadd.f32 %v219_v60, %v218_v52  ;;  %v226_v6 = vadd.f32 %v225_v61, %v224_v53  ;;  %v245_v7 = vrot.slane %v195_v23, 4 }
  0x90   : > { %v252_v8 = vsel %vm251_vm0, %v196_v24, 0.0  ;;  %v232_v9 = vadd.f32 %v231_v62, %v230_v54  ;;  %v265_v11 = vperm.slane %v263_v0, 0  ;;  %v238_v12 = vadd.f32 %v237_v63, %v236_v57 }
  0x91   : > { %v253_v10 = vrot.slane %v252_v8, 4  ;;  %v246_v13 = vadd.f32 %v245_v7, %v195_v23  ;;  %v244_v18 = vadd.f32 %v243_v4, %v242_v58  ;;  %v502_v62 = vlaneseq }
  0x92   : > { %v266_v15 = vadd.f32 %v265_v11, %v202_v1  ;;  %v267_v16 = vadd.f32 %v265_v11, %v208_v2  ;;  %v268_v17 = vadd.f32 %v265_v11, %v214_v3  ;;  %v269_v20 = vadd.f32 %v265_v11, %v220_v5 }
  0x93   : > { %v254_v14 = vadd.f32 %v253_v10, %v252_v8  ;;  %v247_v19 = vrot.slane %v246_v13, 2  ;;  %v270_v21 = vadd.f32 %v265_v11, %v226_v6  ;;  %v271_v25 = vadd.f32 %v265_v11, %v232_v9 }
  0x94   : > { %v566_v26 = vmul.f32 -1.442695, %v266_v15  ;;  %v567_v28 = vmul.f32 -1.442695, %v267_v16  ;;  %v568_v29 = vmul.f32 -1.442695, %v268_v17  ;;  %v272_v31 = vadd.f32 %v265_v11, %v238_v12 }
  0x95   : > { %v255_v22 = vrot.slane %v254_v14, 2  ;;  %v248_v27 = vadd.f32 %v247_v19, %v246_v13  ;;  %v569_v24 = vmul.f32 -1.442695, %v269_v20  ;;  %v570_v32 = vmul.f32 -1.442695, %v270_v21 }
  0x96   : > { %590 = vpow2.f32 %v566_v26  ;;  %v273_v33 = vadd.f32 %v265_v11, %v244_v18  ;;  %v571_v35 = vmul.f32 -1.442695, %v271_v25  ;;  %v572_v38 = vmul.f32 -1.442695, %v272_v31 }
  0x97   : > { %v256_v30 = vadd.f32 %v255_v22, %v254_v14  ;;  %v249_v23 = vrot.slane %v248_v27, 1  ;;  %592 = vpow2.f32 %v567_v28 }
  0x98   : > { %594 = vpow2.f32 %v568_v29  ;;  %v573_v40 = vmul.f32 -1.442695, %v273_v33 }
  0x99   : > { %v257_v34 = vrot.slane %v256_v30, 1  ;;  %v250_v36 = vadd.f32 %v249_v23, %v248_v27  ;;  %596 = vpow2.f32 %v569_v24 }
  0x9a   : > { %598 = vpow2.f32 %v570_v32 }
  0x9b   : > { %v258_v37 = vadd.f32 %v257_v34, %v256_v30  ;;  %v274_v39 = vadd.f32 %v265_v11, %v250_v36  ;;  %600 = vpow2.f32 %v571_v35 }
  0x9c   : > { %v591_v41 = vpop.eup %590  ;;  %602 = vpow2.f32 %v572_v38 }
  0x9d   : > { %v275_v42 = vadd.f32 %v265_v11, %v258_v37  ;;  %v593_v43 = vpop.eup %592  ;;  %v574_v44 = vmul.f32 -1.442695, %v274_v39  ;;  %v680_v45 = vadd.f32 1.0, %v591_v41  ;;  %604 = vpow2.f32 %v573_v40 }
  0x9e   : > { %v595_v46 = vpop.eup %594  ;;  %v682_v47 = vadd.f32 1.0, %v593_v43 }
  0x9f   : > { %v597_v48 = vpop.eup %596  ;;  %v684_v49 = vadd.f32 1.0, %v595_v46  ;;  %606 = vpow2.f32 %v574_v44  ;;  %v575_v51 = vmul.f32 -1.442695, %v275_v42  ;;  %v327_v60 = vand.u32 2147483648, %v680_v45 }
  0xa0   : > { %v599_v50 = vpop.eup %598  ;;  %v686_v52 = vadd.f32 1.0, %v597_v48  ;;  %608 = vrcp.f32 %v680_v45  ;;  %v342_v0 = vand.u32 2147483648, %v682_v47  ;;  %v325_v2 = vand.u32 2147483647, %v680_v45 }
  0xa1   : > { %v601_v53 = vpop.eup %600  ;;  %v689_v54 = vadd.f32 1.0, %v599_v50  ;;  %610 = vrcp.f32 %v682_v47  ;;  %v340_v4 = vand.u32 2147483647, %v682_v47  ;;  %vm321_vm1 = vweird.f32 %v680_v45 }
  0xa2   : > { %612 = vrcp.f32 %v684_v49  ;;  %v603_v55 = vpop.eup %602  ;;  %v693_v57 = vadd.f32 1.0, %v601_v53  ;;  %v357_v8 = vand.u32 2147483648, %v684_v49  ;;  %v372_v9 = vand.u32 2147483648, %v686_v52 }
  0xa3   : > { %614 = vpow2.f32 %v575_v51  ;;  %v605_v56 = vpop.eup %604  ;;  %v719_v11 = vadd.f32 1.0, %v603_v55  ;;  %v328_v13 = vor.u32 1.1754944e-38, %v327_v60  ;;  %vm336_vm2 = vweird.f32 %v682_v47 }
  0xa4   : > { %616 = vrcp.f32 %v686_v52  ;;  %v721_v12 = vadd.f32 1.0, %v605_v56  ;;  %v727_v17 = vor.u32 1.1754944e-38, %v342_v0  ;;  %vm351_vm3 = vweird.f32 %v684_v49 }
  0xa5   : > { %v607_v58 = vpop.eup %606  ;;  %618 = vrcp.f32 %v689_v54  ;;  %v355_v21 = vand.u32 2147483647, %v684_v49  ;;  %v370_v22 = vand.u32 2147483647, %v686_v52  ;;  %vm740_vm4 = vcmp.eq.f32.partialorder %v325_v2, 8.507059e+37 }
  0xa6   : > { %v697_v59 = vpop.eup %608  ;;  %620 = vrcp.f32 %v693_v57  ;;  %v731_v20 = vadd.f32 1.0, %v607_v58  ;;  %v744_v28 = vor.u32 1.1754944e-38, %v357_v8  ;;  %vm366_vm5 = vweird.f32 %v686_v52 }
  0xa7   : > { %v700_v61 = vpop.eup %610  ;;  %v317_v63 = vmul.f32 %v697_v59, %v680_v45  ;;  %v747_v24 = vor.u32 1.1754944e-38, %v372_v9  ;;  %vm322_vm6 = vweird.f32 %v697_v59  ;;  %622 = vrcp.f32 %v719_v11 }
  0xa8   : > { %v705_v1 = vpop.eup %612  ;;  %v332_v3 = vmul.f32 %v700_v61, %v682_v47  ;;  %v385_v34 = vand.u32 2147483647, %v689_v54  ;;  %vm381_vm7 = vweird.f32 %v689_v54  ;;  %v387_v38 = vand.u32 2147483648, %v689_v54  ;;  %vm778_vm12 = vmor %vm321_vm1, %vm322_vm6 }
  0xa9   : > { %v615_v5 = vpop.eup %614  ;;  %v318_v6 = vsub.f32 1.0, %v317_v63  ;;  %v347_v7 = vmul.f32 %v705_v1, %v684_v49  ;;  %vm337_vm8 = vweird.f32 %v700_v61  ;;  %vm764_vm9 = vcmp.eq.f32.partialorder %v340_v4, 8.507059e+37 }
  0xaa   : > { %v717_v10 = vpop.eup %616  ;;  %v333_v14 = vsub.f32 1.0, %v332_v3  ;;  %v738_v26 = vadd.f32 1.0, %v615_v5  ;;  %vm768_vm10 = vcmp.eq.f32.partialorder %v355_v21, 8.507059e+37  ;;  %v400_v42 = vand.u32 2147483647, %v693_v57  ;;  %vm806_vm1 = vmor %vm336_vm2, %vm337_vm8 }
  0xab   : > { %v723_v15 = vpop.eup %618  ;;  %v319_v16 = vmul.f32 %v697_v59, %v318_v6  ;;  %v348_v18 = vsub.f32 1.0, %v347_v7  ;;  %v362_v19 = vmul.f32 %v717_v10, %v686_v52  ;;  %vm352_vm13 = vweird.f32 %v705_v1 }
  0xac   : > { %v377_v25 = vmul.f32 %v723_v15, %v689_v54  ;;  %v749_v30 = vpop.eup %620  ;;  %v334_v31 = vmul.f32 %v700_v61, %v333_v14  ;;  %vm367_vm14 = vweird.f32 %v717_v10  ;;  %vm785_vm15 = vcmp.eq.f32.partialorder %v370_v22, 8.507059e+37 }
  0xad   : > { %v363_v29 = vsub.f32 1.0, %v362_v19  ;;  %v320_v23 = vadd.f32 %v697_v59, %v319_v16  ;;  %v349_v33 = vmul.f32 %v705_v1, %v348_v18  ;;  %v392_v35 = vmul.f32 %v749_v30, %v693_v57  ;;  %v800_v55 = vpop.eup %622 }
  0xae   : > { %v378_v32 = vsub.f32 1.0, %v377_v25  ;;  %v335_v44 = vadd.f32 %v700_v61, %v334_v31  ;;  %v402_v48 = vand.u32 2147483648, %v693_v57  ;;  %vm794_vm0 = vcmp.eq.f32.partialorder %v385_v34, 8.507059e+37 }
  0xaf   : > { %v364_v36 = vmul.f32 %v717_v10, %v363_v29  ;;  %v393_v41 = vsub.f32 1.0, %v392_v35  ;;  %v324_v45 = vsel %vm778_vm12, %v697_v59, %v320_v23  ;;  %v350_v50 = vadd.f32 %v705_v1, %v349_v33  ;;  %vm817_vm12 = vmor %vm351_vm3, %vm352_vm13 }
  0xb0   : > { %v379_v37 = vmul.f32 %v723_v15, %v378_v32  ;;  %624 = vrcp.f32 %v721_v12  ;;  %vm382_vm6 = vweird.f32 %v723_v15  ;;  %v388_v60 = vor.u32 1.1754944e-38, %v387_v38  ;;  %vm837_vm3 = vmor %vm366_vm5, %vm367_vm14 }
  0xb1   : > { %v394_v53 = vmul.f32 %v749_v30, %v393_v41  ;;  %v365_v58 = vadd.f32 %v717_v10, %v364_v36  ;;  %vm823_vm8 = vcmp.eq.f32.partialorder %v400_v42, 8.507059e+37  ;;  %v407_v2 = vmul.f32 %v800_v55, %v719_v11 }
  0xb2   : > { %v380_v59 = vadd.f32 %v723_v15, %v379_v37  ;;  %v831_v3 = vsel %vm740_vm4, %v328_v13, %v324_v45  ;;  %v403_v4 = vor.u32 1.1754944e-38, %v402_v48  ;;  %vm411_vm13 = vweird.f32 %v719_v11  ;;  %vm853_vm4 = vmor %vm381_vm7, %vm382_vm6 }
  0xb3   : > { %v395_v47 = vadd.f32 %v749_v30, %v394_v53  ;;  %626 = vrcp.f32 %v731_v20  ;;  %vm486_vm2 = vcmask 1042434   ;;  %v339_v5 = vsel %vm806_vm1, %v700_v61, %v335_v44 }
  0xb4   : > { %v354_v6 = vsel %vm817_vm12, %v705_v1, %v350_v50  ;;  %v408_v7 = vsub.f32 1.0, %v407_v2  ;;  %v415_v8 = vand.u32 2147483647, %v719_v11  ;;  %v369_v9 = vsel %vm837_vm3, %v717_v10, %v365_v58 }
  0xb5   : > { %v384_v61 = vsel %vm853_vm4, %v723_v15, %v380_v59  ;;  %vm983_vm5 = vweird.f32 %v749_v30  ;;  %vm984_vm14 = vweird.f32 %v693_v57  ;;  %v417_v1 = vand.u32 2147483648, %v719_v11 }
  0xb6   : > { %vm868_vm1 = vmor %vm984_vm14, %vm983_vm5  ;;  %628 = vrcp.f32 %v738_v26  ;;  %v625_v13 = vpop.eup %624  ;;  %vm490_vm7 = vcmask 1044484   ;;  %v409_v14 = vmul.f32 %v800_v55, %v408_v7  ;;  %vm412_vm6 = vweird.f32 %v800_v55 }
  0xb7   : > { %v399_v10 = vsel %vm868_vm1, %v749_v30, %v395_v47  ;;  %v430_v57 = vand.u32 2147483647, %v721_v12  ;;  %vm488_vm12 = vcmask 1041408   ;;  %v344_v15 = vsel %vm764_vm9, %v727_v17, %v339_v5 }
  0xb8   : > { %v359_v16 = vsel %vm768_vm10, %v744_v28, %v354_v6  ;;  %v422_v18 = vmul.f32 %v625_v13, %v721_v12  ;;  %vm426_vm3 = vweird.f32 %v721_v12  ;;  %vm492_vm4 = vcmask 1046534   ;;  %vm413_vm10 = vmor %vm411_vm13, %vm412_vm6 }
  0xb9   : > { %v374_v19 = vsel %vm785_vm15, %v747_v24, %v369_v9  ;;  %v410_v21 = vadd.f32 %v800_v55, %v409_v14  ;;  %vm892_vm5 = vcmp.eq.f32.partialorder %v415_v8, 8.507059e+37  ;;  %v432_v17 = vand.u32 2147483648, %v721_v12  ;;  %v897_v25 = vpop.eup %626 }
  0xba   : > { %vm494_vm9 = vcmask 1045508   ;;  %v389_v27 = vsel %vm794_vm0, %v388_v60, %v384_v61  ;;  %v404_v28 = vsel %vm823_vm8, %v403_v4, %v399_v10  ;;  %v418_v29 = vor.u32 1.1754944e-38, %v417_v1 }
  0xbb   : > { %v423_v24 = vsub.f32 1.0, %v422_v18  ;;  %vm496_vm15 = vcmask 1043456   ;;  %v414_v30 = vsel %vm413_vm10, %v800_v55, %v410_v21  ;;  %vm427_vm14 = vweird.f32 %v625_v13 }
  0xbc   : > { %vm908_vm1 = vcmp.eq.f32.partialorder %v430_v57, 8.507059e+37  ;;  %v437_v32 = vmul.f32 %v897_v25, %v731_v20  ;;  %v629_v23 = vpop.eup %628  ;;  %v476_v34 = vrot.slane %v344_v15, 7  ;;  %v477_v35 = vrot.slane %v359_v16, 6  ;;  %vm428_vm0 = vmor %vm426_vm3, %vm427_vm14 }
  0xbd   : > { %v424_v33 = vmul.f32 %v625_v13, %v423_v24  ;;  %v478_v11 = vrot.slane %v374_v19, 5  ;;  %v419_v36 = vsel %vm892_vm5, %v418_v29, %v414_v30  ;;  %v433_v37 = vor.u32 1.1754944e-38, %v432_v17 }
  0xbe   : > { %v438_v38 = vsub.f32 1.0, %v437_v32  ;;  %v452_v39 = vmul.f32 %v629_v23, %v738_v26  ;;  %v460_v41 = vand.u32 2147483647, %v738_v26  ;;  %v479_v42 = vrot.slane %v389_v27, 4 }
  0xbf   : > { %v425_v40 = vadd.f32 %v625_v13, %v424_v33  ;;  %v480_v43 = vrot.slane %v404_v28, 3  ;;  %vm442_vm8 = vweird.f32 %v897_v25  ;;  %v462_v48 = vand.u32 2147483648, %v738_v26 }
  0xc0   : > { %v439_v44 = vmul.f32 %v897_v25, %v438_v38  ;;  %v453_v46 = vsub.f32 1.0, %v452_v39  ;;  %v481_v50 = vrot.slane %v419_v36, 2  ;;  %v485_v51 = vsel %vm484_vm11, %v831_v3, %v476_v34 }
  0xc1   : > { %v429_v45 = vsel %vm428_vm0, %v625_v13, %v425_v40  ;;  %v487_v53 = vsel %vm486_vm2, %v477_v35, %v478_v11  ;;  %vm457_vm13 = vweird.f32 %v629_v23  ;;  %vm441_vm6 = vweird.f32 %v731_v20 }
  0xc2   : > { %v434_v55 = vsel %vm908_vm1, %v433_v37, %v429_v45  ;;  %v440_v12 = vadd.f32 %v897_v25, %v439_v44  ;;  %v454_v56 = vmul.f32 %v629_v23, %v453_v46  ;;  %v447_v58 = vand.u32 2147483648, %v731_v20  ;;  %vm936_vm3 = vmor %vm441_vm6, %vm442_vm8 }
  0xc3   : > { %v482_v59 = vrot.slane %v434_v55, 1  ;;  %v491_v60 = vsel %vm490_vm7, %v479_v42, %v480_v43  ;;  %v445_v47 = vand.u32 2147483647, %v731_v20  ;;  %vm456_vm2 = vweird.f32 %v738_v26 }
  0xc4   : > { %v455_v0 = vadd.f32 %v629_v23, %v454_v56  ;;  %v489_v2 = vsel %vm488_vm12, %v485_v51, %v487_v53  ;;  %vm458_vm5 = vmor %vm456_vm2, %vm457_vm13  ;;  %v463_v3 = vor.u32 1.1754944e-38, %v462_v48  ;;  %v444_v4 = vsel %vm936_vm3, %v897_v25, %v440_v12 }
  0xc5   : > { %v493_v49 = vsel %vm492_vm4, %v481_v50, %v482_v59  ;;  %vm461_vm7 = vcmp.eq.f32.partialorder %v460_v41, 8.507059e+37  ;;  %v448_v6 = vor.u32 1.1754944e-38, %v447_v58  ;;  %vm504_vm12 = vcmp.lt.s32.totalorder %v502_v62, 132 }
  0xc6   : > { %v459_v5 = vsel %vm458_vm5, %v629_v23, %v455_v0  ;;  %v495_v20 = vsel %vm494_vm9, %v491_v60, %v493_v49  ;;  %vm446_vm10 = vcmp.eq.f32.partialorder %v445_v47, 8.507059e+37 }
  0xc7   : > { %v464_v26 = vsel %vm461_vm7, %v463_v3, %v459_v5  ;;  %v497_v52 = vsel %vm496_vm15, %v489_v2, %v495_v20  ;;  %v449_v8 = vsel %vm446_vm10, %v448_v6, %v444_v4 }
  0xc8   : > { %v483_v7 = vrot.slane %v464_v26, 7  ;;  %501 = vst [vmem:[%s170_s24] sm:$0xff] %v497_v52 }
  0xca   : > { %v498_v9 = vsel %vm484_vm11, %v449_v8, %v483_v7 }
  0xcb   : > { %506 = vst.msk [vmem:[%s170_s24 + $0x8] sm:$0x3] %vm504_vm12, %v498_v9 }
  0xcc PF: > { %s15_s14 = sadd.s32 1, %s636_s14  }
  0xcd   : > { %p12_p4 = scmp.ge.s32.totalorder %s15_s14, 4  }
  0xcf   :  { %14 = sbr.rel (!%p12_p4) target bundleno = 3 (0x3), region = 62 }

// kernel: decoder_forward.4
= control target key start
LH: loop header
LB: loop body
LE: loop exit
PB: predicated region body
PF: predicated region fallthrough
CT: control target
= control target key end

     0   :  { %s4132_s30 = smov 0   ;;  %s6686_s0 = inlined_call_operand.vmem [shape: f32[2,16,1156], index: 0, kind: input, shape index: {}]   ;;  %s6687_s1 = inlined_call_operand.vmem [shape: f32[2,8,1156], index: 1, kind: input, shape index: {}]   ;;  %s6688_s2 = inlined_call_operand.vmem [shape: f32[1,1156], index: 2, kind: input, shape index: {}]   ;;  %s6689_s3 = inlined_call_operand.vmem [shape: f32[8,216], index: 3, kind: input, shape index: {}]   ;;  %s6690_s4 = inlined_call_operand.vmem [shape: f32[8,1], index: 4, kind: input, shape index: {}]   ;;  %s6691_s5 = inlined_call_operand.vmem [shape: f32[8,1], index: 5, kind: input, shape index: {}]   ;;  %s6692_s6 = inlined_call_operand.vmem [shape: f32[8,72], index: 6, kind: input, shape index: {}]   ;;  %s6693_s7 = inlined_call_operand.vmem [shape: f32[8,1], index: 7, kind: input, shape index: {}]   ;;  %s6694_s8 = inlined_call_operand.vmem [shape: f32[8,1], index: 8, kind: input, shape index: {}]   ;;  %s6695_s9 = inlined_call_operand.vmem [shape: f32[2,8,1156], index: 9, kind: output, shape index: {}]  }
   0x1 LB: > { %s3040_s10 = sadd.s32 4294967295, %s4070_s30   ;;  %p3044_p0 = scmp.ge.s32.totalorder %s4070_s30, 1  ;;  %s4070_s30 = sphi %s4132_s30, %s19_s30  }
   0x2   : > { %p297_p1 = scmp.lt.s32.totalorder %s4070_s30, 3 }
   0x4   : > { %p298_p2 = pnand %p3044_p0, %p297_p1 }
   0x6   : > { %301 = sbr.rel (%p298_p2) target bundleno = 1381 (0x565), region = 56 }
   0xb   : > { %p338_p3 = scmp.lt.s32.totalorder %s3040_s10, 1  ;;  %s4072_s15 = smov 35   ;;  %vm445_vm0 = vcmask 285696   ;;  %vm486_vm1 = vcmask 318464   ;;  %vm6881_vm2 = vcmask 1039360   ;;  %vm6883_vm3 = vcmask 769024  }
   0xc   : > { %s4073_s20 = smov 127   ;;  %s4074_s21 = smov 126   ;;  %vm6882_vm4 = vcmask 1031168   ;;  %vm6884_vm5 = vcmask 760832   ;;  %vm900_vm6 = vcmask 752640   ;;  %vm979_vm7 = vcmask 490496   ;;  %vm5087_vm9 = vmneg %vm445_vm0 }
   0xd   : > { %s7227_s10 = smov (!%p338_p3, %s3040_s10), 1  ;;  %s4075_s22 = smov 94   ;;  %vm1058_vm8 = vcmask 482304   ;;  %vm1137_vm10 = vcmask 474112   ;;  %vm1492_vm11 = vcmask 719872  }
   0xe   : > { %s3102_s11 = smul.u32 160, %s7227_s10  ;;  %s4076_s23 = smov 93  }
   0xf   : > { %s3103_s16 = smul.u32 80, %s7227_s10  ;;  %s4077_s24 = smov 92  }
  0x10   : > { %s4146_s14 = scalar_lea.vmem %s6686_s0, %s3102_s11  ;;  %s4078_s25 = smov 60  }
  0x11   : > { %v353_v0 = vld [vmem:[%s4146_s14] sm:$0xff]  ;;  %v356_v1 = vld [vmem:[%s4146_s14 + $0x18] sm:$0xff]  ;;  %v354_v4 = vld [vmem:[%s4146_s14 + $0x8] sm:$0xff]  ;;  %s347_s19 = scalar_lea.vmem %s6687_s1, %s3103_s16  ;;  %s4079_s26 = smov 59  }
  0x12   : > { %v357_v2 = vld [vmem:[%s4146_s14 + $0x20] sm:$0xff]  ;;  %405 = vrot.lane.b32.xlu0 %v353_v0, %s4072_s15  ;;  %v355_v5 = vld [vmem:[%s4146_s14 + $0x10] sm:$0xff]  ;;  %v360_v6 = vld [vmem:[%s4146_s14 + $0x38] sm:$0xff]  ;;  %s4080_s27 = smov 58  }
  0x13   : > { %v3127_v3 = vpack.i.bf16 %v357_v2, %v356_v1  ;;  %v364_v7 = vld [vmem:[%s4146_s14 + $0x58] sm:$0xff]  ;;  %v358_v9 = vld [vmem:[%s4146_s14 + $0x28] sm:$0xff]  ;;  %v359_v10 = vld [vmem:[%s4146_s14 + $0x30] sm:$0xff]  ;;  %v3122_v11 = vpack.i.bf16 %v355_v5, %v354_v4 }
  0x14   : > { %v3137_v8 = vpack.i.bf16 %v364_v7, %v360_v6  ;;  %v3132_v12 = vpack.i.bf16 %v359_v10, %v358_v9  ;;  %v361_v13 = vld [vmem:[%s4146_s14 + $0x40] sm:$0xff]  ;;  %v362_v14 = vld [vmem:[%s4146_s14 + $0x48] sm:$0xff]  ;;  %v363_v17 = vld [vmem:[%s4146_s14 + $0x50] sm:$0xff] }
  0x15   : > { %3128 = vrot.lane.b32.xlu1 %v3127_v3, %s4072_s15  ;;  %v365_v15 = vld [vmem:[%s4146_s14 + $0x60] sm:$0xff]  ;;  %v366_v16 = vld [vmem:[%s4146_s14 + $0x68] sm:$0xff]  ;;  %v367_v19 = vld [vmem:[%s4146_s14 + $0x70] sm:$0xff] }
  0x16   : > { %3138 = vrot.lane.b32.xlu2 %v3137_v8, %s4072_s15  ;;  %v3142_v18 = vpack.i.bf16 %v366_v16, %v365_v15  ;;  %v368_v20 = vld [vmem:[%s4146_s14 + $0x78] sm:$0xff]  ;;  %v369_v21 = vld [vmem:[%s4146_s14 + $0x80] sm:$0xff]  ;;  %v370_v22 = vld [vmem:[%s4146_s14 + $0x88] sm:$0xff] }
  0x17   : > { %v3147_v23 = vpack.i.bf16 %v368_v20, %v367_v19  ;;  %v3152_v24 = vpack.i.bf16 %v370_v22, %v369_v21  ;;  %v371_v25 = vld [vmem:[%s4146_s14 + $0x90] sm:$0xff]  ;;  %v372_v26 = vld [vmem:[%s4146_s14 + $0x98] sm:$0xff]  ;;  %v373_v27 = vld [vmem:[%s347_s19] sm:$0xff] }
  0x18   : > { %v376_v28 = vld [vmem:[%s347_s19 + $0x18] sm:$0xff]  ;;  %v377_v29 = vld [vmem:[%s347_s19 + $0x20] sm:$0xff]  ;;  %v374_v31 = vld [vmem:[%s347_s19 + $0x8] sm:$0xff] }
  0x19   : > { %v3162_v30 = vpack.i.bf16 %v377_v29, %v376_v28  ;;  %v375_v32 = vld [vmem:[%s347_s19 + $0x10] sm:$0xff]  ;;  %v378_v34 = vld [vmem:[%s347_s19 + $0x28] sm:$0xff]  ;;  %v380_v37 = vld [vmem:[%s347_s19 + $0x38] sm:$0xff] }
  0x1a   : > { %3123 = vrot.lane.b32.xlu0 %v3122_v11, %s4072_s15  ;;  %v3157_v33 = vpack.i.bf16 %v375_v32, %v374_v31  ;;  %v379_v35 = vld [vmem:[%s347_s19 + $0x30] sm:$0xff]  ;;  %v381_v38 = vld [vmem:[%s347_s19 + $0x40] sm:$0xff]  ;;  %v382_v39 = vld [vmem:[%s347_s19 + $0x48] sm:$0xff] }
  0x1b   : > { %v3167_v36 = vpack.i.bf16 %v379_v35, %v378_v34 }
  0x1d   : > { %3133 = vrot.lane.b32.xlu1 %v3132_v12, %s4072_s15 }
  0x1e   : > { %421 = vrot.lane.b32.xlu2 %v361_v13, %s4072_s15 }
  0x22   : > { %423 = vrot.lane.b32.xlu0 %v362_v14, %s4072_s15 }
  0x25   : > { %425 = vrot.lane.b32.xlu1 %v363_v17, %s4072_s15 }
  0x26   : > { %3143 = vrot.lane.b32.xlu2 %v3142_v18, %s4072_s15 }
  0x2a   : > { %3148 = vrot.lane.b32.xlu0 %v3147_v23, %s4072_s15 }
  0x2d   : > { %3153 = vrot.lane.b32.xlu1 %v3152_v24, %s4072_s15 }
  0x2e   : > { %441 = vrot.lane.b32.xlu2 %v371_v25, %s4072_s15 }
  0x32   : > { %443 = vrot.lane.b32.xlu0 %v372_v26, %s4072_s15 }
  0x35   : > { %499 = vrot.lane.b32.xlu1 %v373_v27, %s4072_s15 }
  0x36   : > { %3158 = vrot.lane.b32.xlu2 %v3157_v33, %s4072_s15 }
  0x3a   : > { %3163 = vrot.lane.b32.xlu0 %v3162_v30, %s4072_s15 }
  0x3d   : > { %3168 = vrot.lane.b32.xlu1 %v3167_v36, %s4072_s15 }
  0x3e   : > { %513 = vrot.lane.b32.xlu2 %v380_v37, %s4072_s15 }
  0x42   : > { %515 = vrot.lane.b32.xlu0 %v381_v38, %s4072_s15 }
  0x45   : > { %517 = vrot.lane.b32.xlu1 %v382_v39, %s4072_s15 }
  0x70   : > { %v4194_v40 = vpop.permute.xlu2 %3138 }
  0x71   : > { %v3140_v60 = vunpack.i.l.bf16 %v4194_v40  ;;  %v3141_v1 = vunpack.i.h.bf16 %v4194_v40 }
  0x78   : > { %v4198_v44 = vpop.permute.xlu2 %421 }
  0x79   : > { %v4353_v33 = vsel %vm445_vm0, %v3140_v60, %v4198_v44 }
  0x7a   : > { %6903 = vst [vmem:[#allocation20_spill] sm:$0xff] %v4353_v33 }
  0x80   : > { %v3144_v2 = vpop.permute.xlu2 %3143 }
  0x81   : > { %v3146_v7 = vunpack.i.h.bf16 %v3144_v2  ;;  %v3145_v8 = vunpack.i.l.bf16 %v3144_v2 }
  0x83   : > { %v4264_v11 = vsel %vm445_vm0, %v3141_v1, %v3145_v8  ;;  %v4267_v12 = vsel %vm445_vm0, %v3145_v8, %v3146_v7 }
  0x84   : > { %v4196_v41 = vpop.permute.xlu0 %405  ;;  %6892 = vst [vmem:[#allocation9_spill] sm:$0xff] %v4267_v12  ;;  %v4283_v21 = vpack.i.bf16 %v4267_v12, %v4264_v11 }
  0x85   : > { %v484_v50 = vsel %vm445_vm0, 0.0, %v4196_v41 }
  0x87   : > { %v3129_v42 = vpop.permute.xlu1 %3128 }
  0x88   : > { %v3130_v43 = vunpack.i.l.bf16 %v3129_v42  ;;  %v3131_v48 = vunpack.i.h.bf16 %v3129_v42  ;;  %v442_v24 = vpop.permute.xlu2 %441 }
  0x8a   : > { %v4220_v58 = vsel %vm445_vm0, %v3130_v43, %v3131_v48 }
  0x8b   : > { %6887 = vst [vmem:[#allocation4_spill] sm:$0xff] %v4220_v58 }
  0x8c   : > { %v3124_v45 = vpop.permute.xlu0 %3123 }
  0x8d   : > { %v3126_v46 = vunpack.i.h.bf16 %v3124_v45  ;;  %v3125_v47 = vunpack.i.l.bf16 %v3124_v45 }
  0x8f   : > { %v3134_v49 = vpop.permute.xlu1 %3133  ;;  %v4203_v51 = vsel %vm445_vm0, %v3126_v46, %v3130_v43  ;;  %v4207_v52 = vsel %vm445_vm0, %v4196_v41, %v3125_v47  ;;  %v4210_v53 = vsel %vm445_vm0, %v3125_v47, %v3126_v46 }
  0x90   : > { %6885 = vst [vmem:[#allocation2_spill] sm:$0xff] %v4203_v51  ;;  %v3135_v54 = vunpack.i.l.bf16 %v3134_v49  ;;  %v4214_v55 = vpack.i.bf16 %v4203_v51, %v4210_v53  ;;  %v4217_v56 = vpack.i.bf16 %v4207_v52, %v484_v50  ;;  %v3136_v57 = vunpack.i.h.bf16 %v3134_v49  ;;  %v4369_v36 = vpop.permute.xlu2 %3158 }
  0x91   : > { %6886 = vst [vmem:[#allocation3_spill] sm:$0xff] %v4210_v53 }
  0x92   : > { %v4223_v59 = vsel %vm445_vm0, %v3131_v48, %v3135_v54  ;;  %3178 = vrot.lane.b32.xlu0 %v4214_v55, %s4073_s20  ;;  %3173 = vrot.lane.b32.xlu2 %v4217_v56, %s4073_s20  ;;  %v4235_v63 = vsel %vm445_vm0, %v3136_v57, %v3140_v60  ;;  %v4238_v0 = vsel %vm445_vm0, %v3135_v54, %v3136_v57 }
  0x93   : > { %6888 = vst [vmem:[#allocation5_spill] sm:$0xff] %v4223_v59  ;;  %v4232_v61 = vpack.i.bf16 %v4223_v59, %v4220_v58  ;;  %v4255_v6 = vpack.i.bf16 %v4235_v63, %v4238_v0 }
  0x94   : > { %v424_v62 = vpop.permute.xlu0 %423  ;;  %6889 = vst [vmem:[#allocation6_spill] sm:$0xff] %v4235_v63 }
  0x95   : > { %6890 = vst [vmem:[#allocation7_spill] sm:$0xff] %v4238_v0  ;;  %3183 = vrot.lane.b32.xlu1 %v4232_v61, %s4073_s20  ;;  %v4301_v26 = vsel %vm445_vm0, %v4198_v44, %v424_v62 }
  0x96   : > { %6898 = vst [vmem:[#allocation15_spill] sm:$0xff] %v4301_v26  ;;  %v4314_v30 = vsel %vm486_vm1, %v4301_v26, 0.0 }
  0x97   : > { %v4243_v3 = vpop.permute.xlu1 %425  ;;  %6901 = vst [vmem:[#allocation18_spill] sm:$0xff] %v4314_v30  ;;  %v4357_v34 = vpack.i.bf16 %v4314_v30, %v4353_v33 }
  0x98   : > { %v4247_v4 = vsel %vm445_vm0, %v4243_v3, %v3141_v1  ;;  %v4251_v5 = vsel %vm445_vm0, 0.0, %v4243_v3  ;;  %v4381_v37 = vpop.permute.xlu2 %513 }
  0x99   : > { %6891 = vst [vmem:[#allocation8_spill] sm:$0xff] %v4251_v5  ;;  %v4261_v9 = vpack.i.bf16 %v4247_v4, %v4251_v5 }
  0x9a   : > { %3188 = vrot.lane.b32.xlu2 %v4255_v6, %s4073_s20 }
  0x9c   : > { %v3149_v10 = vpop.permute.xlu0 %3148 }
  0x9d   : > { %3193 = vrot.lane.b32.xlu1 %v4261_v9, %s4073_s20  ;;  %v3151_v13 = vunpack.i.h.bf16 %v3149_v10  ;;  %v3150_v14 = vunpack.i.l.bf16 %v3149_v10 }
  0x9f   : > { %v3154_v15 = vpop.permute.xlu1 %3153  ;;  %v4272_v16 = vsel %vm445_vm0, %v3146_v7, %v3150_v14  ;;  %v4275_v17 = vsel %vm445_vm0, %v3150_v14, %v3151_v13 }
  0xa0   : > { %6893 = vst [vmem:[#allocation10_spill] sm:$0xff] %v4272_v16  ;;  %v3156_v18 = vunpack.i.h.bf16 %v3154_v15  ;;  %v3155_v19 = vunpack.i.l.bf16 %v3154_v15  ;;  %v4279_v20 = vpack.i.bf16 %v4275_v17, %v4272_v16 }
  0xa1   : > { %6894 = vst [vmem:[#allocation11_spill] sm:$0xff] %v4275_v17 }
  0xa2   : > { %6895 = vst [vmem:[#allocation12_spill] sm:$0xff] %v4279_v20  ;;  %v4286_v22 = vsel %vm445_vm0, %v3151_v13, %v3155_v19  ;;  %v4289_v23 = vsel %vm445_vm0, %v3155_v19, %v3156_v18  ;;  %3203 = vrot.lane.b32.xlu0 %v4279_v20, %s4073_s20  ;;  %3198 = vrot.lane.b32.xlu2 %v4283_v21, %s4073_s20 }
  0xa3   : > { %6896 = vst [vmem:[#allocation13_spill] sm:$0xff] %v4286_v22  ;;  %v4297_v25 = vpack.i.bf16 %v4289_v23, %v4286_v22  ;;  %v4347_v32 = vsel %vm445_vm0, %v3156_v18, %v442_v24 }
  0xa4   : > { %6897 = vst [vmem:[#allocation14_spill] sm:$0xff] %v4289_v23  ;;  %v444_v27 = vpop.permute.xlu0 %443 }
  0xa5   : > { %v4304_v28 = vsel %vm445_vm0, %v442_v24, %v444_v27  ;;  %3208 = vrot.lane.b32.xlu1 %v4297_v25, %s4073_s20  ;;  %6902 = vst [vmem:[#allocation19_spill] sm:$0xff] %v4347_v32 }
  0xa6   : > { %6899 = vst [vmem:[#allocation16_spill] sm:$0xff] %v4304_v28  ;;  %v4310_v29 = vsel %vm486_vm1, %v4304_v28, 0.0 }
  0xa7   : > { %6900 = vst [vmem:[#allocation17_spill] sm:$0xff] %v4310_v29  ;;  %v4361_v35 = vpack.i.bf16 %v4310_v29, %v4347_v32  ;;  %v4385_v38 = vpop.permute.xlu1 %499 }
  0xa8   : > { %6904 = vst [vmem:[#allocation21_spill] sm:$0xff] %v4385_v38 }
  0xaa   : > { %3213 = vrot.lane.b32.xlu0 %v4217_v56, %s4074_s21  ;;  %3223 = vrot.lane.b32.xlu2 %v4232_v61, %s4074_s21 }
  0xac   : > { %v4395_v40 = vpop.permute.xlu0 %3163 }
  0xad   : > { %3218 = vrot.lane.b32.xlu1 %v4214_v55, %s4074_s21  ;;  %v3165_v16 = vunpack.i.l.bf16 %v4395_v40 }
  0xaf   : > { %v4401_v42 = vpop.permute.xlu1 %3168 }
  0xb2   : > { %3228 = vrot.lane.b32.xlu0 %v4255_v6, %s4074_s21  ;;  %3233 = vrot.lane.b32.xlu2 %v4261_v9, %s4074_s21 }
  0xb4   : > { %v4411_v44 = vpop.permute.xlu0 %515 }
  0xb5   : > { %3243 = vrot.lane.b32.xlu1 %v4279_v20, %s4074_s21 }
  0xb7   : > { %v4419_v48 = vpop.permute.xlu1 %517 }
  0xb8   : > { %v4729_v63 = vsel %vm445_vm0, %v4411_v44, %v4419_v48 }
  0xb9   : > { %6944 = vst [vmem:[#allocation61_spill] sm:$0xff] %v4729_v63 }
  0xba   : > { %3238 = vrot.lane.b32.xlu0 %v4283_v21, %s4074_s21  ;;  %3248 = vrot.lane.b32.xlu2 %v4297_v25, %s4074_s21 }
  0xbd   : > { %3253 = vrot.lane.b32.xlu1 %v4217_v56, %s4075_s22 }
  0xc2   : > { %3263 = vrot.lane.b32.xlu0 %v4232_v61, %s4075_s22  ;;  %3258 = vrot.lane.b32.xlu2 %v4214_v55, %s4075_s22 }
  0xc5   : > { %3268 = vrot.lane.b32.xlu1 %v4255_v6, %s4075_s22 }
  0xca   : > { %3273 = vrot.lane.b32.xlu0 %v4261_v9, %s4075_s22  ;;  %3283 = vrot.lane.b32.xlu2 %v4279_v20, %s4075_s22 }
  0xcd   : > { %3278 = vrot.lane.b32.xlu1 %v4283_v21, %s4075_s22 }
  0xd2   : > { %3288 = vrot.lane.b32.xlu0 %v4357_v34, %s4073_s20  ;;  %3293 = vrot.lane.b32.xlu2 %v4361_v35, %s4073_s20 }
  0xd5   : > { %3298 = vrot.lane.b32.xlu1 %v4357_v34, %s4074_s21 }
  0xda   : > { %3303 = vrot.lane.b32.xlu0 %v4361_v35, %s4074_s21  ;;  %3313 = vrot.lane.b32.xlu2 %v4357_v34, %s4075_s22 }
  0xdd   : > { %3318 = vrot.lane.b32.xlu1 %v4361_v35, %s4075_s22 }
  0xe2   : > { %3308 = vrot.lane.b32.xlu0 %v4297_v25, %s4075_s22  ;;  %3323 = vrot.lane.b32.xlu2 %v4217_v56, %s4076_s23 }
  0xe5   : > { %3333 = vrot.lane.b32.xlu1 %v4232_v61, %s4076_s23 }
  0xea   : > { %3328 = vrot.lane.b32.xlu0 %v4214_v55, %s4076_s23  ;;  %3338 = vrot.lane.b32.xlu2 %v4255_v6, %s4076_s23 }
  0xec   : > { %v4391_v39 = vpop.permute.xlu2 %3173 }
  0xed   : > { %3348 = vrot.lane.b32.xlu1 %v4261_v9, %s4076_s23 }
  0xf2   : > { %3343 = vrot.lane.b32.xlu0 %v4357_v34, %s4076_s23  ;;  %3353 = vrot.lane.b32.xlu2 %v4283_v21, %s4076_s23 }
  0xf4   : > { %v4403_v43 = vpop.permute.xlu2 %3188 }
  0xf5   : > { %6905 = vst [vmem:[#allocation22_spill] sm:$0xff] %v4403_v43  ;;  %3363 = vrot.lane.b32.xlu1 %v4297_v25, %s4076_s23 }
  0xfa   : > { %3358 = vrot.lane.b32.xlu0 %v4279_v20, %s4076_s23  ;;  %3368 = vrot.lane.b32.xlu2 %v4361_v35, %s4076_s23 }
  0xfc   : > { %v4413_v45 = vpop.permute.xlu2 %3198 }
  0xfd   : > { %3378 = vrot.lane.b32.xlu1 %v4214_v55, %s4077_s24  ;;  %v6697_v46 = vunpack.i.h.bf16 %v4413_v45  ;;  %v6700_v47 = vunpack.i.l.bf16 %v4413_v45 }
  0xff   : > { %v4426_v49 = vsel %vm6881_vm2, %v6700_v47, %v6697_v46 }
 0x100   : > { %6906 = vst [vmem:[#allocation23_spill] sm:$0xff] %v4426_v49 }
 0x102   : > { %3373 = vrot.lane.b32.xlu0 %v4217_v56, %s4077_s24  ;;  %3383 = vrot.lane.b32.xlu2 %v4232_v61, %s4077_s24 }
 0x104   : > { %v4432_v50 = vpop.permute.xlu0 %3178  ;;  %v4434_v54 = vpop.permute.xlu2 %3223 }
 0x105   : > { %6907 = vst [vmem:[#allocation24_spill] sm:$0xff] %v4434_v54  ;;  %v6696_v57 = vunpack.i.h.bf16 %v4432_v50  ;;  %v6699_v60 = vunpack.i.l.bf16 %v4432_v50  ;;  %3393 = vrot.lane.b32.xlu1 %v4357_v34, %s4077_s24 }
 0x107   : > { %v4440_v62 = vpop.permute.xlu1 %3183  ;;  %v4447_v1 = vsel %vm6881_vm2, %v6699_v60, %v6696_v57 }
 0x108   : > { %6908 = vst [vmem:[#allocation25_spill] sm:$0xff] %v4440_v62 }
 0x109   : > { %6909 = vst [vmem:[#allocation26_spill] sm:$0xff] %v4447_v1 }
 0x10a   : > { %3388 = vrot.lane.b32.xlu0 %v4255_v6, %s4077_s24  ;;  %3398 = vrot.lane.b32.xlu2 %v4261_v9, %s4077_s24 }
 0x10c   : > { %v4453_v2 = vpop.permute.xlu2 %3233 }
 0x10d   : > { %3408 = vrot.lane.b32.xlu1 %v4279_v20, %s4077_s24 }
 0x10f   : > { %v4457_v7 = vpop.permute.xlu1 %3193 }
 0x112   : > { %3403 = vrot.lane.b32.xlu0 %v4283_v21, %s4077_s24  ;;  %3413 = vrot.lane.b32.xlu2 %v4297_v25, %s4077_s24 }
 0x114   : > { %v4463_v8 = vpop.permute.xlu0 %3203  ;;  %v4465_v10 = vpop.permute.xlu2 %3248 }
 0x115   : > { %6910 = vst [vmem:[#allocation27_spill] sm:$0xff] %v4463_v8  ;;  %3423 = vrot.lane.b32.xlu1 %v4217_v56, %s4078_s25 }
 0x116   : > { %6911 = vst [vmem:[#allocation28_spill] sm:$0xff] %v4465_v10 }
 0x117   : > { %v4469_v13 = vpop.permute.xlu1 %3208 }
 0x118   : > { %6912 = vst [vmem:[#allocation29_spill] sm:$0xff] %v4469_v13 }
 0x11a   : > { %3418 = vrot.lane.b32.xlu0 %v4361_v35, %s4077_s24  ;;  %3428 = vrot.lane.b32.xlu2 %v4214_v55, %s4078_s25 }
 0x11c   : > { %v4475_v14 = vpop.permute.xlu0 %3213  ;;  %v4477_v15 = vpop.permute.xlu2 %3258 }
 0x11d   : > { %3438 = vrot.lane.b32.xlu1 %v4255_v6, %s4078_s25  ;;  %v6698_v18 = vunpack.i.h.bf16 %v4477_v15  ;;  %v6701_v19 = vunpack.i.l.bf16 %v4477_v15 }
 0x11f   : > { %v4483_v24 = vpop.permute.xlu1 %3218  ;;  %v4490_v27 = vsel %vm6883_vm3, %v6701_v19, %v6698_v18 }
 0x120   : > { %6913 = vst [vmem:[#allocation30_spill] sm:$0xff] %v4490_v27  ;;  %v6703_v31 = vunpack.i.h.bf16 %v4483_v24  ;;  %v6704_v57 = vunpack.i.l.bf16 %v4483_v24 }
 0x122   : > { %3433 = vrot.lane.b32.xlu0 %v4232_v61, %s4078_s25  ;;  %3443 = vrot.lane.b32.xlu2 %v4357_v34, %s4078_s25  ;;  %v4503_v46 = vsel %vm6882_vm4, %v6704_v57, %v6703_v31 }
 0x123   : > { %6914 = vst [vmem:[#allocation31_spill] sm:$0xff] %v4503_v46 }
 0x124   : > { %v4505_v18 = vpop.permute.xlu0 %3228  ;;  %v4507_v60 = vpop.permute.xlu2 %3283 }
 0x125   : > { %6915 = vst [vmem:[#allocation32_spill] sm:$0xff] %v4505_v18  ;;  %3453 = vrot.lane.b32.xlu1 %v4283_v21, %s4078_s25 }
 0x127   : > { %v4511_v47 = vpop.permute.xlu1 %3243 }
 0x128   : > { %6916 = vst [vmem:[#allocation33_spill] sm:$0xff] %v4511_v47 }
 0x12a   : > { %3448 = vrot.lane.b32.xlu0 %v4261_v9, %s4078_s25  ;;  %3458 = vrot.lane.b32.xlu2 %v4279_v20, %s4078_s25 }
 0x12c   : > { %v4517_v19 = vpop.permute.xlu0 %3238  ;;  %v4519_v26 = vpop.permute.xlu2 %3293 }
 0x12d   : > { %6917 = vst [vmem:[#allocation34_spill] sm:$0xff] %v4519_v26  ;;  %3468 = vrot.lane.b32.xlu1 %v4361_v35, %s4078_s25  ;;  %v6710_v31 = vunpack.i.h.bf16 %v4517_v19  ;;  %v6711_v57 = vunpack.i.l.bf16 %v4517_v19 }
 0x12f   : > { %v4525_v28 = vpop.permute.xlu1 %3253  ;;  %v4532_v59 = vsel %vm6882_vm4, %v6711_v57, %v6710_v31 }
 0x130   : > { %6918 = vst [vmem:[#allocation35_spill] sm:$0xff] %v4532_v59 }
 0x132   : > { %3463 = vrot.lane.b32.xlu0 %v4297_v25, %s4078_s25  ;;  %3473 = vrot.lane.b32.xlu2 %v4217_v56, %s4079_s26 }
 0x134   : > { %v4538_v26 = vpop.permute.xlu0 %3263  ;;  %v4540_v17 = vpop.permute.xlu2 %3313 }
 0x135   : > { %6919 = vst [vmem:[#allocation36_spill] sm:$0xff] %v4540_v17  ;;  %3483 = vrot.lane.b32.xlu1 %v4232_v61, %s4079_s26 }
 0x137   : > { %v4544_v43 = vpop.permute.xlu1 %3268 }
 0x138   : > { %6920 = vst [vmem:[#allocation37_spill] sm:$0xff] %v4544_v43 }
 0x13a   : > { %3478 = vrot.lane.b32.xlu0 %v4214_v55, %s4079_s26  ;;  %3488 = vrot.lane.b32.xlu2 %v4255_v6, %s4079_s26 }
 0x13c   : > { %v4550_v31 = vpop.permute.xlu0 %3273  ;;  %v4552_v57 = vpop.permute.xlu2 %3323 }
 0x13d   : > { %3498 = vrot.lane.b32.xlu1 %v4261_v9, %s4079_s26  ;;  %v3161_v9 = vunpack.i.h.bf16 %v4369_v36 }
 0x13f   : > { %v4556_v58 = vpop.permute.xlu1 %3278 }
 0x140   : > { %v6717_v17 = vunpack.i.h.bf16 %v4556_v58  ;;  %v6718_v53 = vunpack.i.l.bf16 %v4556_v58 }
 0x142   : > { %3493 = vrot.lane.b32.xlu0 %v4357_v34, %s4079_s26  ;;  %3503 = vrot.lane.b32.xlu2 %v4283_v21, %s4079_s26  ;;  %v4569_v6 = vsel %vm6883_vm3, %v6718_v53, %v6717_v17  ;;  %v4583_v21 = vsel %vm445_vm0, 0.0, %v4385_v38  ;;  %v4586_v17 = vsel %vm445_vm0, %v3161_v9, %v3165_v16  ;;  %v3160_v53 = vunpack.i.l.bf16 %v4369_v36 }
 0x143   : > { %6921 = vst [vmem:[#allocation38_spill] sm:$0xff] %v4569_v6 }
 0x144   : > { %v4573_v13 = vpop.permute.xlu0 %3288  ;;  %v4575_v1 = vpop.permute.xlu2 %3338  ;;  %v4602_v49 = vsel %vm445_vm0, %v3160_v53, %v3161_v9  ;;  %v4606_v36 = vsel %vm445_vm0, %v4385_v38, %v3160_v53 }
 0x145   : > { %6922 = vst [vmem:[#allocation39_spill] sm:$0xff] %v4573_v13  ;;  %3513 = vrot.lane.b32.xlu1 %v4297_v25, %s4079_s26  ;;  %v3527_v25 = vpack.i.bf16 %v4583_v21, %v4586_v17  ;;  %v3166_v13 = vunpack.i.h.bf16 %v4395_v40  ;;  %v6735_v6 = vunpack.i.l.bf16 %v4575_v1 }
 0x146   : > { %6923 = vst [vmem:[#allocation40_spill] sm:$0xff] %v4575_v1 }
 0x147   : > { %v4579_v34 = vpop.permute.xlu1 %3298  ;;  %6926 = vst [vmem:[#allocation43_spill] sm:$0xff] %v4602_v49  ;;  %v4619_v9 = vsel %vm445_vm0, %v3165_v16, %v3166_v13 }
 0x148   : > { %6924 = vst [vmem:[#allocation41_spill] sm:$0xff] %v4579_v34  ;;  %v3170_v34 = vunpack.i.l.bf16 %v4401_v42 }
 0x149   : > { %6927 = vst [vmem:[#allocation44_spill] sm:$0xff] %v4606_v36 }
 0x14a   : > { %3508 = vrot.lane.b32.xlu0 %v4279_v20, %s4079_s26  ;;  %3518 = vrot.lane.b32.xlu2 %v4361_v35, %s4079_s26  ;;  %v4622_v53 = vsel %vm445_vm0, %v3166_v13, %v3170_v34 }
 0x14b   : > { %6930 = vst [vmem:[#allocation47_spill] sm:$0xff] %v4622_v53 }
 0x14c   : > { %v4597_v18 = vpop.permute.xlu0 %3303  ;;  %v4599_v10 = vpop.permute.xlu2 %3353 }
 0x14d   : > { %6925 = vst [vmem:[#allocation42_spill] sm:$0xff] %v4597_v18  ;;  %3528 = vrot.lane.b32.xlu1 %v3527_v25, %s4073_s20  ;;  %v6724_v35 = vunpack.i.h.bf16 %v4599_v10  ;;  %v3355_v46 = vunpack.i.l.bf16 %v4599_v10  ;;  %v4626_v25 = vpack.i.bf16 %v4602_v49, %v4606_v36 }
 0x14f   : > { %v4611_v40 = vpop.permute.xlu1 %3318  ;;  %v4616_v18 = vsel %vm6884_vm5, %v3355_v46, %v6724_v35  ;;  %v4634_v35 = vpack.i.bf16 %v4622_v53, %v4619_v9 }
 0x150   : > { %6928 = vst [vmem:[#allocation45_spill] sm:$0xff] %v4611_v40  ;;  %v6730_v13 = vunpack.i.l.bf16 %v4611_v40 }
 0x151   : > { %6929 = vst [vmem:[#allocation46_spill] sm:$0xff] %v4616_v18 }
 0x152   : > { %3523 = vrot.lane.b32.xlu0 %v4626_v25, %s4073_s20  ;;  %3533 = vrot.lane.b32.xlu2 %v4217_v56, %s4080_s27 }
 0x154   : > { %v4636_v16 = vpop.permute.xlu0 %3308  ;;  %v4638_v43 = vpop.permute.xlu2 %3368 }
 0x155   : > { %6931 = vst [vmem:[#allocation48_spill] sm:$0xff] %v4636_v16  ;;  %3543 = vrot.lane.b32.xlu1 %v4634_v35, %s4073_s20  ;;  %v6731_v59 = vunpack.i.h.bf16 %v4636_v16 }
 0x156   : > { %6932 = vst [vmem:[#allocation49_spill] sm:$0xff] %v4638_v43 }
 0x157   : > { %v3334_v27 = vpop.permute.xlu1 %3333  ;;  %v4649_v56 = vsel %vm6883_vm3, %v6731_v59, %v6730_v13  ;;  %v3171_v13 = vunpack.i.h.bf16 %v4401_v42  ;;  %v6738_v59 = vunpack.i.h.bf16 %v4552_v57 }
 0x158   : > { %6933 = vst [vmem:[#allocation50_spill] sm:$0xff] %v4649_v56  ;;  %v3336_v18 = vunpack.i.h.bf16 %v3334_v27  ;;  %v3335_v49 = vunpack.i.l.bf16 %v3334_v27 }
 0x15a   : > { %3538 = vrot.lane.b32.xlu0 %v4214_v55, %s4080_s27  ;;  %3548 = vrot.lane.b32.xlu2 %v4232_v61, %s4080_s27  ;;  %v4657_v38 = vsel %vm6884_vm5, %v3335_v49, %v3336_v18  ;;  %v4662_v40 = vsel %vm6884_vm5, %v3336_v18, %v6735_v6 }
 0x15b   : > { %6934 = vst [vmem:[#allocation51_spill] sm:$0xff] %v4657_v38 }
 0x15c   : > { %6935 = vst [vmem:[#allocation52_spill] sm:$0xff] %v4662_v40  ;;  %v3329_v56 = vpop.permute.xlu0 %3328  ;;  %v4666_v27 = vpop.permute.xlu2 %3383 }
 0x15d   : > { %3558 = vrot.lane.b32.xlu1 %v4626_v25, %s4079_s26  ;;  %v3331_v55 = vunpack.i.h.bf16 %v3329_v56  ;;  %v3330_v61 = vunpack.i.l.bf16 %v3329_v56  ;;  %v3386_v16 = vunpack.i.h.bf16 %v4666_v27  ;;  %v3385_v38 = vunpack.i.l.bf16 %v4666_v27 }
 0x15e   : > { %v4690_v56 = vsel %vm445_vm0, %v3171_v13, %v4381_v37  ;;  %v4693_v27 = vsel %vm445_vm0, %v3170_v34, %v3171_v13  ;;  %v6745_v34 = vunpack.i.h.bf16 %v4575_v1 }
 0x15f   : > { %v4672_v36 = vpop.permute.xlu1 %3348  ;;  %v4677_v42 = vsel %vm6884_vm5, %v6738_v59, %v3330_v61  ;;  %v4680_v18 = vsel %vm6884_vm5, %v3331_v55, %v3335_v49  ;;  %v4683_v6 = vsel %vm900_vm6, %v3385_v38, %v3386_v16  ;;  %v4686_v40 = vsel %vm6884_vm5, %v3330_v61, %v3331_v55  ;;  %6938 = vst [vmem:[#allocation55_spill] sm:$0xff] %v4690_v56 }
 0x160   : > { %6936 = vst [vmem:[#allocation53_spill] sm:$0xff] %v4683_v6  ;;  %v6739_v33 = vunpack.i.h.bf16 %v4672_v36  ;;  %v4705_v55 = vpack.i.bf16 %v4690_v56, %v4693_v27 }
 0x161   : > { %6937 = vst [vmem:[#allocation54_spill] sm:$0xff] %v4686_v40 }
 0x162   : > { %6939 = vst [vmem:[#allocation56_spill] sm:$0xff] %v4693_v27  ;;  %3563 = vrot.lane.b32.xlu2 %v4626_v25, %s4078_s25  ;;  %v4701_v49 = vsel %vm6884_vm5, %v6739_v33, %v3355_v46  ;;  %v6751_v33 = vunpack.i.l.bf16 %v4638_v43  ;;  %v4752_v43 = vsel %vm445_vm0, %v4381_v37, %v4411_v44 }
 0x163   : > { %6940 = vst [vmem:[#allocation57_spill] sm:$0xff] %v4705_v55 }
 0x164   : > { %v4707_v61 = vpop.permute.xlu0 %3343  ;;  %v4709_v59 = vpop.permute.xlu2 %3398  ;;  %6948 = vst [vmem:[#allocation65_spill] sm:$0xff] %v4752_v43 }
 0x165   : > { %6941 = vst [vmem:[#allocation58_spill] sm:$0xff] %v4707_v61  ;;  %3573 = vrot.lane.b32.xlu1 %v4705_v55, %s4073_s20  ;;  %v6744_v13 = vunpack.i.l.bf16 %v4707_v61  ;;  %v4744_v61 = vsel %vm486_vm1, %v4729_v63, 0.0 }
 0x166   : > { %6947 = vst [vmem:[#allocation64_spill] sm:$0xff] %v4744_v61  ;;  %v4769_v37 = vpack.i.bf16 %v4744_v61, %v4752_v43 }
 0x167   : > { %v4715_v40 = vpop.permute.xlu1 %3363  ;;  %v4722_v46 = vsel %vm6884_vm5, %v6745_v34, %v6744_v13 }
 0x168   : > { %6942 = vst [vmem:[#allocation59_spill] sm:$0xff] %v4715_v40  ;;  %v6752_v6 = vunpack.i.h.bf16 %v4715_v40  ;;  %v6757_v48 = vunpack.i.l.bf16 %v4715_v40 }
 0x169   : > { %6943 = vst [vmem:[#allocation60_spill] sm:$0xff] %v4722_v46 }
 0x16a   : > { %3578 = vrot.lane.b32.xlu2 %v4626_v25, %s4076_s23  ;;  %v4738_v1 = vsel %vm6884_vm5, %v6752_v6, %v6751_v33  ;;  %v6949_v6 = vunpack.i.h.bf16 %v4599_v10  ;;  %6952 = vst [vmem:[#allocation68_spill] sm:$0xff] %v4769_v37 }
 0x16b   : > { %6945 = vst [vmem:[#allocation62_spill] sm:$0xff] %v4738_v1 }
 0x16c   : > { %v3359_v13 = vpop.permute.xlu0 %3358  ;;  %v4740_v34 = vpop.permute.xlu2 %3413 }
 0x16d   : > { %6946 = vst [vmem:[#allocation63_spill] sm:$0xff] %v4740_v34  ;;  %3588 = vrot.lane.b32.xlu1 %v4626_v25, %s4074_s21  ;;  %v3361_v46 = vunpack.i.h.bf16 %v3359_v13  ;;  %v3360_v29 = vunpack.i.l.bf16 %v3359_v13 }
 0x16f   : > { %v3379_v33 = vpop.permute.xlu1 %3378  ;;  %v4757_v1 = vsel %vm6884_vm5, %v6949_v6, %v3360_v29  ;;  %v4760_v63 = vsel %vm6884_vm5, %v3360_v29, %v3361_v46  ;;  %v4765_v30 = vsel %vm6884_vm5, %v3361_v46, %v6757_v48 }
 0x170   : > { %6950 = vst [vmem:[#allocation66_spill] sm:$0xff] %v4760_v63  ;;  %v3381_v13 = vunpack.i.h.bf16 %v3379_v33  ;;  %v3380_v32 = vunpack.i.l.bf16 %v3379_v33 }
 0x171   : > { %6951 = vst [vmem:[#allocation67_spill] sm:$0xff] %v4765_v30 }
 0x172   : > { %3593 = vrot.lane.b32.xlu2 %v4769_v37, %s4073_s20  ;;  %v4774_v44 = vsel %vm900_vm6, %v3381_v13, %v3385_v38  ;;  %v4777_v29 = vsel %vm900_vm6, %v3380_v32, %v3381_v13 }
 0x173   : > { %6953 = vst [vmem:[#allocation69_spill] sm:$0xff] %v4777_v29 }
 0x174   : > { %v4779_v10 = vpop.permute.xlu0 %3373  ;;  %v4781_v6 = vpop.permute.xlu2 %3428 }
 0x175   : > { %v6765_v33 = vunpack.i.h.bf16 %v4779_v10  ;;  %v3431_v46 = vunpack.i.h.bf16 %v4781_v6  ;;  %v6766_v48 = vunpack.i.l.bf16 %v4781_v6 }
 0x177   : > { %v4786_v40 = vpop.permute.xlu1 %3393  ;;  %v4791_v38 = vsel %vm900_vm6, %v6765_v33, %v3380_v32  ;;  %v4796_v13 = vsel %vm979_vm7, %v6766_v48, %v3431_v46  ;;  %v6779_v48 = vunpack.i.l.bf16 %v4740_v34 }
 0x178   : > { %6954 = vst [vmem:[#allocation70_spill] sm:$0xff] %v4786_v40  ;;  %v6775_v29 = vunpack.i.l.bf16 %v4786_v40 }
 0x179   : > { %6955 = vst [vmem:[#allocation71_spill] sm:$0xff] %v4796_v13 }
 0x17c   : > { %v4798_v30 = vpop.permute.xlu0 %3388  ;;  %v4800_v63 = vpop.permute.xlu2 %3443 }
 0x17d   : > { %6956 = vst [vmem:[#allocation72_spill] sm:$0xff] %v4798_v30  ;;  %v6776_v23 = vunpack.i.h.bf16 %v4798_v30  ;;  %v6772_v61 = vunpack.i.l.bf16 %v4798_v30 }
 0x17e   : > { %6957 = vst [vmem:[#allocation73_spill] sm:$0xff] %v4800_v63 }
 0x17f   : > { %v3409_v0 = vpop.permute.xlu1 %3408  ;;  %v4808_v32 = vsel %vm900_vm6, %v3386_v16, %v6772_v61  ;;  %v4815_v33 = vsel %vm900_vm6, %v6776_v23, %v6775_v29 }
 0x180   : > { %6958 = vst [vmem:[#allocation74_spill] sm:$0xff] %v4808_v32  ;;  %v3411_v13 = vunpack.i.h.bf16 %v3409_v0  ;;  %v3410_v22 = vunpack.i.l.bf16 %v3409_v0 }
 0x181   : > { %6959 = vst [vmem:[#allocation75_spill] sm:$0xff] %v4815_v33 }
 0x182   : > { %v4819_v37 = vsel %vm900_vm6, %v3410_v22, %v3411_v13  ;;  %v4824_v20 = vsel %vm900_vm6, %v3411_v13, %v6779_v48 }
 0x183   : > { %6960 = vst [vmem:[#allocation76_spill] sm:$0xff] %v4819_v37  ;;  %v6793_v37 = vunpack.i.h.bf16 %v4740_v34 }
 0x184   : > { %6961 = vst [vmem:[#allocation77_spill] sm:$0xff] %v4824_v20  ;;  %v4826_v16 = vpop.permute.xlu0 %3403  ;;  %v4828_v61 = vpop.permute.xlu2 %3458 }
 0x185   : > { %v3406_v30 = vunpack.i.h.bf16 %v4826_v16  ;;  %v6785_v29 = vunpack.i.l.bf16 %v4826_v16  ;;  %v3461_v23 = vunpack.i.h.bf16 %v4828_v61  ;;  %v6784_v0 = vunpack.i.l.bf16 %v4828_v61 }
 0x187   : > { %v4834_v40 = vpop.permute.xlu1 %3423  ;;  %v4837_v33 = vsel %vm900_vm6, %v3406_v30, %v3410_v22  ;;  %v4842_v13 = vsel %vm979_vm7, %v6784_v0, %v3461_v23  ;;  %v4847_v48 = vsel %vm900_vm6, %v6785_v29, %v3406_v30  ;;  %v6794_v0 = vunpack.i.l.bf16 %v4800_v63 }
 0x188   : > { %6962 = vst [vmem:[#allocation78_spill] sm:$0xff] %v4842_v13  ;;  %v3425_v54 = vunpack.i.l.bf16 %v4834_v40 }
 0x189   : > { %6963 = vst [vmem:[#allocation79_spill] sm:$0xff] %v4847_v48 }
 0x18c   : > { %v4849_v32 = vpop.permute.xlu0 %3418  ;;  %v3474_v20 = vpop.permute.xlu2 %3473 }
 0x18d   : > { %6964 = vst [vmem:[#allocation80_spill] sm:$0xff] %v4849_v32  ;;  %v6792_v43 = vunpack.i.l.bf16 %v4849_v32 }
 0x18f   : > { %v4853_v56 = vpop.permute.xlu1 %3438  ;;  %v4860_v22 = vsel %vm900_vm6, %v6793_v37, %v6792_v43 }
 0x190   : > { %6965 = vst [vmem:[#allocation81_spill] sm:$0xff] %v4853_v56  ;;  %v6795_v30 = vunpack.i.h.bf16 %v4853_v56  ;;  %v6800_v32 = vunpack.i.l.bf16 %v4853_v56 }
 0x191   : > { %6966 = vst [vmem:[#allocation82_spill] sm:$0xff] %v4860_v22 }
 0x192   : > { %v4869_v29 = vsel %vm979_vm7, %v6795_v30, %v6794_v0 }
 0x193   : > { %6967 = vst [vmem:[#allocation83_spill] sm:$0xff] %v4869_v29 }
 0x194   : > { %v3434_v48 = vpop.permute.xlu0 %3433  ;;  %v4871_v13 = vpop.permute.xlu2 %3488 }
 0x195   : > { %v3436_v34 = vunpack.i.h.bf16 %v3434_v48  ;;  %v3435_v55 = vunpack.i.l.bf16 %v3434_v48 }
 0x197   : > { %v4874_v43 = vpop.permute.xlu1 %3453  ;;  %v4877_v37 = vsel %vm979_vm7, %v3431_v46, %v3435_v55  ;;  %v4880_v22 = vsel %vm979_vm7, %v3435_v55, %v3436_v34  ;;  %v4885_v0 = vsel %vm979_vm7, %v3436_v34, %v6800_v32 }
 0x198   : > { %6968 = vst [vmem:[#allocation84_spill] sm:$0xff] %v4880_v22  ;;  %v6801_v30 = vunpack.i.h.bf16 %v4874_v43  ;;  %v3455_v63 = vunpack.i.l.bf16 %v4874_v43 }
 0x199   : > { %6969 = vst [vmem:[#allocation85_spill] sm:$0xff] %v4885_v0 }
 0x19a   : > { %v4892_v48 = vsel %vm979_vm7, %v3455_v63, %v6801_v30 }
 0x19b   : > { %6970 = vst [vmem:[#allocation86_spill] sm:$0xff] %v4892_v48 }
 0x19c   : > { %v3449_v29 = vpop.permute.xlu0 %3448  ;;  %v4894_v46 = vpop.permute.xlu2 %3503 }
 0x19d   : > { %v6806_v55 = vunpack.i.h.bf16 %v4894_v46  ;;  %v3505_v22 = vunpack.i.l.bf16 %v4894_v46  ;;  %v3451_v62 = vunpack.i.h.bf16 %v3449_v29  ;;  %v3450_v8 = vunpack.i.l.bf16 %v3449_v29 }
 0x19e   : > { %v3400_v29 = vunpack.i.l.bf16 %v4709_v59 }
 0x19f   : > { %v4898_v56 = vpop.permute.xlu1 %3468  ;;  %v4903_v34 = vsel %vm1058_vm8, %v3505_v22, %v6806_v55 }
 0x1a0   : > { %6971 = vst [vmem:[#allocation87_spill] sm:$0xff] %v4898_v56  ;;  %v6812_v30 = vunpack.i.l.bf16 %v4898_v56 }
 0x1a1   : > { %6972 = vst [vmem:[#allocation88_spill] sm:$0xff] %v4903_v34  ;;  %v6821_v34 = vunpack.i.l.bf16 %v4871_v13 }
 0x1a4   : > { %v4905_v32 = vpop.permute.xlu0 %3463 }
 0x1a5   : > { %6973 = vst [vmem:[#allocation89_spill] sm:$0xff] %v4905_v32  ;;  %v6813_v0 = vunpack.i.h.bf16 %v4905_v32  ;;  %v6811_v48 = vunpack.i.l.bf16 %v4905_v32 }
 0x1a7   : > { %v4910_v27 = vpop.permute.xlu1 %3483  ;;  %v4915_v53 = vsel %vm979_vm7, %v3461_v23, %v6811_v48  ;;  %v4922_v55 = vsel %vm979_vm7, %v6813_v0, %v6812_v30 }
 0x1a8   : > { %6974 = vst [vmem:[#allocation90_spill] sm:$0xff] %v4915_v53  ;;  %v3486_v51 = vunpack.i.h.bf16 %v4910_v27  ;;  %v6818_v12 = vunpack.i.l.bf16 %v4910_v27 }
 0x1a9   : > { %6975 = vst [vmem:[#allocation91_spill] sm:$0xff] %v4922_v55  ;;  %v3476_v55 = vunpack.i.h.bf16 %v3474_v20 }
 0x1aa   : > { %v4930_v5 = vsel %vm1058_vm8, %v6818_v12, %v3486_v51  ;;  %v4935_v23 = vsel %vm1058_vm8, %v3486_v51, %v6821_v34  ;;  %v3475_v12 = vunpack.i.l.bf16 %v3474_v20 }
 0x1ab   : > { %6976 = vst [vmem:[#allocation92_spill] sm:$0xff] %v4930_v5 }
 0x1ac   : > { %6977 = vst [vmem:[#allocation93_spill] sm:$0xff] %v4935_v23  ;;  %v4937_v48 = vpop.permute.xlu0 %3478  ;;  %v3426_v23 = vunpack.i.h.bf16 %v4834_v40  ;;  %v989_v40 = vsel %vm979_vm7, %v3450_v8, %v3451_v62 }
 0x1ad   : > { %v6824_v30 = vunpack.i.h.bf16 %v4937_v48  ;;  %v3480_v0 = vunpack.i.l.bf16 %v4937_v48 }
 0x1ae   : > { %v980_v8 = vsel %vm979_vm7, %v3425_v54, %v3426_v23 }
 0x1af   : > { %v3499_v32 = vpop.permute.xlu1 %3498  ;;  %v4944_v56 = vsel %vm1058_vm8, %v3480_v0, %v6824_v30  ;;  %v1059_v30 = vsel %vm1058_vm8, %v3475_v12, %v3476_v55  ;;  %v1060_v20 = vsel %vm1058_vm8, %v3476_v55, %v3480_v0  ;;  %v3375_v12 = vunpack.i.l.bf16 %v4779_v10 }
 0x1b0   : > { %6978 = vst [vmem:[#allocation94_spill] sm:$0xff] %v4944_v56  ;;  %v3501_v53 = vunpack.i.h.bf16 %v3499_v32  ;;  %v3500_v5 = vunpack.i.l.bf16 %v3499_v32  ;;  %v6826_v32 = vunpack.i.h.bf16 %v4871_v13  ;;  %v4955_v56 = vpop.permute.xlu2 %3518  ;;  %v3350_v55 = vunpack.i.l.bf16 %v4672_v36 }
 0x1b2   : > { %v1068_v51 = vsel %vm1058_vm8, %v3500_v5, %v3501_v53  ;;  %v1069_v34 = vsel %vm1058_vm8, %v3501_v53, %v3505_v22  ;;  %v3401_v53 = vunpack.i.h.bf16 %v4709_v59  ;;  %v990_v22 = vsel %vm979_vm7, %v3451_v62, %v3455_v63 }
 0x1b3   : > { %1496 = vmatpush.msra.mxu0 %v1068_v51  ;;  %1536 = vmatpush.msra.mxu2 %v1069_v34  ;;  %v6979_v63 = vunpack.i.l.bf16 %v4781_v6  ;;  %v3325_v6 = vunpack.i.l.bf16 %v4552_v57 }
 0x1b4   : > { %v4950_v47 = vpop.permute.xlu0 %3493  ;;  %v910_v51 = vsel %vm900_vm6, %v3400_v29, %v3401_v53 }
 0x1b5   : > { %v6825_v5 = vunpack.i.l.bf16 %v4950_v47  ;;  %1497 = vmatpush.msra.mxu0 %v1059_v30  ;;  %1537 = vmatpush.msra.mxu2 %v1060_v20  ;;  %v6827_v30 = vunpack.i.l.bf16 %v4955_v56  ;;  %v981_v62 = vsel %vm979_vm7, %v3426_v23, %v6979_v63  ;;  %v6980_v20 = vunpack.i.l.bf16 %v4826_v16 }
 0x1b6   : > { %v3275_v63 = vunpack.i.l.bf16 %v4550_v31 }
 0x1b7   : > { %v4963_v34 = vpop.permute.xlu1 %3513  ;;  %1498 = vmatpush.msra.mxu0 %v989_v40  ;;  %1538 = vmatpush.msra.mxu2 %v990_v22  ;;  %v4970_v0 = vsel %vm1058_vm8, %v6826_v32, %v6825_v5  ;;  %v911_v40 = vsel %vm900_vm6, %v3401_v53, %v6980_v20  ;;  %v6981_v22 = vunpack.i.h.bf16 %v4779_v10  ;;  %v6985_v5 = vunpack.i.l.bf16 %v4477_v15 }
 0x1b8   : > { %v6829_v59 = vunpack.i.h.bf16 %v4963_v34 }
 0x1b9   : > { %1499 = vmatpush.msra.mxu0 %v980_v8  ;;  %1539 = vmatpush.msra.mxu2 %v981_v62  ;;  %v901_v29 = vsel %vm900_vm6, %v3375_v12, %v6981_v22  ;;  %v3276_v8 = vunpack.i.h.bf16 %v4550_v31  ;;  %v6828_v62 = vunpack.i.l.bf16 %v4963_v34  ;;  %v6983_v31 = vunpack.i.h.bf16 %v4552_v57 }
 0x1ba   : > { %v4988_v54 = vsel %vm1058_vm8, %v6829_v59, %v6827_v30  ;;  %v3215_v57 = vunpack.i.l.bf16 %v4475_v14 }
 0x1bb   : > { %1500 = vmatpush.msra.mxu0 %v910_v51  ;;  %1540 = vmatpush.msra.mxu2 %v911_v40  ;;  %v6982_v51 = vunpack.i.h.bf16 %v4672_v36  ;;  %v3255_v40 = vunpack.i.l.bf16 %v4525_v28  ;;  %v822_v22 = vsel %vm6884_vm5, %v3325_v6, %v6983_v31  ;;  %v752_v6 = vsel %vm6883_vm3, %v3275_v63, %v3276_v8 }
 0x1bc   : > { %v4991_v23 = vpop.permute.xlu0 %3508  ;;  %v3195_v31 = vunpack.i.l.bf16 %v4457_v7 }
 0x1bd   : > { %v3511_v16 = vunpack.i.h.bf16 %v4991_v23  ;;  %v3510_v53 = vunpack.i.l.bf16 %v4991_v23  ;;  %1501 = vmatpush.msra.mxu0 %v901_v29  ;;  %1541 = vmatpush.msra.mxu2 %v4791_v38  ;;  %v831_v20 = vsel %vm6884_vm5, %v3350_v55, %v6982_v51  ;;  %v3256_v38 = vunpack.i.h.bf16 %v4525_v28  ;;  %v5023_v29 = vpop.permute.xlu2 %3533 }
 0x1be   : > { %v3235_v55 = vunpack.i.l.bf16 %v4453_v2  ;;  %v3216_v28 = vunpack.i.h.bf16 %v4475_v14  ;;  %v6984_v51 = vunpack.i.l.bf16 %v4556_v58 }
 0x1bf   : > { %v3529_v10 = vpop.permute.xlu1 %3528  ;;  %1502 = vmatpush.msra.mxu0 %v831_v20  ;;  %1542 = vmatpush.msra.mxu2 %v4701_v49  ;;  %v5009_v12 = vsel %vm1058_vm8, %v3510_v53, %v3511_v16  ;;  %v5019_v36 = vsel %vm1058_vm8, %v3511_v16, %v6828_v62  ;;  %v3236_v49 = vunpack.i.h.bf16 %v4453_v2  ;;  %v3176_v20 = vunpack.i.h.bf16 %v4391_v39 }
 0x1c0   : > { %v753_v16 = vsel %vm6883_vm3, %v3276_v8, %v6984_v51  ;;  %v3196_v2 = vunpack.i.h.bf16 %v4457_v7  ;;  %v744_v14 = vsel %vm6883_vm3, %v3256_v38, %v6985_v5  ;;  %v3531_v63 = vunpack.i.h.bf16 %v3529_v10 }
 0x1c1   : > { %1503 = vmatpush.msra.mxu0 %v822_v22  ;;  %1543 = vmatpush.msra.mxu2 %v4677_v42  ;;  %v743_v42 = vsel %vm6883_vm3, %v3255_v40, %v3256_v38  ;;  %v3530_v32 = vunpack.i.l.bf16 %v3529_v10  ;;  %v673_v8 = vsel %vm6882_vm4, %v3235_v55, %v3236_v49  ;;  %v664_v7 = vsel %vm6882_vm4, %v3215_v57, %v3216_v28 }
 0x1c2   : > { %v6987_v40 = vunpack.i.l.bf16 %v4483_v24  ;;  %v3175_v5 = vunpack.i.l.bf16 %v4391_v39 }
 0x1c3   : > { %1504 = vmatpush.msra.mxu0 %v752_v6  ;;  %1544 = vmatpush.msra.mxu2 %v753_v16  ;;  %v6986_v6 = vunpack.i.l.bf16 %v4517_v19 }
 0x1c4   : > { %v3524_v22 = vpop.permute.xlu0 %3523  ;;  %v665_v16 = vsel %vm6882_vm4, %v3216_v28, %v6987_v40 }
 0x1c5   : > { %v3526_v30 = vunpack.i.h.bf16 %v3524_v22  ;;  %v3525_v62 = vunpack.i.l.bf16 %v3524_v22  ;;  %1505 = vmatpush.msra.mxu0 %v743_v42  ;;  %1545 = vmatpush.msra.mxu2 %v744_v14  ;;  %v674_v51 = vsel %vm6882_vm4, %v3236_v49, %v6986_v6  ;;  %v594_v42 = vsel %vm6881_vm2, %v3195_v31, %v3196_v2 }
 0x1c7   : > { %v5048_v38 = vpop.permute.xlu1 %3543  ;;  %1506 = vmatpush.msra.mxu0 %v673_v8  ;;  %1546 = vmatpush.msra.mxu2 %v674_v51  ;;  %v5051_v10 = vsel %vm6881_vm2, %v3525_v62, %v3526_v30  ;;  %v5054_v55 = vsel %vm6881_vm2, %v3526_v30, %v3530_v32  ;;  %v5057_v49 = vsel %vm6881_vm2, %v3531_v63, %v3525_v62  ;;  %v6988_v30 = vunpack.i.l.bf16 %v4413_v45  ;;  %v5079_v8 = vpop.permute.xlu2 %3548 }
 0x1c8   : > { %v3546_v57 = vunpack.i.h.bf16 %v5048_v38  ;;  %v3545_v22 = vunpack.i.l.bf16 %v5048_v38  ;;  %v3552_v39 = vpack.i.bf16 %v5054_v55, %v5051_v10  ;;  %v3602_v28 = vpack.i.bf16 %v4583_v21, %v5057_v49  ;;  %v7012_v38 = vld [vmem:[#allocation57_spill] sm:$0xff] }
 0x1c9   : > { %1507 = vmatpush.msra.mxu0 %v664_v7  ;;  %1547 = vmatpush.msra.mxu2 %v665_v16  ;;  %v595_v62 = vsel %vm6881_vm2, %v3196_v2, %v6988_v30  ;;  %v585_v51 = vsel %vm6881_vm2, %v3175_v5, %v3176_v20  ;;  %v6991_v7 = vunpack.i.l.bf16 %v4432_v50  ;;  %v6830_v16 = vunpack.i.l.bf16 %v5079_v8 }
 0x1ca   : > { %3553 = vrot.lane.b32.xlu0 %v3552_v39, %s4079_s26  ;;  %3603 = vrot.lane.b32.xlu1 %v3602_v28, %s4079_s26  ;;  %v5072_v14 = vsel %vm6881_vm2, %v3530_v32, %v3545_v22  ;;  %v5077_v63 = vsel %vm6881_vm2, %v3545_v22, %v3546_v57  ;;  %v3617_v22 = vpack.i.bf16 %v4619_v9, %v4586_v17  ;;  %v6993_v39 = vunpack.i.l.bf16 %v4910_v27 }
 0x1cb   : > { %1508 = vmatpush.msra.mxu0 %v594_v42  ;;  %1548 = vmatpush.msra.mxu2 %v595_v62  ;;  %v3607_v31 = vpack.i.bf16 %v5077_v63, %v5072_v14  ;;  %v586_v40 = vsel %vm6881_vm2, %v3176_v20, %v6991_v7  ;;  %v6992_v20 = vunpack.i.h.bf16 %v4894_v46  ;;  %v3622_v46 = vpack.i.bf16 %v4586_v17, %v4583_v21  ;;  %v7001_v42 = vld [vmem:[#allocation27_spill] sm:$0xff] }
 0x1cc   : > { %v5083_v6 = vpop.permute.xlu0 %3538  ;;  %v6836_v27 = vunpack.i.l.bf16 %v4538_v26  ;;  %v6833_v30 = vunpack.i.l.bf16 %v7001_v42 }
 0x1cd   : > { %v6838_v2 = vunpack.i.h.bf16 %v5083_v6  ;;  %3608 = vrot.lane.b32.xlu2 %v3607_v31, %s4079_s26  ;;  %1509 = vmatpush.msra.mxu0 %v585_v51  ;;  %v7003_v31 = vld [vmem:[#allocation25_spill] sm:$0xff] }
 0x1ce   : > { %1549 = vmatpush.msra.mxu2 %v586_v40  ;;  %v6832_v51 = vunpack.i.l.bf16 %v7003_v31 }
 0x1cf   : > { %3049 = vmatpush.msk.msra.mxu0 %vm5087_vm9, %v4243_v3  ;;  %v5106_v5 = vsel %vm1137_vm10, %v6838_v2, %v6830_v16  ;;  %v1071_v3 = vsel %vm1058_vm8, %v6992_v20, %v3510_v53  ;;  %v6996_v53 = vunpack.i.h.bf16 %v4874_v43  ;;  %v5141_v21 = vpop.permute.xlu1 %3558  ;;  %v6837_v43 = vunpack.i.l.bf16 %v4507_v60 }
 0x1d0   : > { %1550 = vmatpush.msra.mxu2 %v4247_v4  ;;  %v7005_v20 = vunpack.i.h.bf16 %v4413_v45 }
 0x1d1   : > { %3051 = vmatpush.msk.msra.mxu0 %vm5087_vm9, %v4196_v41  ;;  %v6994_v41 = vunpack.i.h.bf16 %v4937_v48 }
 0x1d2   : > { %1551 = vmatpush.msra.mxu2 %v4207_v52  ;;  %3568 = vrot.lane.b32.xlu0 %v4626_v25, %s4077_s24  ;;  %v6995_v52 = vunpack.i.l.bf16 %v4828_v61 }
 0x1d3   : > { %1616 = vmatpush.msrb.mxu0 %v1071_v3  ;;  %3618 = vrot.lane.b32.xlu1 %v3617_v22, %s4079_s26  ;;  %v1062_v23 = vsel %vm1058_vm8, %v6994_v41, %v6993_v39  ;;  %v597_v3 = vsel %vm6881_vm2, %v7005_v20, %v6833_v30  ;;  %v7007_v41 = vld [vmem:[#allocation8_spill] sm:$0xff] }
 0x1d4   : > { %v992_v28 = vsel %vm979_vm7, %v6996_v53, %v6995_v52 }
 0x1d5   : > { %1617 = vmatpush.msrb.mxu0 %v1062_v23  ;;  %3623 = vrot.lane.b32.xlu2 %v3622_v46, %s4077_s24  ;;  %v7008_v23 = vld [vmem:[#allocation9_spill] sm:$0xff] }
 0x1d6   : > { %v3667_v52 = vpack.i.bf16 %v7008_v23, %v7007_v41  ;;  %v7021_v41 = vld [vmem:[#allocation64_spill] sm:$0xff] }
 0x1d7   : > { %1618 = vmatpush.msrb.mxu0 %v992_v28  ;;  %v3574_v7 = vpop.permute.xlu1 %3573  ;;  %v7009_v28 = vld [vmem:[#allocation2_spill] sm:$0xff] }
 0x1d8   : > { %v3575_v22 = vunpack.i.l.bf16 %v3574_v7 }
 0x1d9   : > { %1619 = vmatpush.msrb.mxu0 %v4877_v37  ;;  %v3597_v37 = vpack.i.bf16 %v4264_v11, %v4247_v4  ;;  %v7002_v4 = vunpack.i.h.bf16 %v4517_v19  ;;  %v3576_v19 = vunpack.i.h.bf16 %v3574_v7  ;;  %v7016_v7 = vld [vmem:[#allocation68_spill] sm:$0xff] }
 0x1da   : > { %3583 = vrot.lane.b32.xlu0 %v4626_v25, %s4075_s22  ;;  %v6997_v25 = vunpack.i.h.bf16 %v4556_v58  ;;  %v7000_v58 = vld [vmem:[#allocation24_spill] sm:$0xff]  ;;  %v5199_v45 = vsel %vm6881_vm2, %v3546_v57, %v3575_v22  ;;  %v5216_v57 = vpop.permute.xlu2 %3563 }
 0x1db   : > { %1620 = vmatpush.msrb.mxu0 %v4837_v33  ;;  %3633 = vrot.lane.b32.xlu1 %v3622_v46, %s4076_s23  ;;  %v6834_v48 = vunpack.i.l.bf16 %v7000_v58  ;;  %v5202_v53 = vsel %vm6881_vm2, %v3575_v22, %v3576_v19  ;;  %v6839_v30 = vunpack.i.h.bf16 %v5216_v57 }
 0x1dc   : > { %v755_v61 = vsel %vm6883_vm3, %v6997_v25, %v6837_v43  ;;  %v7010_v25 = vld [vmem:[#allocation47_spill] sm:$0xff] }
 0x1dd   : > { %1621 = vmatpush.msrb.mxu0 %v4774_v44  ;;  %3638 = vrot.lane.b32.xlu2 %v4634_v35, %s4077_s24  ;;  %v6998_v44 = vld [vmem:[#allocation33_spill] sm:$0xff] }
 0x1de   : > { %v6835_v33 = vunpack.i.l.bf16 %v6998_v44 }
 0x1df   : > { %1622 = vmatpush.msrb.mxu0 %v4757_v1  ;;  %v6999_v1 = vunpack.i.h.bf16 %v4477_v15  ;;  %v7004_v15 = vunpack.i.h.bf16 %v4483_v24  ;;  %v7006_v24 = vunpack.i.h.bf16 %v4432_v50  ;;  %v3677_v50 = vpack.i.bf16 %v5202_v53, %v5199_v45 }
 0x1e0   : > { %v676_v62 = vsel %vm6882_vm4, %v7002_v4, %v6835_v33 }
 0x1e1   : > { %1623 = vmatpush.msrb.mxu0 %v4680_v18  ;;  %v746_v18 = vsel %vm6883_vm3, %v6999_v1, %v6836_v27  ;;  %v667_v40 = vsel %vm6882_vm4, %v7004_v15, %v6834_v48  ;;  %v588_v39 = vsel %vm6881_vm2, %v7006_v24, %v6832_v51  ;;  %v7013_v1 = vld [vmem:[#allocation55_spill] sm:$0xff]  ;;  %v7017_v15 = vld [vmem:[#allocation13_spill] sm:$0xff]  ;;  %v6840_v48 = vunpack.i.l.bf16 %v5216_v57 }
 0x1e2   : > { %3598 = vrot.lane.b32.xlu0 %v3597_v37, %s4080_s27 }
 0x1e3   : > { %1624 = vmatpush.msrb.mxu0 %v755_v61  ;;  %3648 = vrot.lane.b32.xlu1 %v4634_v35, %s4076_s23  ;;  %v7011_v61 = vld [vmem:[#allocation56_spill] sm:$0xff] }
 0x1e4   : > { %v3682_v37 = vpack.i.bf16 %v7011_v61, %v7010_v25 }
 0x1e5   : > { %1625 = vmatpush.msrb.mxu0 %v746_v18  ;;  %3653 = vrot.lane.b32.xlu2 %v3622_v46, %s4074_s21  ;;  %v7014_v18 = vld [vmem:[#allocation65_spill] sm:$0xff] }
 0x1e6   : > { %v3712_v4 = vpack.i.bf16 %v7014_v18, %v7013_v1 }
 0x1e7   : > { %1626 = vmatpush.msrb.mxu0 %v676_v62  ;;  %v7015_v62 = vld [vmem:[#allocation12_spill] sm:$0xff] }
 0x1e9   : > { %1627 = vmatpush.msrb.mxu0 %v667_v40  ;;  %v7018_v40 = vld [vmem:[#allocation7_spill] sm:$0xff] }
 0x1ea   : > { %3613 = vrot.lane.b32.xlu0 %v3622_v46, %s4078_s25  ;;  %v3737_v20 = vpack.i.bf16 %v7018_v40, %v7017_v15 }
 0x1eb   : > { %1628 = vmatpush.msrb.mxu0 %v597_v3  ;;  %3663 = vrot.lane.b32.xlu1 %v4634_v35, %s4074_s21 }
 0x1ed   : > { %1629 = vmatpush.msrb.mxu0 %v588_v39  ;;  %3668 = vrot.lane.b32.xlu2 %v3667_v52, %s4080_s27 }
 0x1ef   : > { %1630 = vmatpush.msrb.mxu0 %v7008_v23 }
 0x1f1   : > { %1631 = vmatpush.msrb.mxu0 %v7009_v28  ;;  %v7022_v28 = vld [vmem:[#allocation14_spill] sm:$0xff] }
 0x1f2   : > { %3628 = vrot.lane.b32.xlu0 %v4634_v35, %s4078_s25 }
 0x1f3   : > { %3678 = vrot.lane.b32.xlu1 %v3677_v50, %s4079_s26  ;;  %v7023_v50 = vld [vmem:[#allocation19_spill] sm:$0xff] }
 0x1f5   : > { %3683 = vrot.lane.b32.xlu2 %v3682_v37, %s4079_s26  ;;  %v3757_v37 = vpack.i.bf16 %v7023_v50, %v7022_v28 }
 0x1fa   : > { %3643 = vrot.lane.b32.xlu0 %v3622_v46, %s4075_s22  ;;  %v5227_v46 = vpop.permute.xlu2 %3578 }
 0x1fb   : > { %3693 = vrot.lane.b32.xlu1 %v7012_v38, %s4077_s24 }
 0x1fd   : > { %3698 = vrot.lane.b32.xlu2 %v7012_v38, %s4076_s23 }
 0x202   : > { %3658 = vrot.lane.b32.xlu0 %v4634_v35, %s4075_s22  ;;  %v3594_v35 = vpop.permute.xlu2 %3593 }
 0x203   : > { %3708 = vrot.lane.b32.xlu1 %v7012_v38, %s4075_s22  ;;  %v5240_v3 = vunpack.i.h.bf16 %v3594_v35  ;;  %v3595_v22 = vunpack.i.l.bf16 %v3594_v35 }
 0x205   : > { %3713 = vrot.lane.b32.xlu2 %v3712_v4, %s4079_s26  ;;  %7019 = vst [vmem:[#allocation33_spill] sm:$0xff] %v5240_v3  ;;  %v5245_v24 = vsel %vm6881_vm2, %v3576_v19, %v3595_v22  ;;  %v5249_v39 = vsel %vm6881_vm2, %v3595_v22, %v5240_v3  ;;  %v3752_v23 = vpack.i.bf16 %v7021_v41, %v5240_v3  ;;  %v7024_v19 = vld [vmem:[#allocation18_spill] sm:$0xff]  ;;  %v7025_v4 = vld [vmem:[#allocation17_spill] sm:$0xff] }
 0x206   : > { %7020 = vst [vmem:[#allocation24_spill] sm:$0xff] %v5249_v39  ;;  %v3702_v52 = vpack.i.bf16 %v5249_v39, %v5245_v24  ;;  %v6856_v39 = vunpack.i.l.bf16 %v5083_v6 }
 0x20a   : > { %3673 = vrot.lane.b32.xlu0 %v7015_v62, %s4080_s27  ;;  %v7026_v62 = vpack.i.bf16 %v7024_v19, %v7025_v4  ;;  %v6844_v4 = vunpack.i.h.bf16 %v5141_v21 }
 0x20b   : > { %3723 = vrot.lane.b32.xlu1 %v7016_v7, %s4078_s25 }
 0x20d   : > { %3728 = vrot.lane.b32.xlu2 %v7016_v7, %s4077_s24 }
 0x212   : > { %3688 = vrot.lane.b32.xlu0 %v7012_v38, %s4078_s25 }
 0x213   : > { %3738 = vrot.lane.b32.xlu1 %v3737_v20, %s4080_s27 }
 0x215   : > { %3743 = vrot.lane.b32.xlu2 %v7016_v7, %s4075_s22 }
 0x21a   : > { %3703 = vrot.lane.b32.xlu0 %v3702_v52, %s4079_s26  ;;  %v7028_v52 = vld [vmem:[#allocation20_spill] sm:$0xff] }
 0x21b   : > { %3753 = vrot.lane.b32.xlu1 %v3752_v23, %s4079_s26  ;;  %v7027_v23 = vld [vmem:[#allocation6_spill] sm:$0xff] }
 0x21d   : > { %3758 = vrot.lane.b32.xlu2 %v3757_v37, %s4080_s27  ;;  %v3762_v37 = vpack.i.bf16 %v7028_v52, %v7027_v23  ;;  %v6857_v52 = vunpack.i.h.bf16 %v5023_v29 }
 0x222   : > { %3718 = vrot.lane.b32.xlu0 %v7012_v38, %s4074_s21  ;;  %v5279_v38 = vpop.permute.xlu1 %3588 }
 0x223   : > { %3768 = vrot.lane.b32.xlu1 %v7026_v62, %s4080_s27  ;;  %v3560_v62 = vunpack.i.l.bf16 %v5141_v21 }
 0x225   : > { %v1453_v43 = vsel %vm1058_vm8, %v3560_v62, %v6844_v4 }
 0x227   : > { %v5266_v35 = vpop.permute.xlu2 %3608 }
 0x228   : > { %v6831_v20 = vunpack.i.h.bf16 %v5266_v35  ;;  %v6845_v22 = vunpack.i.l.bf16 %v5266_v35 }
 0x22a   : > { %v1464_v41 = vsel %vm1058_vm8, %v6845_v22, %v6831_v20  ;;  %3733 = vrot.lane.b32.xlu0 %v7016_v7, %s4076_s23 }
 0x22b   : > { %1641 = vmatpush.msrb.mxu2 %v1464_v41 }
 0x22f   : > { %v5283_v19 = vpop.permute.xlu2 %3623 }
 0x232   : > { %3748 = vrot.lane.b32.xlu0 %v7016_v7, %s4074_s21 }
 0x23a   : > { %3763 = vrot.lane.b32.xlu0 %v3762_v37, %s4080_s27 }
 0x23c   : > { %v5288_v59 = vpop.permute.xlu0 %3553  ;;  %v3604_v16 = vpop.permute.xlu1 %3603 }
 0x23d   : > { %v3556_v41 = vunpack.i.h.bf16 %v5288_v59  ;;  %v3555_v7 = vunpack.i.l.bf16 %v5288_v59  ;;  %v3606_v20 = vunpack.i.h.bf16 %v3604_v16  ;;  %v3605_v51 = vunpack.i.l.bf16 %v3604_v16  ;;  %v5305_v16 = vpop.permute.xlu2 %3638 }
 0x23e   : > { %v1394_v59 = vsel %vm979_vm7, %v6840_v48, %v6839_v30  ;;  %v5328_v30 = vld [vmem:[%s6689_s3] sm:$0xff] }
 0x23f   : > { %v1461_v33 = vsel %vm1058_vm8, %v3605_v51, %v3555_v7  ;;  %v1462_v37 = vsel %vm1058_vm8, %v3555_v7, %v3556_v41  ;;  %v1452_v27 = vsel %vm1058_vm8, %v3606_v20, %v3560_v62  ;;  %v6847_v51 = vunpack.i.l.bf16 %v5227_v46  ;;  %1552 = vmatmul.f32.vlgmr.msra.gmra.mxu2 %v5328_v30  ;;  %1512 = vmatmul.f32.vlgmr.msra.gmra.mxu0 %v5328_v30 }
 0x240   : > { %1521 = vmatpush.msra.mxu1 %v1461_v33  ;;  %1561 = vmatpush.msra.mxu3 %v1462_v37  ;;  %v6846_v33 = vunpack.i.h.bf16 %v5227_v46 }
 0x242   : > { %1522 = vmatpush.msra.mxu1 %v1452_v27  ;;  %1562 = vmatpush.msra.mxu3 %v1453_v43  ;;  %v1316_v48 = vsel %vm6884_vm5, %v6847_v51, %v6846_v33 }
 0x244   : > { %1563 = vmatpush.msra.mxu3 %v1394_v59  ;;  %v5309_v20 = vpop.permute.xlu0 %3568 }
 0x245   : > { %v5311_v7 = vpop.permute.xlu1 %3618  ;;  %v6841_v27 = vunpack.i.h.bf16 %v5309_v20  ;;  %v6843_v43 = vunpack.i.l.bf16 %v5309_v20  ;;  %v7034_v15 = vunpack.i.l.bf16 %v5309_v20 }
 0x246   : > { %v6842_v62 = vunpack.i.h.bf16 %v5311_v7  ;;  %v3620_v37 = vunpack.i.l.bf16 %v5311_v7 }
 0x247   : > { %v1355_v59 = vsel %vm900_vm6, %v6843_v43, %v6841_v27  ;;  %v6851_v43 = vunpack.i.h.bf16 %v5279_v38  ;;  %1632 = vmatmul.f32.vlgmr.msrb.gmra.mxu0 %v5328_v30 }
 0x248   : > { %v1455_v2 = vsel %vm1058_vm8, %v3620_v37, %v6842_v62  ;;  %1564 = vmatpush.msra.mxu3 %v1355_v59  ;;  %v6852_v59 = vunpack.i.l.bf16 %v5279_v38 }
 0x249   : > { %1642 = vmatpush.msrb.mxu2 %v1455_v2  ;;  %v5343_v2 = vpop.permute.xlu2 %3653 }
 0x24a   : > { %1565 = vmatpush.msra.mxu3 %v1316_v48  ;;  %v1238_v33 = vsel %vm6882_vm4, %v6852_v59, %v6851_v43  ;;  %v7030_v59 = vunpack.i.l.bf16 %v5266_v35 }
 0x24c   : > { %v5337_v27 = vpop.permute.xlu0 %3583  ;;  %v1463_v3 = vsel %vm1058_vm8, %v3556_v41, %v7030_v59  ;;  %v1912_v41 = vld [vmem:[%s6691_s5] sm:$0xff]  ;;  %v3625_v59 = vunpack.i.l.bf16 %v5283_v19 }
 0x24d   : > { %v5339_v62 = vpop.permute.xlu1 %3633  ;;  %v6849_v4 = vunpack.i.h.bf16 %v5337_v27  ;;  %v6850_v22 = vunpack.i.l.bf16 %v5337_v27 }
 0x24f   : > { %v1277_v48 = vsel %vm6883_vm3, %v6850_v22, %v6849_v4  ;;  %v7029_v22 = vld [vmem:[#allocation44_spill] sm:$0xff] }
 0x250   : > { %1566 = vmatpush.msra.mxu3 %v1277_v48 }
 0x251   : > { %v5368_v43 = vpop.permute.xlu2 %3668 }
 0x252   : > { %1567 = vmatpush.msra.mxu3 %v1238_v33 }
 0x254   : > { %v5358_v51 = vpop.permute.xlu0 %3598  ;;  %1568 = vmatpush.msra.mxu3 %v5051_v10  ;;  %v1139_v10 = vsel %vm1137_vm10, %v6857_v52, %v6856_v39  ;;  %v4081_v39 = vmov 0  }
 0x255   : > { %v5360_v18 = vpop.permute.xlu1 %3648  ;;  %v6854_v4 = vunpack.i.h.bf16 %v5358_v51  ;;  %v6855_v48 = vunpack.i.l.bf16 %v5358_v51  ;;  %3773 = vset.pattern.permute.xlu0 %v4081_v39  ;;  %3772 = vset.pattern.permute.xlu2 %v4081_v39 }
 0x256   : > { %1569 = vmatpush.msra.mxu3 %v7029_v22  ;;  %v5383_v22 = vld [vmem:[%s6689_s3 + $0x8] sm:$0xff]  ;;  %1915 = vperm.xlu0 %3773, %v1912_v41   ;;  %v7035_v41 = vunpack.i.h.bf16 %v5309_v20 }
 0x257   : > { %v1148_v33 = vsel %vm1137_vm10, %v6855_v48, %v6854_v4  ;;  %v7031_v48 = vunpack.i.h.bf16 %v5141_v21  ;;  %v3636_v21 = vunpack.i.h.bf16 %v5339_v62 }
 0x258   : > { %1570 = vmatpush.msra.mxu3 %v1148_v33 }
 0x259   : > { %v1454_v50 = vsel %vm1058_vm8, %v7031_v48, %v3620_v37  ;;  %v3635_v37 = vunpack.i.l.bf16 %v5339_v62  ;;  %v7032_v48 = vunpack.i.l.bf16 %v5216_v57  ;;  %v5408_v39 = vpop.permute.xlu2 %3683 }
 0x25a   : > { %1571 = vmatpush.msra.mxu3 %v1139_v10  ;;  %v6860_v20 = vunpack.i.l.bf16 %v5408_v39 }
 0x25b   : > { %3055 = vmatmul.msk.f32.vlgmr.msra.gmra.mxu3 %vm1492_vm11, %v5383_v22 }
 0x25c   : > { %1601 = vmatpush.msrb.mxu3 %v1463_v3  ;;  %v3614_v4 = vpop.permute.xlu0 %3613  ;;  %v3626_v3 = vunpack.i.h.bf16 %v5283_v19  ;;  %v1354_v19 = vsel %vm900_vm6, %v3625_v59, %v7034_v15 }
 0x25d   : > { %v5388_v33 = vpop.permute.xlu1 %3663  ;;  %v3616_v52 = vunpack.i.h.bf16 %v3614_v4  ;;  %v3615_v40 = vunpack.i.l.bf16 %v3614_v4 }
 0x25e   : > { %1602 = vmatpush.msrb.mxu3 %v1454_v50  ;;  %v7033_v50 = vunpack.i.h.bf16 %v5216_v57  ;;  %v1356_v62 = vsel %vm900_vm6, %v7035_v41, %v3626_v3 }
 0x25f   : > { %v1393_v10 = vsel %vm979_vm7, %v3615_v40, %v7032_v48  ;;  %v7036_v40 = vunpack.i.l.bf16 %v5227_v46  ;;  %v7037_v48 = vunpack.i.h.bf16 %v5227_v46 }
 0x260   : > { %v1395_v4 = vsel %vm979_vm7, %v7033_v50, %v3616_v52  ;;  %1523 = vmatpush.msra.mxu1 %v1393_v10  ;;  %v6858_v50 = vunpack.i.l.bf16 %v5305_v16 }
 0x261   : > { %1603 = vmatpush.msrb.mxu3 %v1395_v4  ;;  %v1315_v57 = vsel %vm6884_vm5, %v3635_v37, %v7036_v40  ;;  %v1317_v10 = vsel %vm6884_vm5, %v7037_v48, %v3636_v21  ;;  %v6874_v4 = vunpack.i.h.bf16 %v5408_v39 }
 0x262   : > { %1524 = vmatpush.msra.mxu1 %v1354_v19  ;;  %v6865_v19 = vunpack.i.l.bf16 %v5360_v18  ;;  %v1357_v40 = vsel %vm900_vm6, %v3626_v3, %v6858_v50  ;;  %v7038_v50 = vunpack.i.l.bf16 %v5337_v27 }
 0x263   : > { %1604 = vmatpush.msrb.mxu3 %v1356_v62 }
 0x264   : > { %v5424_v23 = vpop.permute.xlu0 %3628  ;;  %1525 = vmatpush.msra.mxu1 %v1315_v57  ;;  %v1457_v57 = vsel %vm1058_vm8, %v6860_v20, %v6874_v4  ;;  %v7039_v20 = vunpack.i.h.bf16 %v5337_v27  ;;  %v3535_v27 = vunpack.i.l.bf16 %v5023_v29 }
 0x265   : > { %v5426_v15 = vpop.permute.xlu1 %3678  ;;  %1605 = vmatpush.msrb.mxu3 %v1317_v10  ;;  %v6859_v59 = vunpack.i.l.bf16 %v5424_v23  ;;  %v3656_v10 = vunpack.i.h.bf16 %v5343_v2 }
 0x266   : > { %v3681_v37 = vunpack.i.h.bf16 %v5426_v15  ;;  %v3680_v46 = vunpack.i.l.bf16 %v5426_v15 }
 0x267   : > { %v1396_v41 = vsel %vm979_vm7, %v3616_v52, %v6859_v59  ;;  %v1318_v52 = vsel %vm6884_vm5, %v3636_v21, %v6865_v19  ;;  %v7040_v21 = vunpack.i.l.bf16 %v5279_v38  ;;  %v7073_v19 = vld [vmem:[#allocation48_spill] sm:$0xff] }
 0x268   : > { %v1466_v62 = vsel %vm1058_vm8, %v3680_v46, %v3681_v37  ;;  %1643 = vmatpush.msrb.mxu2 %v1396_v41  ;;  %v3655_v41 = vunpack.i.l.bf16 %v5343_v2 }
 0x269   : > { %1721 = vmatpush.msra.mxu0 %v1466_v62 }
 0x26a   : > { %1644 = vmatpush.msrb.mxu2 %v1357_v40 }
 0x26b   : > { %1722 = vmatpush.msra.mxu0 %v1457_v57  ;;  %v1237_v57 = vsel %vm6882_vm4, %v3655_v41, %v7040_v21  ;;  %v6862_v41 = vunpack.i.l.bf16 %v5388_v33  ;;  %v7045_v21 = vunpack.i.h.bf16 %v5358_v51 }
 0x26c   : > { %v3644_v48 = vpop.permute.xlu0 %3643  ;;  %1645 = vmatpush.msrb.mxu2 %v1318_v52  ;;  %v7041_v52 = vunpack.i.h.bf16 %v5279_v38  ;;  %v3670_v38 = vunpack.i.l.bf16 %v5368_v43 }
 0x26d   : > { %v3646_v62 = vunpack.i.h.bf16 %v3644_v48  ;;  %v3645_v3 = vunpack.i.l.bf16 %v3644_v48 }
 0x26e   : > { %v1239_v2 = vsel %vm6882_vm4, %v7041_v52, %v3656_v10  ;;  %v7046_v52 = vunpack.i.h.bf16 %v5023_v29  ;;  %v7049_v29 = vld [vmem:[#allocation88_spill] sm:$0xff] }
 0x26f   : > { %v1276_v59 = vsel %vm6883_vm3, %v3645_v3, %v7038_v50  ;;  %v1278_v40 = vsel %vm6883_vm3, %v7039_v20, %v3646_v62  ;;  %v1896_v50 = vld [vmem:[%s6690_s4] sm:$0xff]  ;;  %v3671_v20 = vunpack.i.h.bf16 %v5368_v43  ;;  %v7042_v3 = vld [vmem:[#allocation21_spill] sm:$0xff] }
 0x270   : > { %1526 = vmatpush.msra.mxu1 %v1276_v59  ;;  %1606 = vmatpush.msrb.mxu3 %v1278_v40  ;;  %v7043_v40 = vld [vmem:[#allocation43_spill] sm:$0xff] }
 0x271   : > { %1899 = vperm.xlu2 %3772, %v1896_v50   ;;  %v7047_v50 = vunpack.i.h.bf16 %v5083_v6 }
 0x272   : > { %1527 = vmatpush.msra.mxu1 %v1237_v57  ;;  %1607 = vmatpush.msrb.mxu3 %v1239_v2  ;;  %v1149_v57 = vsel %vm1137_vm10, %v7045_v21, %v3671_v20  ;;  %v1138_v2 = vsel %vm1137_vm10, %v3535_v27, %v7046_v52  ;;  %v5522_v21 = vpop.permute.xlu2 %3698  ;;  %v7057_v52 = vld [vmem:[#allocation76_spill] sm:$0xff] }
 0x274   : > { %v5469_v48 = vpop.permute.xlu0 %3658  ;;  %1528 = vmatpush.msra.mxu1 %v5057_v49  ;;  %1608 = vmatpush.msrb.mxu3 %v5054_v55  ;;  %v7044_v49 = vunpack.i.l.bf16 %v5358_v51  ;;  %v5499_v51 = vpop.permute.xlu1 %3693 }
 0x275   : > { %v6863_v59 = vunpack.i.l.bf16 %v5469_v48 }
 0x276   : > { %3053 = vmatpush.msk.msra.mxu1 %vm5087_vm9, %v7042_v3  ;;  %1609 = vmatpush.msrb.mxu3 %v7043_v40  ;;  %v1147_v55 = vsel %vm1137_vm10, %v3670_v38, %v7044_v49  ;;  %v7048_v3 = vunpack.i.l.bf16 %v5083_v6  ;;  %v7050_v40 = vld [vmem:[#allocation94_spill] sm:$0xff] }
 0x277   : > { %v1279_v43 = vsel %vm6883_vm3, %v3646_v62, %v6863_v59  ;;  %v1240_v62 = vsel %vm6882_vm4, %v3656_v10, %v6862_v41  ;;  %v7051_v10 = vld [vmem:[#allocation92_spill] sm:$0xff]  ;;  %v3226_v59 = vunpack.i.h.bf16 %v7000_v58 }
 0x278   : > { %1530 = vmatpush.msra.mxu1 %v1147_v55  ;;  %1610 = vmatpush.msrb.mxu3 %v1149_v57  ;;  %v1140_v38 = vsel %vm1137_vm10, %v7048_v3, %v7047_v50  ;;  %v7053_v55 = vld [vmem:[#allocation78_spill] sm:$0xff]  ;;  %v7055_v57 = vld [vmem:[#allocation84_spill] sm:$0xff]  ;;  %v7058_v3 = vld [vmem:[#allocation69_spill] sm:$0xff] }
 0x279   : > { %1646 = vmatpush.msrb.mxu2 %v1279_v43 }
 0x27a   : > { %1531 = vmatpush.msra.mxu1 %v1138_v2  ;;  %1611 = vmatpush.msrb.mxu3 %v1140_v38  ;;  %v6871_v2 = vunpack.i.h.bf16 %v5424_v23  ;;  %v7059_v38 = vld [vmem:[#allocation53_spill] sm:$0xff] }
 0x27b   : > { %1647 = vmatpush.msrb.mxu2 %v1240_v62  ;;  %3054 = vmatmul.msk.f32.vlgmr.msra.gmra.mxu1 %vm1492_vm11, %v5383_v22  ;;  %v7060_v62 = vld [vmem:[#allocation93_spill] sm:$0xff] }
 0x27c   : > { %1576 = vmatpush.msrb.mxu1 %v7049_v29  ;;  %1656 = vmatpush.msra.mxu3 %v5009_v12  ;;  %v5508_v27 = vpop.permute.xlu0 %3673  ;;  %v7052_v12 = vld [vmem:[#allocation86_spill] sm:$0xff]  ;;  %v5527_v43 = vpop.permute.xlu1 %3708 }
 0x27d   : > { %v6861_v6 = vunpack.i.l.bf16 %v5508_v27  ;;  %1648 = vmatpush.msrb.mxu2 %v5072_v14  ;;  %3056 = vmatmul.msk.f32.vlgmr.msrb.gmra.mxu3 %vm1492_vm11, %v5383_v22  ;;  %v7054_v14 = vld [vmem:[#allocation71_spill] sm:$0xff] }
 0x27e   : > { %1577 = vmatpush.msrb.mxu1 %v7050_v40  ;;  %1657 = vmatpush.msra.mxu3 %v7051_v10  ;;  %v3286_v40 = vunpack.i.h.bf16 %v4507_v60  ;;  %v6867_v10 = vunpack.i.h.bf16 %v5305_v16 }
 0x27f   : > { %1649 = vmatpush.msrb.mxu2 %v4586_v17  ;;  %v1150_v49 = vsel %vm1137_vm10, %v3671_v20, %v6861_v6  ;;  %v7056_v17 = vld [vmem:[#allocation79_spill] sm:$0xff] }
 0x280   : > { %1578 = vmatpush.msrb.mxu1 %v7052_v12  ;;  %1658 = vmatpush.msra.mxu3 %v7053_v55  ;;  %v7062_v12 = vld [vmem:[#allocation66_spill] sm:$0xff] }
 0x281   : > { %1650 = vmatpush.msrb.mxu2 %v1150_v49  ;;  %v6864_v49 = vunpack.i.l.bf16 %v5522_v21  ;;  %v7063_v55 = vld [vmem:[#allocation90_spill] sm:$0xff] }
 0x282   : > { %1579 = vmatpush.msrb.mxu1 %v7054_v14  ;;  %1659 = vmatpush.msra.mxu3 %v7055_v57  ;;  %v3266_v14 = vunpack.i.h.bf16 %v4538_v26  ;;  %v7064_v57 = vld [vmem:[#allocation54_spill] sm:$0xff] }
 0x283   : > { %1651 = vmatpush.msrb.mxu2 %v5106_v5  ;;  %v6868_v5 = vunpack.i.l.bf16 %v5499_v51 }
 0x284   : > { %1580 = vmatpush.msrb.mxu1 %v7056_v17  ;;  %1660 = vmatpush.msra.mxu3 %v7057_v52  ;;  %v5531_v20 = vpop.permute.xlu0 %3688  ;;  %v6866_v17 = vunpack.i.h.bf16 %v5360_v18  ;;  %v6870_v52 = vunpack.i.h.bf16 %v5469_v48 }
 0x285   : > { %1696 = vmatpush.msra.mxu2 %v5019_v36  ;;  %v6873_v50 = vunpack.i.l.bf16 %v5531_v20  ;;  %v7061_v36 = vld [vmem:[#allocation46_spill] sm:$0xff] }
 0x286   : > { %1581 = vmatpush.msrb.mxu1 %v7058_v3  ;;  %1661 = vmatpush.msra.mxu3 %v7059_v38  ;;  %v6869_v3 = vunpack.i.l.bf16 %v5527_v43  ;;  %v7065_v38 = vld [vmem:[#allocation51_spill] sm:$0xff]  ;;  %v1320_v41 = vsel %vm6884_vm5, %v6866_v17, %v6864_v49  ;;  %v3206_v49 = vunpack.i.h.bf16 %v7001_v42  ;;  %v6872_v17 = vunpack.i.l.bf16 %v7073_v19 }
 0x287   : > { %1697 = vmatpush.msra.mxu2 %v7060_v62  ;;  %v1398_v29 = vsel %vm979_vm7, %v6871_v2, %v6873_v50  ;;  %v7066_v62 = vld [vmem:[#allocation85_spill] sm:$0xff] }
 0x288   : > { %3057 = vmatmul.msk.f32.vlgmr.msrb.gmra.mxu2 %vm1492_vm11, %v5383_v22  ;;  %1582 = vmatpush.msrb.mxu1 %v7061_v36  ;;  %v1359_v36 = vsel %vm900_vm6, %v6867_v10, %v6868_v5  ;;  %v7078_v5 = vld [vmem:[#allocation31_spill] sm:$0xff]  ;;  %v7087_v50 = vld [vmem:[#allocation29_spill] sm:$0xff] }
 0x289   : > { %1662 = vmatpush.msra.mxu3 %v7062_v12  ;;  %1698 = vmatpush.msra.mxu2 %v7063_v55  ;;  %v5566_v12 = vpop.permute.xlu2 %3713  ;;  %v7067_v55 = vld [vmem:[#allocation38_spill] sm:$0xff] }
 0x28a   : > { %1723 = vmatpush.msra.mxu0 %v1398_v29  ;;  %1583 = vmatpush.msrb.mxu1 %v7064_v57  ;;  %v3246_v29 = vunpack.i.h.bf16 %v6998_v44  ;;  %v7068_v57 = vunpack.i.l.bf16 %v4507_v60  ;;  %v7071_v60 = vunpack.i.l.bf16 %v4538_v26  ;;  %v7075_v26 = vunpack.i.l.bf16 %v6998_v44 }
 0x28b   : > { %1663 = vmatpush.msra.mxu3 %v7065_v38  ;;  %1699 = vmatpush.msra.mxu2 %v7066_v62  ;;  %v7069_v62 = vld [vmem:[#allocation77_spill] sm:$0xff]  ;;  %v7082_v44 = vunpack.i.l.bf16 %v7001_v42  ;;  %v7085_v42 = vld [vmem:[#allocation26_spill] sm:$0xff] }
 0x28c   : > { %1724 = vmatpush.msra.mxu0 %v1359_v36  ;;  %1584 = vmatpush.msrb.mxu1 %v7067_v55  ;;  %v756_v6 = vsel %vm6883_vm3, %v7068_v57, %v3286_v40  ;;  %v5572_v38 = vpop.permute.xlu0 %3703  ;;  %v5581_v36 = vpop.permute.xlu1 %3723  ;;  %v7070_v55 = vld [vmem:[#allocation30_spill] sm:$0xff]  ;;  %v747_v57 = vsel %vm6883_vm3, %v7071_v60, %v3266_v14  ;;  %v7076_v60 = vld [vmem:[#allocation67_spill] sm:$0xff] }
 0x28d   : > { %1664 = vmatpush.msra.mxu3 %v756_v6  ;;  %1700 = vmatpush.msra.mxu2 %v7069_v62  ;;  %v7072_v6 = vld [vmem:[#allocation74_spill] sm:$0xff]  ;;  %v1281_v62 = vsel %vm6883_vm3, %v6870_v52, %v6869_v3  ;;  %v7079_v3 = vunpack.i.l.bf16 %v7000_v58 }
 0x28e   : > { %1725 = vmatpush.msra.mxu0 %v1320_v41  ;;  %1585 = vmatpush.msrb.mxu1 %v7070_v55  ;;  %v7074_v41 = vld [vmem:[#allocation35_spill] sm:$0xff]  ;;  %v677_v55 = vsel %vm6882_vm4, %v7075_v26, %v3246_v29  ;;  %v598_v26 = vsel %vm6881_vm2, %v7082_v44, %v3206_v49  ;;  %v7086_v44 = vunpack.i.l.bf16 %v7003_v31 }
 0x28f   : > { %1665 = vmatpush.msra.mxu3 %v747_v57  ;;  %1701 = vmatpush.msra.mxu2 %v7072_v6  ;;  %v3186_v57 = vunpack.i.h.bf16 %v7003_v31  ;;  %v7077_v6 = vld [vmem:[#allocation37_spill] sm:$0xff]  ;;  %v668_v52 = vsel %vm6882_vm4, %v7079_v3, %v3226_v59 }
 0x290   : > { %1726 = vmatpush.msra.mxu0 %v1281_v62  ;;  %1586 = vmatpush.msrb.mxu1 %v7074_v41  ;;  %v6875_v10 = vunpack.i.l.bf16 %v7077_v6  ;;  %v7080_v62 = vld [vmem:[#allocation52_spill] sm:$0xff]  ;;  %v7081_v41 = vld [vmem:[#allocation23_spill] sm:$0xff] }
 0x291   : > { %1666 = vmatpush.msra.mxu3 %v677_v55  ;;  %1702 = vmatpush.msra.mxu2 %v7076_v60  ;;  %v757_v55 = vsel %vm6883_vm3, %v3286_v40, %v6872_v17  ;;  %v5620_v2 = vpop.permute.xlu2 %3728  ;;  %v589_v40 = vsel %vm6881_vm2, %v7086_v44, %v3186_v57  ;;  %v7089_v44 = vld [vmem:[#allocation3_spill] sm:$0xff] }
 0x292   : > { %1587 = vmatpush.msrb.mxu1 %v7078_v5  ;;  %v3666_v5 = vunpack.i.h.bf16 %v5388_v33  ;;  %v748_v17 = vsel %vm6883_vm3, %v3266_v14, %v6875_v10  ;;  %v3715_v14 = vunpack.i.l.bf16 %v5566_v12 }
 0x293   : > { %1667 = vmatpush.msra.mxu3 %v668_v52  ;;  %1703 = vmatpush.msra.mxu2 %v7080_v62  ;;  %v7083_v52 = vld [vmem:[#allocation28_spill] sm:$0xff] }
 0x294   : > { %1588 = vmatpush.msrb.mxu1 %v7081_v41  ;;  %v5614_v60 = vpop.permute.xlu0 %3718  ;;  %v3250_v3 = vunpack.i.l.bf16 %v7083_v52  ;;  %v7084_v62 = vld [vmem:[#allocation32_spill] sm:$0xff]  ;;  %v5636_v4 = vpop.permute.xlu1 %3738 }
 0x295   : > { %1668 = vmatpush.msra.mxu3 %v598_v26  ;;  %1704 = vmatpush.msra.mxu2 %v757_v55  ;;  %v6876_v58 = vunpack.i.l.bf16 %v5614_v60  ;;  %v6879_v41 = vunpack.i.l.bf16 %v7084_v62  ;;  %v3705_v26 = vunpack.i.l.bf16 %v5572_v38  ;;  %v3740_v10 = vunpack.i.l.bf16 %v5636_v4 }
 0x296   : > { %1589 = vmatpush.msrb.mxu1 %v7085_v42  ;;  %v6878_v42 = vunpack.i.l.bf16 %v7087_v50  ;;  %v678_v31 = vsel %vm6882_vm4, %v3246_v29, %v3250_v3 }
 0x297   : > { %1669 = vmatpush.msra.mxu3 %v589_v40  ;;  %1705 = vmatpush.msra.mxu2 %v748_v17  ;;  %v1242_v55 = vsel %vm6882_vm4, %v3666_v5, %v6876_v58  ;;  %v7088_v17 = vld [vmem:[#allocation10_spill] sm:$0xff]  ;;  %v669_v40 = vsel %vm6882_vm4, %v3226_v59, %v6879_v41  ;;  %v7090_v58 = vld [vmem:[#allocation4_spill] sm:$0xff]  ;;  %v1467_v29 = vsel %vm1058_vm8, %v3681_v37, %v3705_v26  ;;  %v3676_v37 = vunpack.i.h.bf16 %v5508_v27 }
 0x298   : > { %1590 = vmatpush.msrb.mxu1 %v4264_v11  ;;  %1727 = vmatpush.msra.mxu0 %v1242_v55  ;;  %v3691_v11 = vunpack.i.h.bf16 %v5531_v20  ;;  %v7091_v55 = vld [vmem:[#allocation22_spill] sm:$0xff] }
 0x299   : > { %1670 = vmatpush.msra.mxu3 %v7088_v17  ;;  %1706 = vmatpush.msra.mxu2 %v678_v31  ;;  %v6877_v31 = vunpack.i.l.bf16 %v7091_v55 }
 0x29a   : > { %1591 = vmatpush.msrb.mxu1 %v7089_v44  ;;  %1728 = vmatpush.msra.mxu0 %v5199_v45  ;;  %v7092_v45 = vunpack.i.h.bf16 %v5266_v35  ;;  %v3696_v44 = vunpack.i.h.bf16 %v5499_v51  ;;  %v7093_v35 = vunpack.i.h.bf16 %v5408_v39 }
 0x29b   : > { %1671 = vmatpush.msra.mxu3 %v7090_v58  ;;  %1707 = vmatpush.msra.mxu2 %v669_v40  ;;  %v599_v58 = vsel %vm6881_vm2, %v3206_v49, %v6878_v42  ;;  %v3741_v40 = vunpack.i.h.bf16 %v5636_v4  ;;  %v7095_v49 = vunpack.i.h.bf16 %v5311_v7  ;;  %v7096_v7 = vunpack.i.l.bf16 %v5531_v20 }
 0x29c   : > { %1592 = vmatmul.f32.vlgmr.msrb.gmra.mxu1 %v5328_v30  ;;  %v1465_v59 = vsel %vm1058_vm8, %v7092_v45, %v3680_v46  ;;  %v5667_v17 = vpop.permute.xlu0 %3733  ;;  %v1458_v15 = vsel %vm1058_vm8, %v7093_v35, %v3715_v14  ;;  %v7094_v46 = vunpack.i.l.bf16 %v5408_v39  ;;  %1729 = vmatpush.msra.mxu0 %v7010_v25  ;;  %v590_v45 = vsel %vm6881_vm2, %v3186_v57, %v6877_v31  ;;  %v5698_v35 = vpop.permute.xlu2 %3743 }
 0x29d   : > { %1761 = vmatpush.msrb.mxu3 %v1467_v29  ;;  %1681 = vmatpush.msra.mxu1 %v1465_v59  ;;  %v3551_v59 = vunpack.i.h.bf16 %v5079_v8  ;;  %v1152_v39 = vsel %vm1137_vm10, %v3676_v37, %v3740_v10  ;;  %v1399_v25 = vsel %vm979_vm7, %v7096_v7, %v3691_v11  ;;  %v7097_v57 = vunpack.i.h.bf16 %v5424_v23 }
 0x29e   : > { %1708 = vmatpush.msra.mxu2 %v599_v58  ;;  %v1456_v29 = vsel %vm1058_vm8, %v7095_v49, %v7094_v46  ;;  %v3701_v58 = vunpack.i.h.bf16 %v5522_v21  ;;  %1730 = vmatpush.msra.mxu0 %v1152_v39  ;;  %v3706_v49 = vunpack.i.h.bf16 %v5572_v38  ;;  %v7100_v7 = vunpack.i.l.bf16 %v5499_v51  ;;  %v7115_v51 = vld [vmem:[#allocation75_spill] sm:$0xff] }
 0x29f   : > { %1762 = vmatpush.msrb.mxu3 %v1458_v15  ;;  %1682 = vmatpush.msra.mxu1 %v1456_v29  ;;  %v7098_v15 = vunpack.i.l.bf16 %v5424_v23  ;;  %v7099_v29 = vld [vmem:[#allocation11_spill] sm:$0xff]  ;;  %v3711_v39 = vunpack.i.h.bf16 %v5527_v43  ;;  %v3721_v31 = vunpack.i.h.bf16 %v5614_v60  ;;  %v7105_v42 = vunpack.i.l.bf16 %v5360_v18 }
 0x2a0   : > { %1709 = vmatpush.msra.mxu2 %v590_v45  ;;  %v1143_v45 = vsel %vm1137_vm10, %v3551_v59, %v3741_v40  ;;  %v1360_v23 = vsel %vm900_vm6, %v7100_v7, %v3696_v44  ;;  %v7104_v7 = vunpack.i.h.bf16 %v5360_v18  ;;  %v7107_v18 = vunpack.i.h.bf16 %v5469_v48  ;;  %1672 = vmatmul.f32.vlgmr.msra.gmra.mxu3 %v5328_v30 }
 0x2a1   : > { %v1397_v46 = vsel %vm979_vm7, %v7098_v15, %v7097_v57  ;;  %1763 = vmatpush.msrb.mxu3 %v1399_v25  ;;  %v7101_v25 = vunpack.i.h.bf16 %v5305_v16  ;;  %v7102_v57 = vunpack.i.l.bf16 %v5305_v16  ;;  %1731 = vmatpush.msra.mxu0 %v1143_v45  ;;  %v7106_v16 = vunpack.i.l.bf16 %v5522_v21 }
 0x2a2   : > { %1683 = vmatpush.msra.mxu1 %v1397_v46  ;;  %1710 = vmatpush.msra.mxu2 %v7099_v29  ;;  %v3716_v46 = vunpack.i.h.bf16 %v5566_v12  ;;  %v7103_v29 = vld [vmem:[#allocation5_spill] sm:$0xff]  ;;  %v1319_v41 = vsel %vm6884_vm5, %v7105_v42, %v7104_v7  ;;  %v7108_v42 = vunpack.i.l.bf16 %v5469_v48  ;;  %v7111_v48 = vunpack.i.l.bf16 %v5388_v33 }
 0x2a3   : > { %v1358_v15 = vsel %vm900_vm6, %v7102_v57, %v7101_v25  ;;  %1764 = vmatpush.msrb.mxu3 %v1360_v23  ;;  %1776 = vmatpush.msrb.mxu0 %v4988_v54  ;;  %v1321_v45 = vsel %vm6884_vm5, %v7106_v16, %v3701_v58  ;;  %v1468_v54 = vsel %vm1058_vm8, %v3705_v26, %v3706_v49  ;;  %v7109_v25 = vunpack.i.l.bf16 %v5527_v43  ;;  %v7110_v26 = vld [vmem:[#allocation91_spill] sm:$0xff] }
 0x2a4   : > { %1684 = vmatpush.msra.mxu1 %v1358_v15  ;;  %1711 = vmatpush.msra.mxu2 %v7103_v29  ;;  %v5736_v23 = vpop.permute.xlu0 %3748  ;;  %v1280_v21 = vsel %vm6883_vm3, %v7108_v42, %v7107_v18  ;;  %v3725_v57 = vunpack.i.l.bf16 %v5581_v36  ;;  %v1241_v43 = vsel %vm6882_vm4, %v7111_v48, %v3666_v5  ;;  %v7112_v15 = vunpack.i.l.bf16 %v5614_v60  ;;  %v5773_v16 = vpop.permute.xlu2 %3758  ;;  %v7113_v5 = vld [vmem:[#allocation83_spill] sm:$0xff]  ;;  %v7122_v48 = vld [vmem:[#allocation60_spill] sm:$0xff] }
 0x2a5   : > { %1712 = vmatmul.f32.vlgmr.msra.gmra.mxu2 %v5328_v30  ;;  %1765 = vmatpush.msrb.mxu3 %v1321_v45  ;;  %v3730_v7 = vunpack.i.l.bf16 %v5620_v2  ;;  %v3735_v33 = vunpack.i.l.bf16 %v5667_v17  ;;  %v7114_v45 = vld [vmem:[#allocation82_spill] sm:$0xff]  ;;  %v3750_v18 = vunpack.i.l.bf16 %v5736_v23  ;;  %v3496_v4 = vunpack.i.h.bf16 %v4950_v47 }
 0x2a6   : > { %1685 = vmatpush.msra.mxu1 %v1319_v41  ;;  %1801 = vmatpush.msrb.mxu2 %v1468_v54  ;;  %v1282_v41 = vsel %vm6883_vm3, %v7109_v25, %v3711_v39  ;;  %v1243_v29 = vsel %vm6882_vm4, %v7112_v15, %v3721_v31  ;;  %v3745_v54 = vunpack.i.l.bf16 %v5698_v35  ;;  %v3271_v25 = vunpack.i.h.bf16 %v7077_v6  ;;  %v7124_v15 = vld [vmem:[#allocation36_spill] sm:$0xff] }
 0x2a7   : > { %1777 = vmatpush.msrb.mxu0 %v4970_v0  ;;  %1766 = vmatpush.msrb.mxu3 %v1282_v41  ;;  %v1459_v0 = vsel %vm1058_vm8, %v3715_v14, %v3716_v46  ;;  %v1400_v14 = vsel %vm979_vm7, %v3691_v11, %v3725_v57  ;;  %v1361_v20 = vsel %vm900_vm6, %v3696_v44, %v3730_v7  ;;  %v3760_v11 = vunpack.i.l.bf16 %v5773_v16  ;;  %v7121_v41 = vld [vmem:[#allocation87_spill] sm:$0xff] }
 0x2a8   : > { %1686 = vmatpush.msra.mxu1 %v1280_v21  ;;  %1802 = vmatpush.msrb.mxu2 %v1459_v0  ;;  %v7116_v44 = vunpack.i.l.bf16 %v5508_v27  ;;  %v7117_v27 = vld [vmem:[#allocation62_spill] sm:$0xff]  ;;  %v3471_v0 = vunpack.i.h.bf16 %v7121_v41 }
 0x2a9   : > { %1778 = vmatpush.msrb.mxu0 %v7110_v26  ;;  %1767 = vmatpush.msrb.mxu3 %v1243_v29  ;;  %v1153_v21 = vsel %vm1137_vm10, %v3740_v10, %v3760_v11  ;;  %v3761_v26 = vunpack.i.h.bf16 %v5773_v16  ;;  %v3315_v29 = vunpack.i.l.bf16 %v7124_v15 }
 0x2aa   : > { %1687 = vmatpush.msra.mxu1 %v1241_v43  ;;  %1803 = vmatpush.msrb.mxu2 %v1400_v14  ;;  %v1151_v42 = vsel %vm1137_vm10, %v7116_v44, %v3676_v37  ;;  %v7118_v37 = vunpack.i.l.bf16 %v5079_v8  ;;  %v7120_v8 = vunpack.i.l.bf16 %v4963_v34  ;;  %v7125_v14 = vld [vmem:[#allocation42_spill] sm:$0xff] }
 0x2ab   : > { %1779 = vmatpush.msrb.mxu0 %v7113_v5  ;;  %1768 = vmatpush.msrb.mxu3 %v5202_v53  ;;  %v1322_v53 = vsel %vm6884_vm5, %v3701_v58, %v3735_v33  ;;  %v1283_v58 = vsel %vm6883_vm3, %v3711_v39, %v3745_v54  ;;  %v7119_v39 = vunpack.i.h.bf16 %v4963_v34  ;;  %v3305_v5 = vunpack.i.l.bf16 %v7125_v14 }
 0x2ac   : > { %1688 = vmatpush.msra.mxu1 %v5077_v63  ;;  %3059 = vmatmul.msk.f32.vlgmr.msra.gmra.mxu0 %vm1492_vm11, %v5383_v22  ;;  %v5786_v60 = vpop.permute.xlu0 %3763  ;;  %v1142_v10 = vsel %vm1137_vm10, %v7118_v37, %v3551_v59  ;;  %v7126_v34 = vunpack.i.h.bf16 %v4871_v13 }
 0x2ad   : > { %1804 = vmatpush.msrb.mxu2 %v1361_v20  ;;  %1780 = vmatpush.msrb.mxu0 %v7114_v45  ;;  %v3765_v63 = vunpack.i.l.bf16 %v5786_v60  ;;  %v1074_v59 = vsel %vm1058_vm8, %v7120_v8, %v7119_v39  ;;  %v7127_v20 = vunpack.i.l.bf16 %v4871_v13  ;;  %v6880_v44 = vunpack.i.h.bf16 %v5786_v60  ;;  %v7135_v39 = vld [vmem:[#allocation80_spill] sm:$0xff] }
 0x2ae   : > { %1689 = vmatpush.msra.mxu1 %v4619_v9  ;;  %1769 = vmatpush.msrb.mxu3 %v7011_v61  ;;  %v3521_v61 = vunpack.i.h.bf16 %v4955_v56  ;;  %v3421_v8 = vunpack.i.h.bf16 %v7135_v39 }
 0x2af   : > { %1805 = vmatpush.msrb.mxu2 %v1322_v53  ;;  %1781 = vmatpush.msrb.mxu0 %v7115_v51  ;;  %v1144_v9 = vsel %vm1137_vm10, %v3741_v40, %v3765_v63  ;;  %v1244_v40 = vsel %vm6882_vm4, %v3721_v31, %v3750_v18  ;;  %v7123_v31 = vunpack.i.l.bf16 %v4955_v56  ;;  %v1065_v45 = vsel %vm1058_vm8, %v7127_v20, %v7126_v34  ;;  %v7128_v53 = vld [vmem:[#allocation73_spill] sm:$0xff]  ;;  %v7129_v56 = vld [vmem:[#allocation50_spill] sm:$0xff] }
 0x2b0   : > { %1690 = vmatpush.msra.mxu1 %v1151_v42  ;;  %1770 = vmatpush.msrb.mxu3 %v1153_v21  ;;  %v3446_v51 = vunpack.i.h.bf16 %v7128_v53  ;;  %v7130_v42 = vunpack.i.l.bf16 %v4950_v47  ;;  %v3251_v21 = vunpack.i.h.bf16 %v7083_v52  ;;  %v7138_v20 = vld [vmem:[#allocation81_spill] sm:$0xff]  ;;  %v7157_v47 = vld [vmem:[#allocation40_spill] sm:$0xff] }
 0x2b1   : > { %1806 = vmatpush.msrb.mxu2 %v1283_v58  ;;  %1782 = vmatpush.msrb.mxu0 %v7117_v27  ;;  %v1076_v43 = vsel %vm1058_vm8, %v7123_v31, %v3521_v61  ;;  %v7132_v58 = vld [vmem:[#allocation89_spill] sm:$0xff]  ;;  %v3231_v31 = vunpack.i.h.bf16 %v7084_v62 }
 0x2b2   : > { %1691 = vmatpush.msra.mxu1 %v1142_v10  ;;  %1771 = vmatpush.msrb.mxu3 %v1144_v9  ;;  %v7131_v9 = vld [vmem:[#allocation41_spill] sm:$0xff]  ;;  %v7133_v27 = vunpack.i.h.bf16 %v7132_v58  ;;  %v7134_v37 = vunpack.i.l.bf16 %v7132_v58 }
 0x2b3   : > { %1807 = vmatpush.msrb.mxu2 %v1244_v40  ;;  %3058 = vmatmul.msk.f32.vlgmr.msra.gmra.mxu1 %vm1492_vm11, %v5383_v22  ;;  %v3300_v13 = vunpack.i.l.bf16 %v7131_v9  ;;  %v750_v40 = vsel %vm6883_vm3, %v3271_v25, %v3315_v29 }
 0x2b4   : > { %1736 = vmatpush.msrb.mxu1 %v1074_v59  ;;  %1783 = vmatpush.msrb.mxu0 %v7122_v48  ;;  %v995_v10 = vsel %vm979_vm7, %v7134_v37, %v7133_v27  ;;  %v7136_v59 = vunpack.i.l.bf16 %v7121_v41  ;;  %v1145_v27 = vsel %vm1137_vm10, %v3765_v63, %v6880_v44  ;;  %v7142_v37 = vunpack.i.l.bf16 %v7128_v53  ;;  %v7146_v63 = vld [vmem:[#allocation39_spill] sm:$0xff] }
 0x2b5   : > { %1808 = vmatpush.msrb.mxu2 %v5245_v24  ;;  %1816 = vmatpush.msra.mxu3 %v1076_v43  ;;  %v1067_v24 = vsel %vm1058_vm8, %v7130_v42, %v3496_v4  ;;  %v7137_v43 = vld [vmem:[#allocation34_spill] sm:$0xff]  ;;  %v3290_v53 = vunpack.i.l.bf16 %v7146_v63  ;;  %v7162_v41 = vunpack.i.h.bf16 %v7073_v19 }
 0x2b6   : > { %1737 = vmatpush.msrb.mxu1 %v1065_v45  ;;  %1784 = vmatpush.msrb.mxu0 %v7129_v56  ;;  %v997_v48 = vsel %vm979_vm7, %v7136_v59, %v3471_v0  ;;  %v3295_v34 = vunpack.i.l.bf16 %v7137_v43  ;;  %v7139_v45 = vunpack.i.h.bf16 %v7138_v20  ;;  %v7140_v56 = vunpack.i.l.bf16 %v7138_v20 }
 0x2b7   : > { %1809 = vmatpush.msrb.mxu2 %v7013_v1  ;;  %1817 = vmatpush.msra.mxu3 %v1067_v24  ;;  %v1154_v1 = vsel %vm1137_vm10, %v3760_v11, %v3761_v26  ;;  %v680_v11 = vsel %vm6882_vm4, %v3251_v21, %v3305_v5  ;;  %v7141_v24 = vld [vmem:[#allocation70_spill] sm:$0xff] }
 0x2b8   : > { %1738 = vmatpush.msrb.mxu1 %v995_v10  ;;  %1785 = vmatpush.msrb.mxu0 %v750_v40  ;;  %v986_v42 = vsel %vm979_vm7, %v7140_v56, %v7139_v45  ;;  %v3396_v58 = vunpack.i.h.bf16 %v7141_v24  ;;  %v988_v10 = vsel %vm979_vm7, %v7142_v37, %v3446_v51  ;;  %v3211_v40 = vunpack.i.h.bf16 %v7087_v50  ;;  %v7149_v37 = vld [vmem:[#allocation72_spill] sm:$0xff] }
 0x2b9   : > { %1810 = vmatpush.msrb.mxu2 %v1154_v1  ;;  %1818 = vmatpush.msra.mxu3 %v997_v48  ;;  %v7143_v1 = vld [vmem:[#allocation63_spill] sm:$0xff]  ;;  %v671_v45 = vsel %vm6882_vm4, %v3231_v31, %v3300_v13  ;;  %v7147_v56 = vunpack.i.l.bf16 %v7135_v39  ;;  %v3191_v39 = vunpack.i.h.bf16 %v7091_v55 }
 0x2ba   : > { %1739 = vmatpush.msrb.mxu1 %v986_v42  ;;  %1786 = vmatpush.msrb.mxu0 %v680_v11  ;;  %v7144_v59 = vunpack.i.h.bf16 %v7143_v1  ;;  %v7145_v20 = vunpack.i.l.bf16 %v7143_v1  ;;  %v7148_v11 = vld [vmem:[#allocation49_spill] sm:$0xff]  ;;  %v7150_v1 = vunpack.i.h.bf16 %v7149_v37 }
 0x2bb   : > { %1811 = vmatpush.msrb.mxu2 %v1145_v27  ;;  %1819 = vmatpush.msra.mxu3 %v988_v10  ;;  %v918_v42 = vsel %vm900_vm6, %v7147_v56, %v3421_v8  ;;  %v3371_v27 = vunpack.i.h.bf16 %v7148_v11  ;;  %v601_v10 = vsel %vm6881_vm2, %v3211_v40, %v3295_v34 }
 0x2bc   : > { %v916_v48 = vsel %vm900_vm6, %v7145_v20, %v7144_v59  ;;  %1787 = vmatpush.msrb.mxu0 %v671_v45  ;;  %v7151_v59 = vunpack.i.l.bf16 %v7149_v37  ;;  %v7153_v45 = vld [vmem:[#allocation58_spill] sm:$0xff]  ;;  %v7154_v37 = vld [vmem:[#allocation59_spill] sm:$0xff]  ;;  %3061 = vmatmul.msk.f32.vlgmr.msrb.gmra.mxu2 %vm1492_vm11, %v5383_v22 }
 0x2bd   : > { %1740 = vmatpush.msrb.mxu1 %v916_v48  ;;  %1856 = vmatpush.msra.mxu2 %v3521_v61  ;;  %v7152_v48 = vunpack.i.l.bf16 %v7141_v24  ;;  %v3346_v56 = vunpack.i.h.bf16 %v7153_v45  ;;  %v592_v24 = vsel %vm6881_vm2, %v3191_v39, %v3290_v53 }
 0x2be   : > { %v907_v20 = vsel %vm900_vm6, %v7151_v59, %v7150_v1  ;;  %1820 = vmatpush.msra.mxu3 %v918_v42  ;;  %1788 = vmatpush.msrb.mxu0 %v601_v10  ;;  %v7155_v1 = vunpack.i.h.bf16 %v7154_v37  ;;  %v7156_v59 = vunpack.i.l.bf16 %v7154_v37  ;;  %v7159_v42 = vunpack.i.l.bf16 %v7157_v47  ;;  %v5952_v37 = vpop.permute.xlu1 %3753 }
 0x2bf   : > { %1741 = vmatpush.msrb.mxu1 %v907_v20  ;;  %v909_v61 = vsel %vm900_vm6, %v7152_v48, %v3396_v58  ;;  %1857 = vmatpush.msra.mxu2 %v3496_v4  ;;  %v7158_v4 = vunpack.i.h.bf16 %v7157_v47  ;;  %v7160_v10 = vunpack.i.l.bf16 %v7148_v11  ;;  %v7161_v48 = vld [vmem:[#allocation45_spill] sm:$0xff]  ;;  %v3755_v47 = vunpack.i.l.bf16 %v5952_v37 }
 0x2c0   : > { %v837_v44 = vsel %vm6884_vm5, %v7156_v59, %v7155_v1  ;;  %1821 = vmatpush.msra.mxu3 %v909_v61  ;;  %1789 = vmatpush.msrb.mxu0 %v592_v24  ;;  %v3321_v61 = vunpack.i.h.bf16 %v7161_v48  ;;  %v7164_v59 = vunpack.i.l.bf16 %v7153_v45  ;;  %v3316_v24 = vunpack.i.h.bf16 %v7124_v15 }
 0x2c1   : > { %1742 = vmatpush.msrb.mxu1 %v837_v44  ;;  %1858 = vmatpush.msra.mxu2 %v3471_v0  ;;  %v828_v20 = vsel %vm6884_vm5, %v7159_v42, %v7158_v4  ;;  %v839_v44 = vsel %vm6884_vm5, %v7160_v10, %v3371_v27  ;;  %v7163_v0 = vunpack.i.l.bf16 %v7073_v19  ;;  %v7165_v4 = vld [vmem:[#allocation6_spill] sm:$0xff]  ;;  %v7167_v45 = vunpack.i.l.bf16 %v7161_v48  ;;  %v7174_v48 = vld [vmem:[#allocation33_spill] sm:$0xff] }
 0x2c2   : > { %1822 = vmatpush.msra.mxu3 %v839_v44  ;;  %1790 = vmatpush.msrb.mxu0 %v7022_v28  ;;  %v830_v11 = vsel %vm6884_vm5, %v7164_v59, %v3346_v56  ;;  %v7166_v28 = vunpack.i.l.bf16 %v7077_v6  ;;  %v679_v6 = vsel %vm6882_vm4, %v3250_v3, %v3251_v21  ;;  %v3726_v10 = vunpack.i.h.bf16 %v5581_v36 }
 0x2c3   : > { %1743 = vmatpush.msrb.mxu1 %v828_v20  ;;  %1859 = vmatpush.msra.mxu2 %v3446_v51  ;;  %v758_v1 = vsel %vm6883_vm3, %v7163_v0, %v7162_v41  ;;  %v3306_v51 = vunpack.i.h.bf16 %v7125_v14  ;;  %v760_v42 = vsel %vm6883_vm3, %v7167_v45, %v3321_v61  ;;  %v3756_v20 = vunpack.i.h.bf16 %v5952_v37  ;;  %v7176_v37 = vld [vmem:[#allocation61_spill] sm:$0xff]  ;;  %v7177_v41 = vld [vmem:[#allocation16_spill] sm:$0xff] }
 0x2c4   : > { %1823 = vmatpush.msra.mxu3 %v830_v11  ;;  %1791 = vmatpush.msrb.mxu0 %v7165_v4  ;;  %v749_v19 = vsel %vm6883_vm3, %v7166_v28, %v3271_v25  ;;  %v3301_v25 = vunpack.i.h.bf16 %v7131_v9  ;;  %v7168_v44 = vunpack.i.l.bf16 %v7084_v62  ;;  %v3296_v15 = vunpack.i.h.bf16 %v7137_v43  ;;  %v7173_v43 = vld [vmem:[#allocation19_spill] sm:$0xff]  ;;  %v7180_v0 = vld [vmem:[#allocation65_spill] sm:$0xff] }
 0x2c5   : > { %1744 = vmatpush.msrb.mxu1 %v758_v1  ;;  %1860 = vmatpush.msra.mxu2 %v3421_v8  ;;  %v751_v8 = vsel %vm6883_vm3, %v3315_v29, %v3316_v24  ;;  %v681_v3 = vsel %vm6882_vm4, %v3305_v5, %v3306_v51  ;;  %v3731_v29 = vunpack.i.h.bf16 %v5620_v2  ;;  %v7169_v21 = vunpack.i.l.bf16 %v7087_v50 }
 0x2c6   : > { %1792 = vmatmul.f32.vlgmr.msrb.gmra.mxu0 %v5328_v30  ;;  %1824 = vmatpush.msra.mxu3 %v760_v42  ;;  %v670_v52 = vsel %vm6882_vm4, %v7168_v44, %v3231_v31  ;;  %v672_v14 = vsel %vm6882_vm4, %v3300_v13, %v3301_v25  ;;  %v3291_v5 = vunpack.i.h.bf16 %v7146_v63  ;;  %v3736_v31 = vunpack.i.h.bf16 %v5667_v17  ;;  %v7175_v63 = vld [vmem:[#allocation20_spill] sm:$0xff] }
 0x2c7   : > { %1745 = vmatpush.msrb.mxu1 %v749_v19  ;;  %1881 = vmatpush.msra.mxu0 %v3755_v47  ;;  %v600_v62 = vsel %vm6881_vm2, %v7169_v21, %v3211_v40  ;;  %v7170_v50 = vunpack.i.l.bf16 %v7091_v55  ;;  %v3746_v9 = vunpack.i.h.bf16 %v5698_v35  ;;  %v602_v13 = vsel %vm6881_vm2, %v3295_v34, %v3296_v15 }
 0x2c8   : > { %1861 = vmatpush.msra.mxu2 %v3396_v58  ;;  %1825 = vmatpush.msra.mxu3 %v751_v8  ;;  %v3751_v40 = vunpack.i.h.bf16 %v5736_v23  ;;  %v593_v55 = vsel %vm6881_vm2, %v3290_v53, %v3291_v5  ;;  %v1469_v34 = vsel %vm1058_vm8, %v3706_v49, %v3755_v47  ;;  %v1401_v49 = vsel %vm979_vm7, %v3725_v57, %v3726_v10  ;;  %v1513_v23 = vpop.f32.mrf.mxu0  ;;  %v6072_v11 = vpop.permute.xlu0 %1915 }
 0x2c9   : > { %1746 = vmatpush.msrb.mxu1 %v679_v6  ;;  %1882 = vmatpush.msra.mxu0 %v3756_v20  ;;  %v591_v58 = vsel %vm6881_vm2, %v7170_v50, %v3191_v39  ;;  %v7172_v39 = vld [vmem:[#allocation7_spill] sm:$0xff]  ;;  %v1362_v12 = vsel %vm900_vm6, %v3730_v7, %v3731_v29  ;;  %v1323_v36 = vsel %vm6884_vm5, %v3735_v33, %v3736_v31  ;;  %v7179_v7 = vld [vmem:[#allocation24_spill] sm:$0xff] }
 0x2ca   : > { %1862 = vmatpush.msra.mxu2 %v3371_v27  ;;  %1826 = vmatpush.msra.mxu3 %v681_v3  ;;  %v7171_v27 = vld [vmem:[#allocation13_spill] sm:$0xff]  ;;  %v1284_v2 = vsel %vm6883_vm3, %v3745_v54, %v3746_v9  ;;  %v1245_v57 = vsel %vm6882_vm4, %v3750_v18, %v3751_v40  ;;  %v1553_v54 = vpop.f32.mrf.mxu2 }
 0x2cb   : > { %1747 = vmatpush.msrb.mxu1 %v670_v52  ;;  %1883 = vmatpush.msra.mxu0 %v3726_v10  ;;  %v6069_v59 = vpop.permute.xlu2 %1899 }
 0x2cc   : > { %1863 = vmatpush.msra.mxu2 %v3346_v56  ;;  %1827 = vmatpush.msra.mxu3 %v672_v14  ;;  %v3769_v56 = vpop.permute.xlu1 %3768 }
 0x2cd   : > { %1748 = vmatpush.msrb.mxu1 %v600_v62  ;;  %1884 = vmatpush.msra.mxu0 %v3731_v29  ;;  %v3770_v53 = vunpack.i.l.bf16 %v3769_v56  ;;  %v3771_v38 = vunpack.i.h.bf16 %v3769_v56 }
 0x2ce   : > { %1864 = vmatpush.msra.mxu2 %v3321_v61  ;;  %3060 = vmatmul.msk.f32.vlgmr.msrb.gmra.mxu3 %vm1492_vm11, %v5383_v22  ;;  %v1460_v61 = vsel %vm1058_vm8, %v3716_v46, %v3756_v20  ;;  %v7178_v46 = vld [vmem:[#allocation15_spill] sm:$0xff] }
 0x2cf   : > { %1885 = vmatpush.msra.mxu0 %v3736_v31  ;;  %1749 = vmatpush.msrb.mxu1 %v591_v58  ;;  %v1155_v17 = vsel %vm1137_vm10, %v3761_v26, %v3770_v53 }
 0x2d0   : > { %1828 = vmatpush.msra.mxu3 %v602_v13  ;;  %1865 = vmatpush.msra.mxu2 %v3316_v24  ;;  %v1633_v42 = vpop.f32.mrf.mxu0 }
 0x2d1   : > { %1886 = vmatpush.msra.mxu0 %v3746_v9  ;;  %1750 = vmatpush.msrb.mxu1 %v7171_v27 }
 0x2d2   : > { %1829 = vmatpush.msra.mxu3 %v593_v55  ;;  %1866 = vmatpush.msra.mxu2 %v3306_v51 }
 0x2d3   : > { %1887 = vmatpush.msra.mxu0 %v3751_v40  ;;  %1751 = vmatpush.msrb.mxu1 %v7172_v39 }
 0x2d4   : > { %1830 = vmatpush.msra.mxu3 %v7173_v43  ;;  %1867 = vmatpush.msra.mxu2 %v3301_v25 }
 0x2d5   : > { %1752 = vmatmul.f32.vlgmr.msrb.gmra.mxu1 %v5328_v30  ;;  %1888 = vmatpush.msra.mxu0 %v7174_v48 }
 0x2d6   : > { %1841 = vmatpush.msra.mxu1 %v1469_v34  ;;  %1831 = vmatpush.msra.mxu3 %v7175_v63 }
 0x2d7   : > { %1868 = vmatpush.msra.mxu2 %v3296_v15  ;;  %3065 = vmatpush.msk.msra.mxu0 %vm486_vm1, %v7176_v37 }
 0x2d8   : > { %1842 = vmatpush.msra.mxu1 %v1460_v61  ;;  %1832 = vmatmul.f32.vlgmr.msra.gmra.mxu3 %v5328_v30 }
 0x2d9   : > { %1869 = vmatpush.msra.mxu2 %v3291_v5  ;;  %1890 = vmatpush.msra.mxu0 %v3770_v53  ;;  %v6084_v5 = vld [vmem:[%s6688_s2] sm:$0xff] }
 0x2da   : > { %1843 = vmatpush.msra.mxu1 %v1401_v49  ;;  %v2130_v9 = vperm.slane %v6084_v5, 0 }
 0x2db   : > { %3063 = vmatpush.msk.msra.mxu2 %vm486_vm1, %v7177_v41  ;;  %1891 = vmatpush.msra.mxu0 %v3771_v38 }
 0x2dc   : > { %1844 = vmatpush.msra.mxu1 %v1362_v12  ;;  %3066 = vmatmul.msk.f32.vlgmr.msra.gmra.mxu0 %vm1492_vm11, %v5383_v22 }
 0x2dd   : > { %3064 = vmatpush.msk.msra.mxu2 %vm486_vm1, %v7178_v46 }
 0x2de   : > { %1845 = vmatpush.msra.mxu1 %v1323_v36  ;;  %1872 = vmatmul.f32.vlgmr.msra.gmra.mxu2 %v5328_v30  ;;  %v7181_v30 = vunpack.i.h.bf16 %v5786_v60  ;;  %v1573_v1 = vpop.f32.mrf.mxu3 }
 0x2df   : > { %v1574_v26 = vadd.f32 %v1573_v1, %v1553_v54 }
 0x2e0   : > { %1846 = vmatpush.msra.mxu1 %v1284_v2  ;;  %v1146_v35 = vsel %vm1137_vm10, %v7181_v30, %v3771_v38 }
 0x2e1   : > { %v1903_v47 = vmul.f32 %v6069_v59, %v1574_v26 }
 0x2e2   : > { %1847 = vmatpush.msra.mxu1 %v1245_v57  ;;  %v2134_v57 = vperm.slane %v6084_v5, 4 }
 0x2e4   : > { %1848 = vmatpush.msra.mxu1 %v7179_v7 }
 0x2e6   : > { %1849 = vmatpush.msra.mxu1 %v7180_v0 }
 0x2e8   : > { %1850 = vmatpush.msra.mxu1 %v1155_v17 }
 0x2ea   : > { %1851 = vmatpush.msra.mxu1 %v1146_v35 }
 0x2eb   : > { %3062 = vmatmul.msk.f32.vlgmr.msra.gmra.mxu1 %vm1492_vm11, %v5383_v22  ;;  %v6077_v22 = vadd.f32 %v6072_v11, %v1903_v47 }
 0x2ed   : > { %v3068_v19 = vmul.f32 -1.442695, %v6077_v22 }
 0x2f8   : > { %v1533_v33 = vpop.f32.mrf.mxu1 }
 0x2f9   : > { %v1534_v18 = vadd.f32 %v1533_v33, %v1513_v23 }
 0x2fb   : > { %v1902_v16 = vmul.f32 %v6069_v59, %v1534_v18 }
 0x2fd   : > { %v1918_v60 = vadd.f32 %v6072_v11, %v1902_v16 }
 0x2ff   : > { %v3067_v24 = vmul.f32 -1.442695, %v1918_v60 }
 0x300   : > { %v1613_v29 = vpop.f32.mrf.mxu3 }
 0x301   : > { %3984 = vpow2.f32 %v3067_v24 }
 0x307   : > { %v3985_v4 = vpop.eup %3984 }
 0x308   : > { %v1958_v28 = vadd.f32 1.0, %v3985_v4 }
 0x30a   : > { %3986 = vrcp.f32 %v1958_v28  ;;  %v1979_v6 = vand.u32 2147483648, %v1958_v28  ;;  %vm1973_vm12 = vweird.f32 %v1958_v28  ;;  %v1977_v10 = vand.u32 2147483647, %v1958_v28 }
 0x30b   : > { %3988 = vpow2.f32 %v3068_v19  ;;  %v1653_v20 = vpop.f32.mrf.mxu2 }
 0x30c   : > { %v1654_v44 = vadd.f32 %v1653_v20, %v1633_v42  ;;  %v1980_v3 = vor.u32 1.1754944e-38, %v1979_v6  ;;  %vm1978_vm15 = vcmp.eq.f32.partialorder %v1977_v10, 8.507059e+37 }
 0x30e   : > { %v1905_v62 = vmul.f32 %v6069_v59, %v1654_v44 }
 0x310   : > { %v3987_v51 = vpop.eup %3986  ;;  %v6089_v27 = vadd.f32 %v6072_v11, %v1905_v62 }
 0x311   : > { %v1969_v45 = vmul.f32 %v3987_v51, %v1958_v28  ;;  %v3989_v25 = vpop.eup %3988  ;;  %vm1974_vm13 = vweird.f32 %v3987_v51 }
 0x312   : > { %vm1975_vm14 = vmor %vm1973_vm12, %vm1974_vm13  ;;  %v1959_v15 = vadd.f32 1.0, %v3989_v25  ;;  %v3070_v34 = vmul.f32 -1.442695, %v6089_v27 }
 0x313   : > { %v1970_v8 = vsub.f32 1.0, %v1969_v45  ;;  %v2132_v45 = vperm.slane %v6084_v5, 2 }
 0x314   : > { %3990 = vrcp.f32 %v1959_v15  ;;  %vm1988_vm11 = vweird.f32 %v1959_v15  ;;  %v1994_v41 = vand.u32 2147483648, %v1959_v15  ;;  %v1992_v46 = vand.u32 2147483647, %v1959_v15 }
 0x315   : > { %v1971_v52 = vmul.f32 %v3987_v51, %v1970_v8 }
 0x316   : > { %v1995_v30 = vor.u32 1.1754944e-38, %v1994_v41 }
 0x317   : > { %v1972_v21 = vadd.f32 %v3987_v51, %v1971_v52 }
 0x319   : > { %v1593_v14 = vpop.f32.mrf.mxu1  ;;  %v1976_v31 = vsel %vm1975_vm14, %v3987_v51, %v1972_v21  ;;  %vm1993_vm14 = vcmp.eq.f32.partialorder %v1992_v46, 8.507059e+37  ;;  %v2131_v51 = vperm.slane %v6084_v5, 1 }
 0x31a   : > { %v1614_v50 = vadd.f32 %v1613_v29, %v1593_v14  ;;  %v1981_v58 = vsel %vm1978_vm15, %v1980_v3, %v1976_v31  ;;  %v3991_v56 = vpop.eup %3990 }
 0x31b   : > { %v2118_v13 = vmul.f32 %v1981_v58, %v1918_v60  ;;  %v1984_v48 = vmul.f32 %v3991_v56, %v1959_v15  ;;  %vm1989_vm12 = vweird.f32 %v3991_v56 }
 0x31c   : > { %v1904_v40 = vmul.f32 %v6069_v59, %v1614_v50  ;;  %vm6096_vm13 = vmor %vm1988_vm11, %vm1989_vm12 }
 0x31d   : > { %v2150_v39 = vmul.f32 %v2130_v9, %v2118_v13  ;;  %v1985_v63 = vsub.f32 1.0, %v1984_v48 }
 0x31e   : > { %v1920_v55 = vadd.f32 %v6072_v11, %v1904_v40 }
 0x31f   : > { %2170 = vrot.lane.b32.xlu1 %v2150_v39, %s4072_s15  ;;  %v1986_v38 = vmul.f32 %v3991_v56, %v1985_v63 }
 0x320   : > { %v3069_v43 = vmul.f32 -1.442695, %v1920_v55 }
 0x321   : > { %v1987_v12 = vadd.f32 %v3991_v56, %v1986_v38 }
 0x322   : > { %3992 = vpow2.f32 %v3069_v43 }
 0x323   : > { %3994 = vpow2.f32 %v3070_v34  ;;  %v1673_v36 = vpop.f32.mrf.mxu3  ;;  %v1991_v33 = vsel %vm6096_vm13, %v3991_v56, %v1987_v12  ;;  %v2133_v12 = vperm.slane %v6084_v5, 3 }
 0x324   : > { %v1996_v24 = vsel %vm1993_vm14, %v1995_v30, %v1991_v33 }
 0x325   : > { %v2119_v19 = vmul.f32 %v1996_v24, %v6077_v22 }
 0x327   : > { %v2151_v10 = vmul.f32 %v2131_v51, %v2119_v19 }
 0x328   : > { %v3993_v53 = vpop.eup %3992  ;;  %v1713_v6 = vpop.f32.mrf.mxu2 }
 0x329   : > { %v1960_v61 = vadd.f32 1.0, %v3993_v53  ;;  %v3995_v37 = vpop.eup %3994  ;;  %v1733_v25 = vpop.f32.mrf.mxu0 }
 0x32a   : > { %v6094_v49 = vadd.f32 1.0, %v3995_v37  ;;  %v1734_v56 = vadd.f32 %v1733_v25, %v1713_v6 }
 0x32b   : > { %3996 = vrcp.f32 %v1960_v61  ;;  %v2009_v35 = vand.u32 2147483648, %v1960_v61  ;;  %vm2003_vm15 = vweird.f32 %v1960_v61  ;;  %v2007_v18 = vand.u32 2147483647, %v1960_v61 }
 0x32c   : > { %3998 = vrcp.f32 %v6094_v49  ;;  %v2024_v31 = vand.u32 2147483648, %v6094_v49  ;;  %v2022_v9 = vand.u32 2147483647, %v6094_v49  ;;  %v1907_v38 = vmul.f32 %v6069_v59, %v1734_v56 }
 0x32d   : > { %v2010_v26 = vor.u32 1.1754944e-38, %v2009_v35  ;;  %vm2008_vm12 = vcmp.eq.f32.partialorder %v2007_v18, 8.507059e+37 }
 0x32e   : > { %v2025_v39 = vor.u32 1.1754944e-38, %v2024_v31 }
 0x330   : > { %v1693_v2 = vpop.f32.mrf.mxu1 }
 0x331   : > { %v3997_v7 = vpop.eup %3996  ;;  %v1694_v0 = vadd.f32 %v1693_v2, %v1673_v36 }
 0x332   : > { %v1999_v17 = vmul.f32 %v3997_v7, %v1960_v61  ;;  %vm2004_vm2 = vweird.f32 %v3997_v7  ;;  %v3999_v47 = vpop.eup %3998 }
 0x333   : > { %v1906_v23 = vmul.f32 %v6069_v59, %v1694_v0  ;;  %vm2005_vm11 = vmor %vm2003_vm15, %vm2004_vm2  ;;  %v2014_v42 = vmul.f32 %v3999_v47, %v6094_v49  ;;  %vm2018_vm2 = vweird.f32 %v6094_v49  ;;  %vm2019_vm13 = vweird.f32 %v3999_v47 }
 0x334   : > { %v2000_v54 = vsub.f32 1.0, %v1999_v17  ;;  %vm2020_vm14 = vmor %vm2018_vm2, %vm2019_vm13  ;;  %vm2023_vm15 = vcmp.eq.f32.partialorder %v2022_v9, 8.507059e+37  ;;  %v6126_v0 = vadd.f32 %v6072_v11, %v1907_v38 }
 0x335   : > { %v6105_v1 = vadd.f32 %v6072_v11, %v1906_v23  ;;  %v2015_v3 = vsub.f32 1.0, %v2014_v42 }
 0x336   : > { %v2001_v16 = vmul.f32 %v3997_v7, %v2000_v54 }
 0x337   : > { %v3071_v60 = vmul.f32 -1.442695, %v6105_v1  ;;  %v2016_v22 = vmul.f32 %v3999_v47, %v2015_v3 }
 0x338   : > { %v2002_v4 = vadd.f32 %v3997_v7, %v2001_v16  ;;  %v3072_v16 = vmul.f32 -1.442695, %v6126_v0 }
 0x339   : > { %4000 = vpow2.f32 %v3071_v60  ;;  %v2017_v58 = vadd.f32 %v3999_v47, %v2016_v22 }
 0x33a   : > { %v2006_v28 = vsel %vm2005_vm11, %v3997_v7, %v2002_v4 }
 0x33b   : > { %v2011_v20 = vsel %vm2008_vm12, %v2010_v26, %v2006_v28  ;;  %v2021_v34 = vsel %vm2020_vm14, %v3999_v47, %v2017_v58 }
 0x33c   : > { %v2120_v8 = vmul.f32 %v2011_v20, %v1920_v55  ;;  %v2026_v37 = vsel %vm2023_vm15, %v2025_v39, %v2021_v34 }
 0x33d   : > { %v2121_v46 = vmul.f32 %v2026_v37, %v6089_v27 }
 0x33e   : > { %v2152_v44 = vmul.f32 %v2132_v45, %v2120_v8 }
 0x33f   : > { %v4001_v52 = vpop.eup %4000  ;;  %v1813_v62 = vpop.f32.mrf.mxu2  ;;  %v2153_v18 = vmul.f32 %v2133_v12, %v2121_v46 }
 0x340   : > { %v1962_v15 = vadd.f32 1.0, %v4001_v52  ;;  %v3774_v29 = vpack.i.bf16 %v2152_v44, %v2151_v10 }
 0x342   : > { %4002 = vrcp.f32 %v1962_v15  ;;  %3775 = vrot.lane.b32.xlu2 %v3774_v29, %s4072_s15  ;;  %v2039_v63 = vand.u32 2147483648, %v1962_v15  ;;  %v2037_v61 = vand.u32 2147483647, %v1962_v15  ;;  %vm2033_vm12 = vweird.f32 %v1962_v15 }
 0x343   : > { %v1793_v21 = vpop.f32.mrf.mxu0  ;;  %v2137_v29 = vperm.slane %v6084_v5, 7 }
 0x344   : > { %v1814_v14 = vadd.f32 %v1813_v62, %v1793_v21  ;;  %v2040_v41 = vor.u32 1.1754944e-38, %v2039_v63  ;;  %vm2038_vm13 = vcmp.eq.f32.partialorder %v2037_v61, 8.507059e+37 }
 0x346   : > { %v1909_v50 = vmul.f32 %v6069_v59, %v1814_v14 }
 0x348   : > { %v4003_v13 = vpop.eup %4002  ;;  %v6118_v40 = vadd.f32 %v6072_v11, %v1909_v50 }
 0x349   : > { %v2029_v55 = vmul.f32 %v4003_v13, %v1962_v15  ;;  %vm2034_vm11 = vweird.f32 %v4003_v13 }
 0x34a   : > { %v3074_v43 = vmul.f32 -1.442695, %v6118_v40  ;;  %vm2035_vm2 = vmor %vm2033_vm12, %vm2034_vm11 }
 0x34b   : > { %v2030_v48 = vsub.f32 1.0, %v2029_v55 }
 0x34c   : > { %4004 = vpow2.f32 %v3074_v43 }
 0x34d   : > { %v2031_v53 = vmul.f32 %v4003_v13, %v2030_v48 }
 0x34f   : > { %v2032_v49 = vadd.f32 %v4003_v13, %v2031_v53 }
 0x351   : > { %v2036_v36 = vsel %vm2035_vm2, %v4003_v13, %v2032_v49  ;;  %v1773_v2 = vpop.f32.mrf.mxu3 }
 0x352   : > { %v4005_v7 = vpop.eup %4004  ;;  %v2041_v17 = vsel %vm2038_vm13, %v2040_v41, %v2036_v36  ;;  %v1753_v30 = vpop.f32.mrf.mxu1 }
 0x353   : > { %v2122_v35 = vmul.f32 %v2041_v17, %v6105_v1  ;;  %v1965_v23 = vadd.f32 1.0, %v4005_v7  ;;  %v1774_v33 = vadd.f32 %v1773_v2, %v1753_v30 }
 0x355   : > { %4006 = vrcp.f32 %v1965_v23  ;;  %v1908_v54 = vmul.f32 %v6069_v59, %v1774_v33  ;;  %v2154_v27 = vmul.f32 %v2134_v57, %v2122_v35  ;;  %v2084_v45 = vand.u32 2147483648, %v1965_v23 }
 0x356   : > { %4008 = vpow2.f32 %v3072_v16  ;;  %v2082_v6 = vand.u32 2147483647, %v1965_v23  ;;  %vm2078_vm15 = vweird.f32 %v1965_v23 }
 0x357   : > { %v6132_v26 = vadd.f32 %v6072_v11, %v1908_v54  ;;  %v3779_v60 = vpack.i.bf16 %v2154_v27, %v2153_v18  ;;  %v2085_v52 = vor.u32 1.1754944e-38, %v2084_v45  ;;  %v384_v27 = vld [vmem:[%s6688_s2 + $0x8] sm:$0x3] }
 0x358   : > { %vm2083_vm12 = vcmp.eq.f32.partialorder %v2082_v6, 8.507059e+37  ;;  %v2139_v45 = vperm.slane %v384_v27, 1 }
 0x359   : > { %v3073_v24 = vmul.f32 -1.442695, %v6132_v26  ;;  %3780 = vrot.lane.b32.xlu1 %v3779_v60, %s4072_s15  ;;  %v1893_v28 = vpop.f32.mrf.mxu0 }
 0x35b   : > { %v4007_v47 = vpop.eup %4006  ;;  %4010 = vpow2.f32 %v3073_v24  ;;  %v1833_v22 = vpop.f32.mrf.mxu3 }
 0x35c   : > { %v2074_v1 = vmul.f32 %v4007_v47, %v1965_v23  ;;  %v4009_v19 = vpop.eup %4008  ;;  %vm2079_vm14 = vweird.f32 %v4007_v47 }
 0x35d   : > { %v6136_v10 = vadd.f32 1.0, %v4009_v19  ;;  %vm2080_vm11 = vmor %vm2078_vm15, %vm2079_vm14 }
 0x35e   : > { %v2075_v4 = vsub.f32 1.0, %v2074_v1 }
 0x35f   : > { %v2052_v12 = vand.u32 2147483647, %v6136_v10  ;;  %v2054_v54 = vand.u32 2147483648, %v6136_v10 }
 0x360   : > { %v2076_v51 = vmul.f32 %v4007_v47, %v2075_v4 }
 0x361   : > { %v4011_v42 = vpop.eup %4010  ;;  %v1873_v20 = vpop.f32.mrf.mxu2 }
 0x362   : > { %v1894_v25 = vadd.f32 %v1893_v28, %v1873_v20  ;;  %v2077_v8 = vadd.f32 %v4007_v47, %v2076_v51  ;;  %v6138_v44 = vadd.f32 1.0, %v4011_v42  ;;  %v2055_v42 = vor.u32 1.1754944e-38, %v2054_v54 }
 0x364   : > { %v1911_v3 = vmul.f32 %v6069_v59, %v1894_v25  ;;  %v2081_v15 = vsel %vm2080_vm11, %v4007_v47, %v2077_v8  ;;  %4012 = vrcp.f32 %v6138_v44  ;;  %v2067_v57 = vand.u32 2147483647, %v6138_v44 }
 0x365   : > { %v2086_v21 = vsel %vm2083_vm12, %v2085_v52, %v2081_v15  ;;  %4014 = vrcp.f32 %v6136_v10  ;;  %v2069_v7 = vand.u32 2147483648, %v6138_v44  ;;  %vm2063_vm14 = vweird.f32 %v6138_v44 }
 0x366   : > { %v6143_v62 = vadd.f32 %v6072_v11, %v1911_v3  ;;  %v2125_v14 = vmul.f32 %v2086_v21, %v6118_v40  ;;  %vm2048_vm11 = vweird.f32 %v6136_v10  ;;  %vm6162_vm12 = vcmp.eq.f32.partialorder %v2052_v12, 8.507059e+37 }
 0x367   : > { %v2070_v4 = vor.u32 1.1754944e-38, %v2069_v7  ;;  %v2136_v3 = vperm.slane %v6084_v5, 6  ;;  %v2135_v21 = vperm.slane %v6084_v5, 5 }
 0x368   : > { %v1853_v31 = vpop.f32.mrf.mxu1  ;;  %v3076_v50 = vmul.f32 -1.442695, %v6143_v62  ;;  %v2157_v9 = vmul.f32 %v2137_v29, %v2125_v14 }
 0x369   : > { %v1854_v58 = vadd.f32 %v1853_v31, %v1833_v22 }
 0x36a   : > { %4016 = vpow2.f32 %v3076_v50  ;;  %2184 = vrot.lane.b32.xlu0 %v2157_v9, %s4072_s15  ;;  %v4013_v39 = vpop.eup %4012 }
 0x36b   : > { %v1910_v13 = vmul.f32 %v6069_v59, %v1854_v58  ;;  %v4015_v56 = vpop.eup %4014  ;;  %v2059_v34 = vmul.f32 %v4013_v39, %v6138_v44  ;;  %vm2064_vm13 = vweird.f32 %v4013_v39  ;;  %v2138_v58 = vperm.slane %v384_v27, 0 }
 0x36c   : > { %v2044_v48 = vmul.f32 %v4015_v56, %v6136_v10  ;;  %vm2049_vm2 = vweird.f32 %v4015_v56  ;;  %vm6167_vm4 = vmor %vm2063_vm14, %vm2064_vm13  ;;  %vm2068_vm13 = vcmp.eq.f32.partialorder %v2067_v57, 8.507059e+37 }
 0x36d   : > { %v6152_v55 = vadd.f32 %v6072_v11, %v1910_v13  ;;  %v2060_v53 = vsub.f32 1.0, %v2059_v34  ;;  %vm6175_vm3 = vmor %vm2048_vm11, %vm2049_vm2  ;;  %vm7191_vm11 = vcmask 769024  }
 0x36e   : > { %v2045_v61 = vsub.f32 1.0, %v2044_v48 }
 0x36f   : > { %v3075_v40 = vmul.f32 -1.442695, %v6152_v55  ;;  %v2061_v38 = vmul.f32 %v4013_v39, %v2060_v53 }
 0x370   : > { %v4017_v43 = vpop.eup %4016  ;;  %v2046_v11 = vmul.f32 %v4015_v56, %v2045_v61 }
 0x371   : > { %4018 = vpow2.f32 %v3075_v40  ;;  %v1967_v63 = vadd.f32 1.0, %v4017_v43  ;;  %v2062_v46 = vadd.f32 %v4013_v39, %v2061_v38 }
 0x372   : > { %v2047_v2 = vadd.f32 %v4015_v56, %v2046_v11 }
 0x373   : > { %4020 = vrcp.f32 %v1967_v63  ;;  %v2114_v17 = vand.u32 2147483648, %v1967_v63  ;;  %v2112_v35 = vand.u32 2147483647, %v1967_v63  ;;  %v2066_v60 = vsel %vm6167_vm4, %v4013_v39, %v2062_v46 }
 0x374   : > { %vm2108_vm5 = vweird.f32 %v1967_v63  ;;  %v2051_v1 = vsel %vm6175_vm3, %v4015_v56, %v2047_v2  ;;  %v2071_v20 = vsel %vm2068_vm13, %v2070_v4, %v2066_v60 }
 0x375   : > { %v2115_v28 = vor.u32 1.1754944e-38, %v2114_v17  ;;  %vm2113_vm2 = vcmp.eq.f32.partialorder %v2112_v35, 8.507059e+37  ;;  %v2056_v52 = vsel %vm6162_vm12, %v2055_v42, %v2051_v1  ;;  %v2124_v15 = vmul.f32 %v2071_v20, %v6132_v26  ;;  %v2730_v20 = vld [vmem:[%s6693_s7] sm:$0xff] }
 0x376   : > { %v2123_v31 = vmul.f32 %v2056_v52, %v6126_v0 }
 0x377   : > { %v4019_v59 = vpop.eup %4018  ;;  %v2156_v9 = vmul.f32 %v2136_v3, %v2124_v15 }
 0x378   : > { %v1966_v37 = vadd.f32 1.0, %v4019_v59  ;;  %v2155_v39 = vmul.f32 %v2135_v21, %v2123_v31 }
 0x379   : > { %v4021_v49 = vpop.eup %4020 }
 0x37a   : > { %4022 = vrcp.f32 %v1966_v37  ;;  %v2104_v41 = vmul.f32 %v4021_v49, %v1967_v63  ;;  %vm2109_vm15 = vweird.f32 %v4021_v49  ;;  %v2099_v6 = vand.u32 2147483648, %v1966_v37 }
 0x37b   : > { %vm2110_vm14 = vmor %vm2108_vm5, %vm2109_vm15  ;;  %v2097_v10 = vand.u32 2147483647, %v1966_v37  ;;  %vm2093_vm3 = vweird.f32 %v1966_v37  ;;  %v3784_v56 = vpack.i.bf16 %v2156_v9, %v2155_v39 }
 0x37c   : > { %v2105_v36 = vsub.f32 1.0, %v2104_v41  ;;  %v2100_v14 = vor.u32 1.1754944e-38, %v2099_v6 }
 0x37d   : > { %vm2098_vm15 = vcmp.eq.f32.partialorder %v2097_v10, 8.507059e+37 }
 0x37e   : > { %v2106_v30 = vmul.f32 %v4021_v49, %v2105_v36 }
 0x380   : > { %v4023_v23 = vpop.eup %4022  ;;  %v2107_v47 = vadd.f32 %v4021_v49, %v2106_v30 }
 0x381   : > { %v2089_v24 = vmul.f32 %v4023_v23, %v1966_v37  ;;  %vm2094_vm4 = vweird.f32 %v4023_v23 }
 0x382   : > { %v2111_v51 = vsel %vm2110_vm14, %v4021_v49, %v2107_v47  ;;  %vm2095_vm5 = vmor %vm2093_vm3, %vm2094_vm4  ;;  %vm7196_vm4 = vcmask 1031168  }
 0x383   : > { %v2090_v19 = vsub.f32 1.0, %v2089_v24  ;;  %v2116_v25 = vsel %vm2113_vm2, %v2115_v28, %v2111_v51  ;;  %vm7194_vm14 = vmmov %vm7191_vm11 }
 0x384   : > { %v2127_v44 = vmul.f32 %v2116_v25, %v6143_v62  ;;  %vm7195_vm2 = vmmov %vm7191_vm11 }
 0x385   : > { %v2091_v8 = vmul.f32 %v4023_v23, %v2090_v19  ;;  %vm7197_vm3 = vmmov %vm7196_vm4 }
 0x386   : > { %v2159_v22 = vmul.f32 %v2139_v45, %v2127_v44  ;;  %v2746_v44 = vld [vmem:[%s6694_s8] sm:$0xff] }
 0x387   : > { %v2092_v29 = vadd.f32 %v4023_v23, %v2091_v8 }
 0x388   : > { %2188 = vrot.lane.b32.xlu2 %v2159_v22, %s4072_s15 }
 0x389   : > { %v2096_v50 = vsel %vm2095_vm5, %v4023_v23, %v2092_v29  ;;  %vm7198_vm5 = vmmov %vm7197_vm3 }
 0x38a   : > { %v2101_v62 = vsel %vm2098_vm15, %v2100_v14, %v2096_v50  ;;  %vm7199_vm15 = vcmask 1039360  }
 0x38b   : > { %v2126_v13 = vmul.f32 %v2101_v62, %v6152_v55 }
 0x38d   : > { %v2158_v26 = vmul.f32 %v2138_v58, %v2126_v13 }
 0x38f   : > { %2186 = vrot.lane.b32.xlu1 %v2158_v26, %s4072_s15 }
 0x390   : > { %3785 = vrot.lane.b32.xlu2 %v3784_v56, %s4072_s15 }
 0x391   : > { %v6195_v5 = vpop.permute.xlu1 %2170 }
 0x392   : > { %v2209_v34 = vsel %vm445_vm0, 0.0, %v6195_v5 }
 0x39c   : > { %v3776_v40 = vpop.permute.xlu2 %3775 }
 0x39d   : > { %v3778_v0 = vunpack.i.h.bf16 %v3776_v40  ;;  %v3777_v43 = vunpack.i.l.bf16 %v3776_v40 }
 0x39f   : > { %v6201_v48 = vsel %vm445_vm0, %v6195_v5, %v3777_v43  ;;  %v6204_v55 = vsel %vm445_vm0, %v3777_v43, %v3778_v0 }
 0x3a0   : > { %v3799_v63 = vpack.i.bf16 %v6204_v55, %v6201_v48  ;;  %v3789_v53 = vpack.i.bf16 %v6201_v48, %v2209_v34 }
 0x3a2   : > { %3800 = vrot.lane.b32.xlu2 %v3799_v63, %s4080_s27  ;;  %3790 = vrot.lane.b32.xlu0 %v3789_v53, %s4073_s20 }
 0x3aa   : > { %3815 = vrot.lane.b32.xlu2 %v3799_v63, %s4077_s24  ;;  %3805 = vrot.lane.b32.xlu0 %v3799_v63, %s4079_s26 }
 0x3cb   : > { %v3781_v61 = vpop.permute.xlu1 %3780 }
 0x3cc   : > { %v3782_v59 = vunpack.i.l.bf16 %v3781_v61  ;;  %v3783_v41 = vunpack.i.h.bf16 %v3781_v61 }
 0x3ce   : > { %v6214_v37 = vsel %vm445_vm0, %v3778_v0, %v3782_v59  ;;  %v6230_v36 = vsel %vm445_vm0, %v3782_v59, %v3783_v41 }
 0x3cf   : > { %v3829_v38 = vpack.i.bf16 %v6214_v37, %v2209_v34  ;;  %v3794_v49 = vpack.i.bf16 %v6214_v37, %v6204_v55 }
 0x3d1   : > { %3830 = vrot.lane.b32.xlu2 %v3829_v38, %s4079_s26  ;;  %3820 = vrot.lane.b32.xlu0 %v3829_v38, %s4080_s27 }
 0x3d2   : > { %3795 = vrot.lane.b32.xlu1 %v3794_v49, %s4073_s20 }
 0x3d9   : > { %3850 = vrot.lane.b32.xlu2 %v3829_v38, %s4077_s24  ;;  %3835 = vrot.lane.b32.xlu0 %v3799_v63, %s4075_s22 }
 0x3da   : > { %3810 = vrot.lane.b32.xlu1 %v3799_v63, %s4078_s25 }
 0x3dc   : > { %v2185_v17 = vpop.permute.xlu0 %2184 }
 0x3e1   : > { %3855 = vrot.lane.b32.xlu2 %v3829_v38, %s4076_s23 }
 0x3e2   : > { %3825 = vrot.lane.b32.xlu1 %v3799_v63, %s4076_s23  ;;  %v2189_v11 = vpop.permute.xlu2 %2188 }
 0x3e9   : > { %3860 = vrot.lane.b32.xlu2 %v3829_v38, %s4075_s22 }
 0x3ea   : > { %3840 = vrot.lane.b32.xlu1 %v3829_v38, %s4078_s25  ;;  %v3786_v12 = vpop.permute.xlu2 %3785 }
 0x3eb   : > { %v3787_v46 = vunpack.i.l.bf16 %v3786_v12  ;;  %v3788_v7 = vunpack.i.h.bf16 %v3786_v12 }
 0x3ed   : > { %v6233_v2 = vsel %vm445_vm0, %v3783_v41, %v3787_v46  ;;  %v6241_v30 = vsel %vm445_vm0, %v3788_v7, %v2185_v17  ;;  %v6244_v35 = vsel %vm445_vm0, %v3787_v46, %v3788_v7 }
 0x3ee   : > { %v3874_v57 = vpack.i.bf16 %v6233_v2, %v6230_v36  ;;  %v3914_v23 = vpack.i.bf16 %v6241_v30, %v6244_v35 }
 0x3f0   : > { %3875 = vrot.lane.b32.xlu0 %v3874_v57, %s4079_s26 }
 0x3f1   : > { %3865 = vrot.lane.b32.xlu2 %v3829_v38, %s4074_s21 }
 0x3f2   : > { %3845 = vrot.lane.b32.xlu1 %v3799_v63, %s4074_s21 }
 0x3f8   : > { %3880 = vrot.lane.b32.xlu0 %v3874_v57, %s4078_s25 }
 0x3f9   : > { %3870 = vrot.lane.b32.xlu2 %v3874_v57, %s4080_s27 }
 0x3fa   : > { %3915 = vrot.lane.b32.xlu1 %v3914_v23, %s4079_s26 }
 0x3fc   : > { %v3801_v33 = vpop.permute.xlu2 %3800 }
 0x3fd   : > { %v3803_v54 = vunpack.i.h.bf16 %v3801_v33  ;;  %v3802_v18 = vunpack.i.l.bf16 %v3801_v33 }
 0x3ff   : > { %v2507_v27 = vsel %vm1137_vm10, %v3802_v18, %v3803_v54 }
 0x400   : > { %2557 = vmatpush.msrb.mxu3 %v2507_v27  ;;  %3885 = vrot.lane.b32.xlu0 %v3874_v57, %s4077_s24 }
 0x401   : > { %v2187_v16 = vpop.permute.xlu1 %2186 }
 0x402   : > { %v6254_v60 = vsel %vm445_vm0, %v2185_v17, %v2187_v16  ;;  %v6257_v24 = vsel %vm445_vm0, %v2187_v16, %v2189_v11  ;;  %3920 = vrot.lane.b32.xlu1 %v3914_v23, %s4078_s25  ;;  %vm7190_vm0 = vcmask 760832  }
 0x403   : > { %v2210_v47 = vsel %vm486_vm1, %v6257_v24, 0.0  ;;  %v3979_v8 = vpack.i.bf16 %v6254_v60, %v6241_v30  ;;  %vm7192_vm12 = vmmov %vm7190_vm0 }
 0x404   : > { %v3944_v1 = vpack.i.bf16 %v2210_v47, %v6254_v60  ;;  %v6278_v42 = vpop.permute.xlu2 %3815  ;;  %vm7193_vm13 = vmmov %vm7190_vm0 }
 0x405   : > { %v3818_v39 = vunpack.i.h.bf16 %v6278_v42  ;;  %v3817_v26 = vunpack.i.l.bf16 %v6278_v42 }
 0x406   : > { %3945 = vrot.lane.b32.xlu2 %v3944_v1, %s4080_s27 }
 0x407   : > { %v2390_v43 = vsel %vm900_vm6, %v3817_v26, %v3818_v39 }
 0x408   : > { %3890 = vrot.lane.b32.xlu0 %v3874_v57, %s4076_s23 }
 0x40a   : > { %3925 = vrot.lane.b32.xlu1 %v3914_v23, %s4077_s24 }
 0x40e   : > { %3950 = vrot.lane.b32.xlu2 %v3944_v1, %s4079_s26 }
 0x410   : > { %3895 = vrot.lane.b32.xlu0 %v3874_v57, %s4075_s22 }
 0x412   : > { %3930 = vrot.lane.b32.xlu1 %v3914_v23, %s4076_s23 }
 0x414   : > { %v6269_v4 = vpop.permute.xlu0 %3790 }
 0x416   : > { %3955 = vrot.lane.b32.xlu2 %v3944_v1, %s4078_s25 }
 0x418   : > { %3900 = vrot.lane.b32.xlu0 %v3874_v57, %s4074_s21 }
 0x41a   : > { %3935 = vrot.lane.b32.xlu1 %v3914_v23, %s4075_s22 }
 0x41c   : > { %v3806_v28 = vpop.permute.xlu0 %3805 }
 0x41d   : > { %v3808_v19 = vunpack.i.h.bf16 %v3806_v28  ;;  %v3807_v51 = vunpack.i.l.bf16 %v3806_v28  ;;  %v3793_v28 = vunpack.i.h.bf16 %v6269_v4 }
 0x41e   : > { %3960 = vrot.lane.b32.xlu2 %v3944_v1, %s4077_s24 }
 0x41f   : > { %v2468_v45 = vsel %vm1058_vm8, %v3807_v51, %v3808_v19 }
 0x420   : > { %2558 = vmatpush.msrb.mxu3 %v2468_v45  ;;  %3905 = vrot.lane.b32.xlu0 %v3914_v23, %s4080_s27  ;;  %s6599_s27 = scalar_lea.vmem %s6695_s9, %s3103_s16 }
 0x422   : > { %3940 = vrot.lane.b32.xlu1 %v3914_v23, %s4074_s21 }
 0x426   : > { %3975 = vrot.lane.b32.xlu2 %v3944_v1, %s4074_s21 }
 0x428   : > { %3910 = vrot.lane.b32.xlu0 %v3874_v57, %s4073_s20 }
 0x42a   : > { %2225 = vrot.lane.b32.xlu1 %v6244_v35, %s4073_s20 }
 0x42b   : > { %v6287_v6 = vpop.permute.xlu2 %3830 }
 0x42c   : > { %v3833_v15 = vunpack.i.h.bf16 %v6287_v6  ;;  %v3832_v29 = vunpack.i.l.bf16 %v6287_v6 }
 0x42e   : > { %2733 = vperm.xlu2 %3772, %v2730_v20   ;;  %v2467_v58 = vsel %vm1058_vm8, %v3832_v29, %v3807_v51  ;;  %v2469_v62 = vsel %vm1058_vm8, %v3808_v19, %v3833_v15  ;;  %v3792_v19 = vunpack.i.l.bf16 %v6269_v4 }
 0x430   : > { %3965 = vrot.lane.b32.xlu0 %v3944_v1, %s4076_s23 }
 0x432   : > { %3970 = vrot.lane.b32.xlu1 %v3944_v1, %s4075_s22 }
 0x433   : > { %v6291_v25 = vpop.permute.xlu2 %3850 }
 0x434   : > { %v3853_v7 = vunpack.i.h.bf16 %v6291_v25  ;;  %v3852_v17 = vunpack.i.l.bf16 %v6291_v25 }
 0x436   : > { %v2391_v1 = vsel %vm900_vm6, %v3818_v39, %v3853_v7 }
 0x438   : > { %3980 = vrot.lane.b32.xlu0 %v3979_v8, %s4073_s20 }
 0x43a   : > { %2231 = vrot.lane.b32.xlu1 %v2210_v47, %s4073_s20  ;;  %v2389_v47 = vsel %vm900_vm6, %v3852_v17, %v3817_v26 }
 0x43b   : > { %v6297_v10 = vpop.permute.xlu2 %3855 }
 0x43c   : > { %v3858_v27 = vunpack.i.h.bf16 %v6297_v10  ;;  %v3857_v16 = vunpack.i.l.bf16 %v6297_v10 }
 0x440   : > { %2749 = vperm.xlu0 %3773, %v2746_v44  }
 0x443   : > { %v6302_v52 = vpop.permute.xlu2 %3860  ;;  %v3821_v3 = vpop.permute.xlu0 %3820 }
 0x444   : > { %v3823_v22 = vunpack.i.h.bf16 %v3821_v3  ;;  %v3822_v21 = vunpack.i.l.bf16 %v3821_v3  ;;  %v6306_v14 = vpop.permute.xlu1 %3795  ;;  %v3863_v51 = vunpack.i.h.bf16 %v6302_v52  ;;  %v3862_v45 = vunpack.i.l.bf16 %v6302_v52 }
 0x445   : > { %v3797_v44 = vunpack.i.l.bf16 %v6306_v14 }
 0x446   : > { %v2506_v31 = vsel %vm1137_vm10, %v3822_v21, %v3802_v18  ;;  %v2508_v50 = vsel %vm1137_vm10, %v3803_v54, %v3823_v22 }
 0x447   : > { %2537 = vmatpush.msrb.mxu1 %v2506_v31  ;;  %2577 = vmatpush.msrb.mxu0 %v2508_v50 }
 0x449   : > { %2538 = vmatpush.msrb.mxu1 %v2467_v58  ;;  %2578 = vmatpush.msrb.mxu0 %v2469_v62  ;;  %v3798_v62 = vunpack.i.h.bf16 %v6306_v14 }
 0x44b   : > { %v6314_v9 = vpop.permute.xlu2 %3865  ;;  %v3836_v34 = vpop.permute.xlu0 %3835 }
 0x44c   : > { %v3811_v13 = vpop.permute.xlu1 %3810  ;;  %v3838_v59 = vunpack.i.h.bf16 %v3836_v34  ;;  %v3837_v38 = vunpack.i.l.bf16 %v3836_v34  ;;  %v3868_v3 = vunpack.i.h.bf16 %v6314_v9  ;;  %v3867_v4 = vunpack.i.l.bf16 %v6314_v9 }
 0x44d   : > { %v3813_v56 = vunpack.i.h.bf16 %v3811_v13  ;;  %v3812_v40 = vunpack.i.l.bf16 %v3811_v13 }
 0x44e   : > { %v2312_v46 = vsel %vm7191_vm11, %v3837_v38, %v3838_v59  ;;  %v2311_v50 = vsel %vm7194_vm14, %v3862_v45, %v3837_v38  ;;  %v2313_v58 = vsel %vm7195_vm2, %v3838_v59, %v3863_v51  ;;  %vm7204_vm14 = vmmov %vm7195_vm2 }
 0x44f   : > { %v2429_v0 = vsel %vm979_vm7, %v3812_v40, %v3813_v56 }
 0x450   : > { %2559 = vmatpush.msrb.mxu3 %v2429_v0 }
 0x452   : > { %2560 = vmatpush.msrb.mxu3 %v2390_v43  ;;  %v6378_v43 = vld [vmem:[%s6692_s6] sm:$0xff] }
 0x453   : > { %v6320_v63 = vpop.permute.xlu2 %3870 }
 0x454   : > { %v3872_v53 = vunpack.i.l.bf16 %v6320_v63  ;;  %v3826_v61 = vpop.permute.xlu1 %3825 }
 0x455   : > { %v3828_v49 = vunpack.i.h.bf16 %v3826_v61  ;;  %v3827_v11 = vunpack.i.l.bf16 %v3826_v61 }
 0x456   : > { %v2509_v41 = vsel %vm1137_vm10, %v3823_v22, %v3872_v53 }
 0x457   : > { %v2351_v12 = vsel %vm7190_vm0, %v3827_v11, %v3828_v49  ;;  %2597 = vmatpush.msrb.mxu2 %v2509_v41  ;;  %v2350_v20 = vsel %vm7192_vm12, %v3857_v16, %v3827_v11  ;;  %v2352_v8 = vsel %vm7193_vm13, %v3828_v49, %v3858_v27  ;;  %vm7200_vm0 = vmmov %vm7199_vm15  ;;  %vm2526_vm12 = vcmask 588800  }
 0x458   : > { %2561 = vmatpush.msrb.mxu3 %v2351_v12  ;;  %v2234_v6 = vsel %vm7200_vm0, %v3793_v28, %v3797_v44  ;;  %vm7201_vm11 = vmmov %vm7200_vm0 }
 0x459   : > { %v2235_v0 = vsel %vm7201_vm11, %v3797_v44, %v3798_v62 }
 0x45a   : > { %2562 = vmatpush.msrb.mxu3 %v2312_v46 }
 0x45c   : > { %v6328_v57 = vpop.permute.xlu1 %3840 }
 0x45d   : > { %v3843_v23 = vunpack.i.h.bf16 %v6328_v57  ;;  %v3842_v33 = vunpack.i.l.bf16 %v6328_v57 }
 0x45f   : > { %v2428_v54 = vsel %vm979_vm7, %v3842_v33, %v3812_v40  ;;  %v2430_v18 = vsel %vm979_vm7, %v3813_v56, %v3843_v23  ;;  %v2233_v40 = vsel %vm7199_vm15, %v3792_v19, %v3793_v28  ;;  %vm7207_vm15 = vmmov %vm7200_vm0 }
 0x460   : > { %2539 = vmatpush.msrb.mxu1 %v2428_v54  ;;  %2579 = vmatpush.msrb.mxu0 %v2430_v18 }
 0x462   : > { %2540 = vmatpush.msrb.mxu1 %v2389_v47  ;;  %2580 = vmatpush.msrb.mxu0 %v2391_v1  ;;  %v6346_v42 = vpop.permute.xlu0 %3875 }
 0x463   : > { %v3877_v29 = vunpack.i.l.bf16 %v6346_v42  ;;  %v3878_v61 = vunpack.i.h.bf16 %v6346_v42 }
 0x464   : > { %v3846_v22 = vpop.permute.xlu1 %3845  ;;  %2541 = vmatpush.msrb.mxu1 %v2350_v20  ;;  %2581 = vmatpush.msrb.mxu0 %v2352_v8 }
 0x465   : > { %v3848_v21 = vunpack.i.h.bf16 %v3846_v22  ;;  %v3847_v31 = vunpack.i.l.bf16 %v3846_v22  ;;  %v2470_v13 = vsel %vm1058_vm8, %v3833_v15, %v3877_v29  ;;  %v3873_v15 = vunpack.i.h.bf16 %v6320_v63 }
 0x466   : > { %2542 = vmatpush.msrb.mxu1 %v2311_v50  ;;  %2582 = vmatpush.msrb.mxu0 %v2313_v58 }
 0x467   : > { %2598 = vmatpush.msrb.mxu2 %v2470_v13  ;;  %v2272_v39 = vsel %vm7196_vm4, %v3867_v4, %v3847_v31  ;;  %v2273_v26 = vsel %vm7197_vm3, %v3847_v31, %v3848_v21  ;;  %v2274_v56 = vsel %vm7198_vm5, %v3848_v21, %v3868_v3  ;;  %v2510_v32 = vsel %vm1137_vm10, %v3872_v53, %v3873_v15  ;;  %vm7205_vm4 = vmmov %vm7197_vm3 }
 0x468   : > { %2543 = vmatpush.msrb.mxu1 %v2272_v39  ;;  %2563 = vmatpush.msrb.mxu3 %v2273_v26  ;;  %vm7206_vm5 = vmmov %vm7200_vm0 }
 0x469   : > { %2583 = vmatpush.msrb.mxu0 %v2274_v56 }
 0x46a   : > { %2544 = vmatpush.msrb.mxu1 %v2233_v40  ;;  %2564 = vmatpush.msrb.mxu3 %v2234_v6  ;;  %v6380_v34 = vpop.permute.xlu0 %3880 }
 0x46b   : > { %2584 = vmatpush.msrb.mxu0 %v2235_v0  ;;  %v3882_v59 = vunpack.i.l.bf16 %v6380_v34  ;;  %v3883_v49 = vunpack.i.h.bf16 %v6380_v34 }
 0x46c   : > { %v6384_v38 = vpop.permute.xlu1 %3915  ;;  %3078 = vmatpush.msk.msrb.mxu1 %vm5087_vm9, %v6195_v5  ;;  %2565 = vmatpush.msrb.mxu3 %v6201_v48  ;;  %v2471_v5 = vsel %vm1058_vm8, %v3877_v29, %v3878_v61  ;;  %vm7202_vm9 = vmmov %vm7193_vm13 }
 0x46d   : > { %2585 = vmatpush.msrb.mxu0 %v6204_v55  ;;  %3079 = vmatmul.msk.f32.vlgmr.msrb.gmra.mxu1 %vm2526_vm12, %v6378_v43  ;;  %v2431_v11 = vsel %vm979_vm7, %v3843_v23, %v3882_v59  ;;  %v2432_v48 = vsel %vm979_vm7, %v3882_v59, %v3883_v49  ;;  %vm7203_vm13 = vmmov %vm7202_vm9  ;;  %v3918_v29 = vunpack.i.h.bf16 %v6384_v38  ;;  %v3917_v22 = vunpack.i.l.bf16 %v6384_v38 }
 0x46e   : > { %3080 = vmatmul.msk.f32.vlgmr.msrb.gmra.mxu3 %vm2526_vm12, %v6378_v43  ;;  %3081 = vmatmul.msk.f32.vlgmr.msrb.gmra.mxu0 %vm2526_vm12, %v6378_v43  ;;  %vm7208_vm0 = vmmov %vm7202_vm9 }
 0x46f   : > { %2599 = vmatpush.msrb.mxu2 %v2431_v11  ;;  %2617 = vmatpush.msra.mxu1 %v2510_v32  ;;  %v2472_v40 = vsel %vm1058_vm8, %v3878_v61, %v3917_v22  ;;  %v2473_v6 = vsel %vm1058_vm8, %v3917_v22, %v3918_v29  ;;  %vm7209_vm11 = vmmov %vm7208_vm0 }
 0x471   : > { %2618 = vmatpush.msra.mxu1 %v2471_v5 }
 0x472   : > { %v6410_v55 = vpop.permute.xlu0 %3885 }
 0x473   : > { %2619 = vmatpush.msra.mxu1 %v2432_v48  ;;  %v3888_v41 = vunpack.i.h.bf16 %v6410_v55  ;;  %v3887_v12 = vunpack.i.l.bf16 %v6410_v55 }
 0x474   : > { %v6414_v46 = vpop.permute.xlu1 %3920 }
 0x475   : > { %v2392_v53 = vsel %vm900_vm6, %v3853_v7, %v3887_v12  ;;  %v2393_v57 = vsel %vm900_vm6, %v3887_v12, %v3888_v41  ;;  %v6432_v7 = vpop.permute.xlu2 %3945  ;;  %v3923_v9 = vunpack.i.h.bf16 %v6414_v46 }
 0x476   : > { %2600 = vmatpush.msrb.mxu2 %v2392_v53  ;;  %2620 = vmatpush.msra.mxu1 %v2393_v57  ;;  %v3948_v53 = vunpack.i.h.bf16 %v6432_v7  ;;  %v3947_v57 = vunpack.i.l.bf16 %v6432_v7 }
 0x47a   : > { %v6420_v17 = vpop.permute.xlu0 %3890 }
 0x47b   : > { %v3893_v23 = vunpack.i.h.bf16 %v6420_v17  ;;  %v3892_v33 = vunpack.i.l.bf16 %v6420_v17 }
 0x47c   : > { %v6424_v54 = vpop.permute.xlu1 %3925 }
 0x47d   : > { %v2353_v18 = vsel %vm7202_vm9, %v3858_v27, %v3892_v33  ;;  %v2354_v25 = vsel %vm7203_vm13, %v3892_v33, %v3893_v23  ;;  %v6446_v19 = vpop.permute.xlu2 %3950  ;;  %v3928_v26 = vunpack.i.h.bf16 %v6424_v54  ;;  %v3927_v56 = vunpack.i.l.bf16 %v6424_v54  ;;  %vm7210_vm9 = vmmov %vm7195_vm2 }
 0x47e   : > { %2601 = vmatpush.msrb.mxu2 %v2353_v18  ;;  %2621 = vmatpush.msra.mxu1 %v2354_v25  ;;  %v3953_v25 = vunpack.i.h.bf16 %v6446_v19  ;;  %v3952_v7 = vunpack.i.l.bf16 %v6446_v19  ;;  %vm7211_vm13 = vmmov %vm7195_vm2 }
 0x47f   : > { %v2394_v32 = vsel %vm900_vm6, %v3888_v41, %v3927_v56  ;;  %v2395_v34 = vsel %vm900_vm6, %v3927_v56, %v3928_v26 }
 0x482   : > { %v6434_v16 = vpop.permute.xlu0 %3895 }
 0x483   : > { %v3898_v47 = vunpack.i.h.bf16 %v6434_v16  ;;  %v3897_v1 = vunpack.i.l.bf16 %v6434_v16 }
 0x484   : > { %v6438_v28 = vpop.permute.xlu1 %3930 }
 0x485   : > { %v2314_v10 = vsel %vm7204_vm14, %v3863_v51, %v3897_v1  ;;  %v2315_v27 = vsel %vm7195_vm2, %v3897_v1, %v3898_v47  ;;  %v6462_v21 = vpop.permute.xlu2 %3955  ;;  %v3933_v0 = vunpack.i.h.bf16 %v6438_v28  ;;  %v3932_v42 = vunpack.i.l.bf16 %v6438_v28  ;;  %vm7212_vm14 = vmmov %vm7197_vm3 }
 0x486   : > { %2602 = vmatpush.msrb.mxu2 %v2314_v10  ;;  %2622 = vmatpush.msra.mxu1 %v2315_v27  ;;  %v3958_v1 = vunpack.i.h.bf16 %v6462_v21  ;;  %v3957_v10 = vunpack.i.l.bf16 %v6462_v21  ;;  %vm7213_vm2 = vmmov %vm7197_vm3 }
 0x487   : > { %v2355_v33 = vsel %vm7208_vm0, %v3893_v23, %v3932_v42  ;;  %v2356_v18 = vsel %vm7209_vm11, %v3932_v42, %v3933_v0 }
 0x488   : > { %v2435_v22 = vsel %vm979_vm7, %v3923_v9, %v3957_v10  ;;  %v2436_v38 = vsel %vm979_vm7, %v3957_v10, %v3958_v1 }
 0x48a   : > { %v6448_v45 = vpop.permute.xlu0 %3900 }
 0x48b   : > { %v3903_v20 = vunpack.i.h.bf16 %v6448_v45  ;;  %v3902_v8 = vunpack.i.l.bf16 %v6448_v45 }
 0x48c   : > { %v6452_v44 = vpop.permute.xlu1 %3935 }
 0x48d   : > { %v2275_v52 = vsel %vm7205_vm4, %v3868_v3, %v3902_v8  ;;  %v2276_v51 = vsel %vm7197_vm3, %v3902_v8, %v3903_v20  ;;  %v3922_v3 = vunpack.i.l.bf16 %v6414_v46  ;;  %v3938_v5 = vunpack.i.h.bf16 %v6452_v44  ;;  %v6496_v55 = vpop.permute.xlu2 %3960  ;;  %vm7217_vm4 = vmmov %vm7208_vm0 }
 0x48e   : > { %2603 = vmatpush.msrb.mxu2 %v2275_v52  ;;  %2623 = vmatpush.msra.mxu1 %v2276_v51  ;;  %v3937_v48 = vunpack.i.l.bf16 %v6452_v44  ;;  %v2474_v8 = vsel %vm1058_vm8, %v3918_v29, %v3952_v7  ;;  %v2475_v52 = vsel %vm1058_vm8, %v3952_v7, %v3953_v25  ;;  %v3963_v51 = vunpack.i.h.bf16 %v6496_v55  ;;  %vm7216_vm8 = vmmov %vm7210_vm9 }
 0x48f   : > { %v2433_v63 = vsel %vm979_vm7, %v3883_v49, %v3922_v3  ;;  %vm7218_vm3 = vmmov %vm7216_vm8 }
 0x490   : > { %v2316_v17 = vsel %vm7210_vm9, %v3898_v47, %v3937_v48  ;;  %v2317_v23 = vsel %vm7211_vm13, %v3937_v48, %v3938_v5 }
 0x492   : > { %v3906_v4 = vpop.permute.xlu0 %3905 }
 0x493   : > { %v3908_v31 = vunpack.i.h.bf16 %v3906_v4  ;;  %v3907_v50 = vunpack.i.l.bf16 %v3906_v4  ;;  %v3962_v4 = vunpack.i.l.bf16 %v6496_v55 }
 0x494   : > { %v6464_v58 = vpop.permute.xlu1 %3940 }
 0x495   : > { %v2511_v13 = vsel %vm1137_vm10, %v3873_v15, %v3907_v50  ;;  %v2512_v39 = vsel %vm1137_vm10, %v3907_v50, %v3908_v31  ;;  %v2434_v15 = vsel %vm979_vm7, %v3922_v3, %v3923_v9  ;;  %v3943_v14 = vunpack.i.h.bf16 %v6464_v58  ;;  %v3976_v21 = vpop.permute.xlu2 %3975  ;;  %vm7215_vm7 = vmmov %vm7208_vm0 }
 0x496   : > { %2637 = vmatpush.msra.mxu3 %v2511_v13  ;;  %2657 = vmatpush.msra.mxu0 %v2512_v39  ;;  %v2396_v3 = vsel %vm900_vm6, %v3928_v26, %v3962_v4  ;;  %v2397_v46 = vsel %vm900_vm6, %v3962_v4, %v3963_v51  ;;  %v3978_v9 = vunpack.i.h.bf16 %v3976_v21  ;;  %v3977_v13 = vunpack.i.l.bf16 %v3976_v21  ;;  %vm7219_vm6 = vmmov %vm7206_vm5 }
 0x497   : > { %vm7222_vm0 = vmmov %vm7213_vm2 }
 0x498   : > { %2638 = vmatpush.msra.mxu3 %v2472_v40  ;;  %2658 = vmatpush.msra.mxu0 %v2473_v6  ;;  %vm7223_vm11 = vmmov %vm7219_vm6 }
 0x49a   : > { %v3911_v59 = vpop.permute.xlu0 %3910  ;;  %2639 = vmatpush.msra.mxu3 %v2433_v63  ;;  %2659 = vmatpush.msra.mxu0 %v2434_v15 }
 0x49b   : > { %v3913_v61 = vunpack.i.h.bf16 %v3911_v59  ;;  %v3912_v11 = vunpack.i.l.bf16 %v3911_v59 }
 0x49c   : > { %v6492_v49 = vpop.permute.xlu1 %2225  ;;  %2640 = vmatpush.msra.mxu3 %v2394_v32  ;;  %2660 = vmatpush.msra.mxu0 %v2395_v34 }
 0x49d   : > { %v2236_v12 = vsel %vm7206_vm5, %v3798_v62, %v3912_v11  ;;  %v2237_v41 = vsel %vm7207_vm15, %v3912_v11, %v3913_v61  ;;  %v3942_v62 = vunpack.i.l.bf16 %v6464_v58  ;;  %vm7221_vm15 = vmmov %vm7219_vm6 }
 0x49e   : > { %2604 = vmatpush.msrb.mxu2 %v2236_v12  ;;  %2624 = vmatpush.msra.mxu1 %v2237_v41 }
 0x49f   : > { %2641 = vmatpush.msra.mxu3 %v2355_v33  ;;  %2661 = vmatpush.msra.mxu0 %v2356_v18  ;;  %v2277_v47 = vsel %vm7212_vm14, %v3903_v20, %v3942_v62  ;;  %v2278_v27 = vsel %vm7213_vm2, %v3942_v62, %v3943_v14 }
 0x4a0   : > { %2605 = vmatpush.msrb.mxu2 %v6214_v37  ;;  %2625 = vmatpush.msra.mxu1 %v6230_v36  ;;  %v2513_v37 = vsel %vm1137_vm10, %v3908_v31, %v3947_v57  ;;  %v2514_v36 = vsel %vm1137_vm10, %v3947_v57, %v3948_v53  ;;  %vm7214_vm10 = vmmov %vm7206_vm5 }
 0x4a1   : > { %2642 = vmatpush.msra.mxu3 %v2316_v17  ;;  %2662 = vmatpush.msra.mxu0 %v2317_v23  ;;  %v2238_v45 = vsel %vm7214_vm10, %v3913_v61, %v6492_v49  ;;  %vm7220_vm5 = vmmov %vm7213_vm2 }
 0x4a2   : > { %3082 = vmatmul.msk.f32.vlgmr.msrb.gmra.mxu2 %vm2526_vm12, %v6378_v43  ;;  %3083 = vmatmul.msk.f32.vlgmr.msra.gmra.mxu1 %vm2526_vm12, %v6378_v43  ;;  %v3966_v16 = vpop.permute.xlu0 %3965  ;;  %v2279_v44 = vsel %vm7220_vm5, %v3943_v14, %v3977_v13 }
 0x4a3   : > { %2677 = vmatpush.msra.mxu2 %v2513_v37  ;;  %2697 = vmatpush.msrb.mxu1 %v2514_v36  ;;  %v3967_v20 = vunpack.i.l.bf16 %v3966_v16  ;;  %v3968_v31 = vunpack.i.h.bf16 %v3966_v16 }
 0x4a4   : > { %v3971_v19 = vpop.permute.xlu1 %3970  ;;  %2643 = vmatpush.msra.mxu3 %v2277_v47  ;;  %2663 = vmatpush.msra.mxu0 %v2278_v27 }
 0x4a5   : > { %2678 = vmatpush.msra.mxu2 %v2474_v8  ;;  %2698 = vmatpush.msrb.mxu1 %v2475_v52  ;;  %v3972_v29 = vunpack.i.l.bf16 %v3971_v19  ;;  %v3973_v50 = vunpack.i.h.bf16 %v3971_v19  ;;  %v2357_v39 = vsel %vm7215_vm7, %v3933_v0, %v3967_v20  ;;  %v2358_v54 = vsel %vm7217_vm4, %v3967_v20, %v3968_v31 }
 0x4a6   : > { %2644 = vmatpush.msra.mxu3 %v2238_v45  ;;  %v2280_v0 = vsel %vm7222_vm0, %v3977_v13, %v3978_v9 }
 0x4a7   : > { %2679 = vmatpush.msra.mxu2 %v2435_v22  ;;  %2699 = vmatpush.msrb.mxu1 %v2436_v38  ;;  %v2319_v6 = vsel %vm7218_vm3, %v3972_v29, %v3973_v50 }
 0x4a8   : > { %2645 = vmatpush.msra.mxu3 %v6233_v2  ;;  %v2318_v2 = vsel %vm7216_vm8, %v3938_v5, %v3972_v29 }
 0x4a9   : > { %3084 = vmatmul.msk.f32.vlgmr.msra.gmra.mxu3 %vm2526_vm12, %v6378_v43  ;;  %2680 = vmatpush.msra.mxu2 %v2396_v3 }
 0x4aa   : > { %2700 = vmatpush.msrb.mxu1 %v2397_v46  ;;  %2717 = vmatpush.msrb.mxu3 %v3948_v53  ;;  %v3981_v56 = vpop.permute.xlu0 %3980 }
 0x4ab   : > { %2681 = vmatpush.msra.mxu2 %v2357_v39  ;;  %v3983_v26 = vunpack.i.h.bf16 %v3981_v56  ;;  %v3982_v40 = vunpack.i.l.bf16 %v3981_v56 }
 0x4ac   : > { %2701 = vmatpush.msrb.mxu1 %v2358_v54  ;;  %2718 = vmatpush.msrb.mxu3 %v3953_v25  ;;  %v2232_v63 = vpop.permute.xlu1 %2231 }
 0x4ad   : > { %2682 = vmatpush.msra.mxu2 %v2318_v2  ;;  %v2239_v28 = vsel %vm7219_vm6, %v6492_v49, %v3982_v40  ;;  %v2240_v15 = vsel %vm7221_vm15, %v3982_v40, %v3983_v26  ;;  %v2241_v42 = vsel %vm7223_vm11, %v3983_v26, %v2232_v63 }
 0x4ae   : > { %2702 = vmatpush.msrb.mxu1 %v2319_v6  ;;  %2719 = vmatpush.msrb.mxu3 %v3958_v1 }
 0x4af   : > { %2683 = vmatpush.msra.mxu2 %v2279_v44  ;;  %2664 = vmatpush.msra.mxu0 %v2239_v28 }
 0x4b0   : > { %2703 = vmatpush.msrb.mxu1 %v2280_v0  ;;  %2720 = vmatpush.msrb.mxu3 %v3963_v51 }
 0x4b1   : > { %2684 = vmatpush.msra.mxu2 %v2240_v15  ;;  %2665 = vmatpush.msra.mxu0 %v6244_v35  ;;  %v6584_v35 = vpop.permute.xlu2 %2733 }
 0x4b2   : > { %2721 = vmatpush.msrb.mxu3 %v3968_v31  ;;  %3085 = vmatmul.msk.f32.vlgmr.msra.gmra.mxu0 %vm2526_vm12, %v6378_v43  ;;  %v6587_v61 = vpop.permute.xlu0 %2749 }
 0x4b3   : > { %2685 = vmatpush.msra.mxu2 %v6241_v30  ;;  %2704 = vmatpush.msrb.mxu1 %v2241_v42 }
 0x4b4   : > { %2722 = vmatpush.msrb.mxu3 %v3973_v50  ;;  %3086 = vmatmul.msk.f32.vlgmr.msra.gmra.mxu2 %vm2526_vm12, %v6378_v43 }
 0x4b5   : > { %2705 = vmatpush.msrb.mxu1 %v6254_v60 }
 0x4b6   : > { %2723 = vmatpush.msrb.mxu3 %v3978_v9  ;;  %3087 = vmatmul.msk.f32.vlgmr.msrb.gmra.mxu1 %vm2526_vm12, %v6378_v43 }
 0x4b8   : > { %2724 = vmatpush.msrb.mxu3 %v2232_v63 }
 0x4ba   : > { %3088 = vmatpush.msk.msrb.mxu3 %vm486_vm1, %v6257_v24 }
 0x4bb   : > { %3089 = vmatmul.msk.f32.vlgmr.msrb.gmra.mxu3 %vm2526_vm12, %v6378_v43 }
 0x4ea   : > { %v2547_v30 = vpop.f32.mrf.mxu1 }
 0x4eb   : > { %v2736_v58 = vmul.f32 %v6584_v35, %v2547_v30  ;;  %v2587_v59 = vpop.f32.mrf.mxu0 }
 0x4ec   : > { %v2738_v60 = vmul.f32 %v6584_v35, %v2587_v59 }
 0x4ed   : > { %v2752_v11 = vadd.f32 %v6587_v61, %v2736_v58 }
 0x4ee   : > { %v2754_v32 = vadd.f32 %v6587_v61, %v2738_v60 }
 0x4ef   : > { %v3090_v34 = vmul.f32 -1.442695, %v2752_v11 }
 0x4f0   : > { %v3092_v49 = vmul.f32 -1.442695, %v2754_v32 }
 0x4f1   : > { %4024 = vpow2.f32 %v3090_v34  ;;  %v2567_v24 = vpop.f32.mrf.mxu3 }
 0x4f2   : > { %4026 = vpow2.f32 %v3092_v49  ;;  %v2737_v43 = vmul.f32 %v6584_v35, %v2567_v24 }
 0x4f4   : > { %v2753_v5 = vadd.f32 %v6587_v61, %v2737_v43 }
 0x4f6   : > { %v3091_v48 = vmul.f32 -1.442695, %v2753_v5 }
 0x4f7   : > { %v4025_v55 = vpop.eup %4024 }
 0x4f8   : > { %v4027_v12 = vpop.eup %4026  ;;  %v2792_v41 = vadd.f32 1.0, %v4025_v55  ;;  %4028 = vpow2.f32 %v3091_v48 }
 0x4f9   : > { %v2794_v53 = vadd.f32 1.0, %v4027_v12 }
 0x4fa   : > { %4030 = vrcp.f32 %v2792_v41  ;;  %v2813_v17 = vand.u32 2147483648, %v2792_v41  ;;  %v2811_v10 = vand.u32 2147483647, %v2792_v41  ;;  %vm2807_vm9 = vweird.f32 %v2792_v41 }
 0x4fb   : > { %4032 = vrcp.f32 %v2794_v53  ;;  %v2843_v37 = vand.u32 2147483648, %v2794_v53  ;;  %v2841_v16 = vand.u32 2147483647, %v2794_v53  ;;  %vm2837_vm14 = vweird.f32 %v2794_v53 }
 0x4fc   : > { %v2814_v19 = vor.u32 1.1754944e-38, %v2813_v17  ;;  %vm2812_vm2 = vcmp.eq.f32.partialorder %v2811_v10, 8.507059e+37 }
 0x4fd   : > { %v2844_v4 = vor.u32 1.1754944e-38, %v2843_v37  ;;  %vm2842_vm7 = vcmp.eq.f32.partialorder %v2841_v16, 8.507059e+37 }
 0x4fe   : > { %v4029_v57 = vpop.eup %4028 }
 0x4ff   : > { %v2793_v33 = vadd.f32 1.0, %v4029_v57 }
 0x500   : > { %v4031_v18 = vpop.eup %4030 }
 0x501   : > { %v4033_v14 = vpop.eup %4032  ;;  %v2803_v62 = vmul.f32 %v4031_v18, %v2792_v41  ;;  %4034 = vrcp.f32 %v2793_v33  ;;  %vm2808_vm1 = vweird.f32 %v4031_v18  ;;  %v2828_v21 = vand.u32 2147483648, %v2793_v33 }
 0x502   : > { %v2833_v25 = vmul.f32 %v4033_v14, %v2794_v53  ;;  %vm2838_vm12 = vweird.f32 %v4033_v14  ;;  %vm2809_vm13 = vmor %vm2807_vm9, %vm2808_vm1  ;;  %v2826_v3 = vand.u32 2147483647, %v2793_v33  ;;  %vm2822_vm4 = vweird.f32 %v2793_v33 }
 0x503   : > { %v2804_v7 = vsub.f32 1.0, %v2803_v62  ;;  %vm2839_vm10 = vmor %vm2837_vm14, %vm2838_vm12  ;;  %v2829_v9 = vor.u32 1.1754944e-38, %v2828_v21 }
 0x504   : > { %v2834_v23 = vsub.f32 1.0, %v2833_v25  ;;  %vm2827_vm6 = vcmp.eq.f32.partialorder %v2826_v3, 8.507059e+37 }
 0x505   : > { %v2805_v1 = vmul.f32 %v4031_v18, %v2804_v7 }
 0x506   : > { %v2835_v36 = vmul.f32 %v4033_v14, %v2834_v23 }
 0x507   : > { %v4035_v47 = vpop.eup %4034  ;;  %v2806_v27 = vadd.f32 %v4031_v18, %v2805_v1 }
 0x508   : > { %v2836_v8 = vadd.f32 %v4033_v14, %v2835_v36  ;;  %v2818_v52 = vmul.f32 %v4035_v47, %v2793_v33  ;;  %vm2823_vm8 = vweird.f32 %v4035_v47 }
 0x509   : > { %v2810_v51 = vsel %vm2809_vm13, %v4031_v18, %v2806_v27  ;;  %vm2824_vm3 = vmor %vm2822_vm4, %vm2823_vm8 }
 0x50a   : > { %v2815_v45 = vsel %vm2812_vm2, %v2814_v19, %v2810_v51  ;;  %v2840_v20 = vsel %vm2839_vm10, %v4033_v14, %v2836_v8  ;;  %v2819_v22 = vsub.f32 1.0, %v2818_v52 }
 0x50b   : > { %v2952_v38 = vmul.f32 %v2815_v45, %v2752_v11  ;;  %v2845_v29 = vsel %vm2842_vm7, %v2844_v4, %v2840_v20 }
 0x50c   : > { %v2954_v31 = vmul.f32 %v2845_v29, %v2754_v32  ;;  %v2820_v50 = vmul.f32 %v4035_v47, %v2819_v22 }
 0x50d   : > { %2962 = vst [vmem:[%s6599_s27] sm:$0xff] %v2952_v38 }
 0x50e   : > { %2964 = vst [vmem:[%s6599_s27 + $0x10] sm:$0xff] %v2954_v31  ;;  %v2821_v46 = vadd.f32 %v4035_v47, %v2820_v50 }
 0x510   : > { %v2825_v13 = vsel %vm2824_vm3, %v4035_v47, %v2821_v46 }
 0x511   : > { %v2830_v39 = vsel %vm2827_vm6, %v2829_v9, %v2825_v13 }
 0x512   : > { %v2953_v56 = vmul.f32 %v2830_v39, %v2753_v5 }
 0x514   : > { %2963 = vst [vmem:[%s6599_s27 + $0x8] sm:$0xff] %v2953_v56 }
 0x51f   : > { %v2627_v2 = vpop.f32.mrf.mxu1 }
 0x520   : > { %v2740_v54 = vmul.f32 %v6584_v35, %v2627_v2 }
 0x522   : > { %v2756_v26 = vadd.f32 %v6587_v61, %v2740_v54 }
 0x524   : > { %v3094_v40 = vmul.f32 -1.442695, %v2756_v26 }
 0x525   : > { %v2607_v6 = vpop.f32.mrf.mxu2 }
 0x526   : > { %4036 = vpow2.f32 %v3094_v40  ;;  %v2739_v28 = vmul.f32 %v6584_v35, %v2607_v6 }
 0x528   : > { %v6608_v63 = vadd.f32 %v6587_v61, %v2739_v28 }
 0x52a   : > { %v3093_v44 = vmul.f32 -1.442695, %v6608_v63 }
 0x52c   : > { %v4037_v15 = vpop.eup %4036  ;;  %4038 = vpow2.f32 %v3093_v44  ;;  %v2647_v0 = vpop.f32.mrf.mxu3 }
 0x52d   : > { %v2796_v42 = vadd.f32 1.0, %v4037_v15  ;;  %v2741_v30 = vmul.f32 %v6584_v35, %v2647_v0 }
 0x52f   : > { %4040 = vrcp.f32 %v2796_v42  ;;  %v2667_v58 = vpop.f32.mrf.mxu0  ;;  %v6613_v59 = vadd.f32 %v6587_v61, %v2741_v30  ;;  %v2871_v18 = vand.u32 2147483647, %v2796_v42  ;;  %v2873_v14 = vand.u32 2147483648, %v2796_v42 }
 0x530   : > { %v2742_v60 = vmul.f32 %v6584_v35, %v2667_v58  ;;  %vm2867_vm15 = vweird.f32 %v2796_v42 }
 0x531   : > { %v3095_v32 = vmul.f32 -1.442695, %v6613_v59  ;;  %vm2872_vm11 = vcmp.eq.f32.partialorder %v2871_v18, 8.507059e+37  ;;  %v2874_v16 = vor.u32 1.1754944e-38, %v2873_v14 }
 0x532   : > { %v4039_v11 = vpop.eup %4038  ;;  %v6618_v34 = vadd.f32 %v6587_v61, %v2742_v60 }
 0x533   : > { %v2795_v49 = vadd.f32 1.0, %v4039_v11  ;;  %v2707_v24 = vpop.f32.mrf.mxu1  ;;  %4042 = vpow2.f32 %v3095_v32 }
 0x534   : > { %v3096_v43 = vmul.f32 -1.442695, %v6618_v34  ;;  %v2744_v5 = vmul.f32 %v6584_v35, %v2707_v24 }
 0x535   : > { %v4041_v48 = vpop.eup %4040  ;;  %4044 = vrcp.f32 %v2795_v49  ;;  %v2856_v51 = vand.u32 2147483647, %v2795_v49  ;;  %v2858_v4 = vand.u32 2147483648, %v2795_v49  ;;  %vm2852_vm12 = vweird.f32 %v2795_v49 }
 0x536   : > { %v2863_v55 = vmul.f32 %v4041_v48, %v2796_v42  ;;  %4046 = vpow2.f32 %v3096_v43  ;;  %v6623_v12 = vadd.f32 %v6587_v61, %v2744_v5  ;;  %vm2868_vm5 = vweird.f32 %v4041_v48 }
 0x537   : > { %v2687_v41 = vpop.f32.mrf.mxu2  ;;  %vm2869_vm0 = vmor %vm2867_vm15, %vm2868_vm5  ;;  %v2859_v3 = vor.u32 1.1754944e-38, %v2858_v4  ;;  %vm2857_vm13 = vcmp.eq.f32.partialorder %v2856_v51, 8.507059e+37 }
 0x538   : > { %v2864_v53 = vsub.f32 1.0, %v2863_v55  ;;  %v3098_v57 = vmul.f32 -1.442695, %v6623_v12  ;;  %v2743_v33 = vmul.f32 %v6584_v35, %v2687_v41 }
 0x539   : > { %v4043_v62 = vpop.eup %4042 }
 0x53a   : > { %v2865_v25 = vmul.f32 %v4041_v48, %v2864_v53  ;;  %4048 = vpow2.f32 %v3098_v57  ;;  %v6628_v7 = vadd.f32 %v6587_v61, %v2743_v33  ;;  %v6630_v23 = vadd.f32 1.0, %v4043_v62 }
 0x53b   : > { %v4045_v17 = vpop.eup %4044 }
 0x53c   : > { %v4047_v1 = vpop.eup %4046  ;;  %v2866_v10 = vadd.f32 %v4041_v48, %v2865_v25  ;;  %v2848_v37 = vmul.f32 %v4045_v17, %v2795_v49  ;;  %v3097_v36 = vmul.f32 -1.442695, %v6628_v7  ;;  %4050 = vrcp.f32 %v6630_v23 }
 0x53d   : > { %v6634_v19 = vadd.f32 1.0, %v4047_v1  ;;  %vm2853_vm1 = vweird.f32 %v4045_v17  ;;  %v2886_v28 = vand.u32 2147483647, %v6630_v23  ;;  %vm2882_vm2 = vweird.f32 %v6630_v23 }
 0x53e   : > { %v2870_v47 = vsel %vm2869_vm0, %v4041_v48, %v2866_v10  ;;  %v2849_v27 = vsub.f32 1.0, %v2848_v37  ;;  %4052 = vpow2.f32 %v3097_v36  ;;  %v2727_v8 = vpop.f32.mrf.mxu3  ;;  %vm2854_vm9 = vmor %vm2852_vm12, %vm2853_vm1 }
 0x53f   : > { %v2875_v52 = vsel %vm2872_vm11, %v2874_v16, %v2870_v47  ;;  %v2745_v45 = vmul.f32 %v6584_v35, %v2727_v8  ;;  %4054 = vrcp.f32 %v6634_v19  ;;  %v2903_v0 = vand.u32 2147483648, %v6634_v19 }
 0x540   : > { %v4049_v20 = vpop.eup %4048  ;;  %v2956_v22 = vmul.f32 %v2875_v52, %v2756_v26  ;;  %v2850_v38 = vmul.f32 %v4045_v17, %v2849_v27  ;;  %v2888_v26 = vand.u32 2147483648, %v6630_v23  ;;  %v2901_v60 = vand.u32 2147483647, %v6634_v19 }
 0x541   : > { %v6638_v29 = vadd.f32 1.0, %v4049_v20  ;;  %v6641_v21 = vadd.f32 %v6587_v61, %v2745_v45  ;;  %vm2887_vm8 = vcmp.eq.f32.partialorder %v2886_v28, 8.507059e+37  ;;  %vm2897_vm4 = vweird.f32 %v6634_v19 }
 0x542   : > { %2966 = vst [vmem:[%s6599_s27 + $0x20] sm:$0xff] %v2956_v22  ;;  %v2851_v31 = vadd.f32 %v4045_v17, %v2850_v38  ;;  %v4051_v50 = vpop.eup %4050  ;;  %v2904_v48 = vor.u32 1.1754944e-38, %v2903_v0  ;;  %vm2902_vm5 = vcmp.eq.f32.partialorder %v2901_v60, 8.507059e+37 }
 0x543   : > { %4056 = vrcp.f32 %v6638_v29  ;;  %v2878_v9 = vmul.f32 %v4051_v50, %v6630_v23  ;;  %v3099_v61 = vmul.f32 -1.442695, %v6641_v21  ;;  %vm2883_vm14 = vweird.f32 %v4051_v50 }
 0x544   : > { %v4053_v35 = vpop.eup %4052  ;;  %v2855_v46 = vsel %vm2854_vm9, %v4045_v17, %v2851_v31  ;;  %vm2884_vm10 = vmor %vm2882_vm2, %vm2883_vm14  ;;  %v2931_v11 = vand.u32 2147483647, %v6638_v29  ;;  %v2933_v55 = vand.u32 2147483648, %v6638_v29  ;;  %vm2927_vm15 = vweird.f32 %v6638_v29 }
 0x545   : > { %v2860_v13 = vsel %vm2857_vm13, %v2859_v3, %v2855_v46  ;;  %v6646_v39 = vadd.f32 1.0, %v4053_v35  ;;  %v4055_v56 = vpop.eup %4054  ;;  %v2879_v54 = vsub.f32 1.0, %v2878_v9 }
 0x546   : > { %v2955_v2 = vmul.f32 %v2860_v13, %v6608_v63  ;;  %v2893_v40 = vmul.f32 %v4055_v56, %v6634_v19  ;;  %v2889_v63 = vor.u32 1.1754944e-38, %v2888_v26  ;;  %vm2898_vm7 = vweird.f32 %v4055_v56 }
 0x547   : > { %4058 = vrcp.f32 %v6646_v39  ;;  %v2880_v6 = vmul.f32 %v4051_v50, %v2879_v54  ;;  %vm2899_vm3 = vmor %vm2897_vm4, %vm2898_vm7  ;;  %vm6665_vm0 = vcmp.eq.f32.partialorder %v2931_v11, 8.507059e+37  ;;  %v2934_v1 = vor.u32 1.1754944e-38, %v2933_v55 }
 0x548   : > { %2965 = vst [vmem:[%s6599_s27 + $0x18] sm:$0xff] %v2955_v2  ;;  %v2894_v15 = vsub.f32 1.0, %v2893_v40  ;;  %4060 = vpow2.f32 %v3099_v61  ;;  %v2916_v10 = vand.u32 2147483647, %v6646_v39  ;;  %v2918_v37 = vand.u32 2147483648, %v6646_v39 }
 0x549   : > { %v4057_v44 = vpop.eup %4056  ;;  %v2881_v42 = vadd.f32 %v4051_v50, %v2880_v6  ;;  %vm2912_vm12 = vweird.f32 %v6646_v39 }
 0x54a   : > { %v2923_v30 = vmul.f32 %v4057_v44, %v6638_v29  ;;  %v2895_v58 = vmul.f32 %v4055_v56, %v2894_v15  ;;  %vm2928_vm6 = vweird.f32 %v4057_v44  ;;  %vm2917_vm13 = vcmp.eq.f32.partialorder %v2916_v10, 8.507059e+37 }
 0x54b   : > { %v2885_v32 = vsel %vm2884_vm10, %v4051_v50, %v2881_v42  ;;  %vm2929_vm11 = vmor %vm2927_vm15, %vm2928_vm6 }
 0x54c   : > { %v2924_v49 = vsub.f32 1.0, %v2923_v30  ;;  %v2890_v43 = vsel %vm2887_vm8, %v2889_v63, %v2885_v32  ;;  %v2896_v5 = vadd.f32 %v4055_v56, %v2895_v58  ;;  %vm2971_vm8 = vcmask 31744  }
 0x54d   : > { %v4059_v24 = vpop.eup %4058  ;;  %v2957_v41 = vmul.f32 %v2890_v43, %v6613_v59 }
 0x54e   : > { %v2925_v53 = vmul.f32 %v4057_v44, %v2924_v49  ;;  %v2908_v57 = vmul.f32 %v4059_v24, %v6646_v39  ;;  %v4061_v33 = vpop.eup %4060  ;;  %v2900_v18 = vsel %vm2899_vm3, %v4055_v56, %v2896_v5  ;;  %vm2913_vm1 = vweird.f32 %v4059_v24 }
 0x54f   : > { %2967 = vst [vmem:[%s6599_s27 + $0x28] sm:$0xff] %v2957_v41  ;;  %v2905_v62 = vsel %vm2902_vm5, %v2904_v48, %v2900_v18  ;;  %v2801_v59 = vadd.f32 1.0, %v4061_v33  ;;  %vm2914_vm9 = vmor %vm2912_vm12, %vm2913_vm1 }
 0x550   : > { %v2926_v25 = vadd.f32 %v4057_v44, %v2925_v53  ;;  %v2909_v17 = vsub.f32 1.0, %v2908_v57  ;;  %v2958_v23 = vmul.f32 %v2905_v62, %v6618_v34  ;;  %v2919_v34 = vor.u32 1.1754944e-38, %v2918_v37 }
 0x551   : > { %4062 = vrcp.f32 %v2801_v59  ;;  %v2948_v22 = vand.u32 2147483648, %v2801_v59  ;;  %vm2942_vm2 = vweird.f32 %v2801_v59 }
 0x552   : > { %v2930_v36 = vsel %vm2929_vm11, %v4057_v44, %v2926_v25  ;;  %v2910_v16 = vmul.f32 %v4059_v24, %v2909_v17  ;;  %2968 = vst [vmem:[%s6599_s27 + $0x30] sm:$0xff] %v2958_v23 }
 0x553   : > { %v2935_v47 = vsel %vm6665_vm0, %v2934_v1, %v2930_v36  ;;  %v2949_v31 = vor.u32 1.1754944e-38, %v2948_v22 }
 0x554   : > { %v2960_v27 = vmul.f32 %v2935_v47, %v6623_v12  ;;  %v2911_v19 = vadd.f32 %v4059_v24, %v2910_v16  ;;  %v2946_v12 = vand.u32 2147483647, %v2801_v59 }
 0x556   : > { %2970 = vst [vmem:[%s6599_s27 + $0x40] sm:$0xff] %v2960_v27  ;;  %v2915_v8 = vsel %vm2914_vm9, %v4059_v24, %v2911_v19  ;;  %vm2947_vm7 = vcmp.eq.f32.partialorder %v2946_v12, 8.507059e+37 }
 0x557   : > { %v2920_v52 = vsel %vm2917_vm13, %v2919_v34, %v2915_v8  ;;  %v4063_v51 = vpop.eup %4062 }
 0x558   : > { %v2959_v4 = vmul.f32 %v2920_v52, %v6628_v7  ;;  %v2938_v45 = vmul.f32 %v4063_v51, %v2801_v59  ;;  %vm2943_vm14 = vweird.f32 %v4063_v51 }
 0x559   : > { %vm2944_vm10 = vmor %vm2942_vm2, %vm2943_vm14 }
 0x55a   : > { %2969 = vst [vmem:[%s6599_s27 + $0x38] sm:$0xff] %v2959_v4  ;;  %v2939_v20 = vsub.f32 1.0, %v2938_v45 }
 0x55c   : > { %v2940_v38 = vmul.f32 %v4063_v51, %v2939_v20 }
 0x55e   : > { %v2941_v29 = vadd.f32 %v4063_v51, %v2940_v38 }
 0x560   : > { %v2945_v50 = vsel %vm2944_vm10, %v4063_v51, %v2941_v29 }
 0x561   : > { %v2950_v3 = vsel %vm2947_vm7, %v2949_v31, %v2945_v50 }
 0x562   : > { %v2961_v35 = vmul.f32 %v2950_v3, %v6641_v21 }
 0x564   : > { %2972 = vst.msk [vmem:[%s6599_s27 + $0x48] sm:$0xff] %vm2971_vm8, %v2961_v35 }
 0x565 PF: > { %s19_s30 = sadd.s32 1, %s4070_s30  }
 0x566   : > { %p16_p4 = scmp.ge.s32.totalorder %s19_s30, 4  }
 0x568   :  { %18 = sbr.rel (!%p16_p4) target bundleno = 1 (0x1), region = 89 }

</bundles_post_ra>
